<compile_context>
chip_gen: v5e
topology: v5e:2x2
jax: 0.10.0
libtpu: 0.0.40
codegen_flags: <defaults>
</compile_context>

<pallas_src>
import functools

import jax
import jax.numpy as jnp
from jax import lax
from jax.experimental import pallas as pl
from jax.experimental.pallas import tpu as pltpu

BN_EPS = 1e-5
LANE = 128            # pad channel dims to a multiple of this (lane width)
TARGET_ROWS = 1024    # target spatial rows (TH * W) per grid tile


def _round_up(x, m):
    return (x + m - 1) // m * m


def _choose_th(h, w):
    """Largest divisor th of h with th*w <= TARGET_ROWS and th*w % 8 == 0."""
    best = None
    for th in range(1, h + 1):
        if h % th:
            continue
        rows = th * w
        if rows <= TARGET_ROWS and rows % 8 == 0:
            best = th
    return best if best is not None else h


# ---------------------------------------------------------------------------
# Pass 1: 3x3 conv (pad=1), plus per-tile per-channel sum / sum-of-squares.
# ---------------------------------------------------------------------------
def _conv_stats_kernel(x_ref, w_ref, y_ref, sum_ref, ssq_ref, acc_ref,
                       *, th, ww):
    """x_ref:   (1, H+2, W+2, Cin_p)  bf16  whole padded image (DMA'd once per n)
       w_ref:   (9, Cin_p, Cout_p)    bf16  per-tap weights
       y_ref:   (th*ww, Cout_p)       f32   pre-BN conv rows of this tile
       sum_ref: (1, 1, Cout_p)        f32   per-tile channel sum
       ssq_ref: (1, 1, Cout_p)        f32   per-tile channel sum of squares
       acc_ref: (th*ww, Cout_p)       f32   VMEM accumulator scratch
    """
    hb = pl.program_id(1)
    h0 = hb * th
    if th % 8 == 0:
        h0 = pl.multiple_of(h0, 8)

    cin_p = x_ref.shape[-1]
    cout_p = y_ref.shape[-1]
    rows = th * ww

    # 3x3 conv = 9 shifted matmuls; taps formed in-kernel from the
    # VMEM-resident padded image.  The three dx taps of one kernel row are
    # accumulated in vregs, then flushed to the f32 VMEM scratch (3 RMW
    # instead of 9 on the accumulator).
    for dy in range(3):
        part = None
        for dx in range(3):
            t = dy * 3 + dx
            tap = x_ref[0, pl.ds(h0 + dy, th), pl.ds(dx, ww), :]  # (th, ww, Cin_p)
            tap = tap.reshape(rows, cin_p)
            c = jnp.dot(tap, w_ref[t], preferred_element_type=jnp.float32)
            part = c if part is None else part + c
        if dy == 0:
            acc_ref[...] = part
        else:
            acc_ref[...] += part

    y = acc_ref[...]                                           # f32
    y_ref[...] = y
    sum_ref[...] = jnp.sum(y, axis=0, keepdims=True).reshape(1, 1, cout_p)
    ssq_ref[...] = jnp.sum(y * y, axis=0, keepdims=True).reshape(1, 1, cout_p)


# ---------------------------------------------------------------------------
# Pass 2: fused BN affine (scale/shift) + ReLU, lane-dense store.
# ---------------------------------------------------------------------------
def _affine_relu_kernel(y_ref, scale_ref, shift_ref, o_ref):
    z = y_ref[...] * scale_ref[...] + shift_ref[...]           # all f32
    o_ref[...] = jnp.maximum(z, 0.0).astype(o_ref.dtype)


def _conv_bn_relu_layer(xp, w_oihw, bias, gamma, beta, out_dtype):
    """One Conv3x3(pad=1) + train-mode BN + ReLU layer.

    xp: (N, H+2, W+2, Cin_p) bf16, spatially and channel (lane) padded.
    Returns (N*H*W, Cout_p) in out_dtype (channels-last rows, lane padded).

    `bias` is accepted for interface parity with nn.Conv2d(bias=True) but is
    mathematically cancelled by train-mode BatchNorm, so it never reaches the
    kernels.
    """
    del bias
    n, hp2, wp2, cin_p = xp.shape
    h, w = hp2 - 2, wp2 - 2
    cout, cin = w_oihw.shape[0], w_oihw.shape[1]
    cout_p = _round_up(cout, LANE)
    m = n * h * w

    th = _choose_th(h, w)
    n_hb = h // th
    rows = th * w

    # Weights: (Cout, Cin, 3, 3) -> (9, Cin_p, Cout_p), zero padded, bf16.
    wk = jnp.transpose(w_oihw, (2, 3, 1, 0)).reshape(9, cin, cout)
    wk = jnp.pad(wk, ((0, 0), (0, cin_p - cin), (0, cout_p - cout)))
    wk = wk.astype(jnp.bfloat16)

    conv_kernel = functools.partial(_conv_stats_kernel, th=th, ww=w)
    stats_spec = pl.BlockSpec((1, 1, cout_p), lambda i, j: (i * n_hb + j, 0, 0))
    # Grid: (image, row-tile).  The x index_map ignores the inner row-tile
    # axis, so the padded image is DMA'd into VMEM only when the image changes.
    y, psum, pssq = pl.pallas_call(
        conv_kernel,
        grid=(n, n_hb),
        in_specs=[
            pl.BlockSpec((1, hp2, wp2, cin_p), lambda i, j: (i, 0, 0, 0)),
            pl.BlockSpec((9, cin_p, cout_p), lambda i, j: (0, 0, 0)),
        ],
        out_specs=[
            pl.BlockSpec((rows, cout_p), lambda i, j: (i * n_hb + j, 0)),
            stats_spec,
            stats_spec,
        ],
        out_shape=[
            jax.ShapeDtypeStruct((m, cout_p), jnp.float32),
            jax.ShapeDtypeStruct((n * n_hb, 1, cout_p), jnp.float32),
            jax.ShapeDtypeStruct((n * n_hb, 1, cout_p), jnp.float32),
        ],
        scratch_shapes=[pltpu.VMEM((rows, cout_p), jnp.float32)],
        compiler_params=pltpu.CompilerParams(
            dimension_semantics=("parallel", "parallel"),
            vmem_limit_bytes=32 * 1024 * 1024),   # fits v7x's 64 MiB VMEM
    )(xp, wk)

    # Fold train-mode BN into a per-channel affine (tiny per-channel glue).
    total = jnp.sum(psum, axis=(0, 1))                       # (Cout_p,)
    total_sq = jnp.sum(pssq, axis=(0, 1))
    mean = total / m
    var = jnp.maximum(total_sq / m - mean * mean, 0.0)       # biased batch var
    g = jnp.pad(gamma, (0, cout_p - cout)).astype(jnp.float32)
    be = jnp.pad(beta, (0, cout_p - cout)).astype(jnp.float32)
    scale_v = g * lax.rsqrt(var + BN_EPS)
    shift_v = be - mean * scale_v
    scale = scale_v.reshape(1, cout_p)
    shift = shift_v.reshape(1, cout_p)

    out = pl.pallas_call(
        _affine_relu_kernel,
        grid=(m // rows,),
        in_specs=[
            pl.BlockSpec((rows, cout_p), lambda i: (i, 0)),
            pl.BlockSpec((1, cout_p), lambda i: (0, 0)),
            pl.BlockSpec((1, cout_p), lambda i: (0, 0)),
        ],
        out_specs=pl.BlockSpec((rows, cout_p), lambda i: (i, 0)),
        out_shape=jax.ShapeDtypeStruct((m, cout_p), out_dtype),
        compiler_params=pltpu.CompilerParams(
            dimension_semantics=("parallel",),
            vmem_limit_bytes=32 * 1024 * 1024),
    )(y, scale, shift)
    return out


@jax.jit
def conv_block_3_forward(x, params):
    """Forward pass of conv_block_3 (two conv3x3+BN+ReLU stages). NCHW in/out."""
    n, cin, h, w = x.shape
    cout1 = params["w1"].shape[0]
    cout2 = params["w2"].shape[0]
    cin_p = _round_up(cin, LANE)
    cout1_p = _round_up(cout1, LANE)
    cout2_p = _round_up(cout2, LANE)

    # NCHW -> NHWC once; lane-pad channels; bf16 matmul operand; spatial pad.
    xh = jnp.transpose(x, (0, 2, 3, 1))
    xh = jnp.pad(xh, ((0, 0), (0, 0), (0, 0), (0, cin_p - cin)))
    xp = jnp.pad(xh.astype(jnp.bfloat16), ((0, 0), (1, 1), (1, 1), (0, 0)))

    a1 = _conv_bn_relu_layer(xp, params["w1"], params["b1"], params["g1"],
                             params["be1"], out_dtype=jnp.bfloat16)
    a1 = a1.reshape(n, h, w, cout1_p)
    a1p = jnp.pad(a1, ((0, 0), (1, 1), (1, 1), (0, 0)))

    a2 = _conv_bn_relu_layer(a1p, params["w2"], params["b2"], params["g2"],
                             params["be2"], out_dtype=jnp.float32)
    out = a2.reshape(n, h, w, cout2_p)[:, :, :, :cout2]
    return jnp.transpose(out, (0, 3, 1, 2))                  # NHWC -> NCHW once


def init_params(key, ch_in, ch_out):
    ks = jax.random.split(key, 8)
    return {
        "w1": 0.1 * jax.random.normal(ks[0], (ch_out, ch_in, 3, 3), jnp.float32),
        "b1": 0.1 * jax.random.normal(ks[1], (ch_out,), jnp.float32),
        "g1": 1.0 + 0.1 * jax.random.normal(ks[2], (ch_out,), jnp.float32),
        "be1": 0.1 * jax.random.normal(ks[3], (ch_out,), jnp.float32),
        "w2": 0.1 * jax.random.normal(ks[4], (ch_out, ch_out, 3, 3), jnp.float32),
        "b2": 0.1 * jax.random.normal(ks[5], (ch_out,), jnp.float32),
        "g2": 1.0 + 0.1 * jax.random.normal(ks[6], (ch_out,), jnp.float32),
        "be2": 0.1 * jax.random.normal(ks[7], (ch_out,), jnp.float32),
    }


def _ref_layer(x, w, b, gamma, beta):
    """Pure-JAX reference: conv3x3(pad=1) + train-mode BN + ReLU, NCHW.

    Conv operands are rounded to bf16 to mirror the kernel's bf16 MXU inputs
    (accumulation / BN stay f32), so a tight tolerance stays meaningful.
    """
    xw = x.astype(jnp.bfloat16).astype(jnp.float32)
    ww = w.astype(jnp.bfloat16).astype(jnp.float32)
    y = lax.conv_general_dilated(
        xw, ww, window_strides=(1, 1), padding=((1, 1), (1, 1)),
        dimension_numbers=("NCHW", "OIHW", "NCHW"))
    y = y + b[None, :, None, None]
    mean = jnp.mean(y, axis=(0, 2, 3), keepdims=True)
    var = jnp.mean((y - mean) ** 2, axis=(0, 2, 3), keepdims=True)
    y = (y - mean) * lax.rsqrt(var + BN_EPS)
    y = y * gamma[None, :, None, None] + beta[None, :, None, None]
    return jnp.maximum(y, 0.0)


def _ref_forward(x, p):
    y = _ref_layer(x, p["w1"], p["b1"], p["g1"], p["be1"])
    return _ref_layer(y, p["w2"], p["b2"], p["g2"], p["be2"])


if __name__ == "__main__":
    key = jax.random.PRNGKey(0)
    k_x, k_p = jax.random.split(key)

    N, CH_IN, CH_OUT, H, W = 2, 4, 8, 16, 16
    x = jax.random.normal(k_x, (N, CH_IN, H, W), jnp.float32)
    params = init_params(k_p, CH_IN, CH_OUT)

    out = jax.block_until_ready(conv_block_3_forward(x, params))
    assert out.shape == (N, CH_OUT, H, W), out.shape

    ref = jax.block_until_ready(_ref_forward(x, params))
    max_err = float(jnp.max(jnp.abs(out - ref)))
    if not bool(jnp.allclose(out, ref, rtol=1e-2, atol=1e-2)):
        raise AssertionError(f"Pallas output mismatch (max abs err {max_err})")

    # TODO(synk): eval-mode BatchNorm (running-stat buffers) is not modeled;
    # only the training-mode batch-statistics forward is implemented.
    print("KERNEL_OK")
</pallas_src>

<mosaic_0001>
module attributes {stable_mosaic.version = 11 : i64} {
  func.func @_conv_stats_kernel(%arg0: i32, %arg1: i32, %arg2: memref<1x18x18x128xbf16, #tpu.memory_space<vmem>>, %arg3: memref<9x128x128xbf16, #tpu.memory_space<vmem>>, %arg4: memref<256x128xf32, #tpu.memory_space<vmem>>, %arg5: memref<1x1x128xf32, #tpu.memory_space<vmem>>, %arg6: memref<1x1x128xf32, #tpu.memory_space<vmem>>, %arg7: memref<256x128xf32, #tpu.memory_space<vmem>>) attributes {dimension_semantics = [#tpu.dimension_semantics<parallel>, #tpu.dimension_semantics<parallel>], iteration_bounds = array<i64: 2, 1>, scalar_prefetch = 0 : i64, scratch_operands = 1 : i64, tpu.core_type = #tpu.core_type<tc>, window_params = [{transform_indices = @transform_0, window_bounds = array<i64: 1, 18, 18, 128>}, {pipeline_mode = #tpu.pipeline_mode<synchronous>, transform_indices = @transform_1, window_bounds = array<i64: 9, 128, 128>}, {transform_indices = @transform_2, window_bounds = array<i64: 256, 128>}, {transform_indices = @transform_3, window_bounds = array<i64: 1, 1, 128>}, {transform_indices = @transform_4, window_bounds = array<i64: 1, 1, 128>}]} {
    %c16_i32 = arith.constant 16 : i32
    %0 = arith.muli %arg1, %c16_i32 : i32
    %1 = tpu.assume_multiple %0, 8 : i32
    %c0_i32 = arith.constant 0 : i32
    %2 = arith.addi %1, %c0_i32 : i32
    %c0 = arith.constant 0 : index
    %3 = arith.index_cast %2 : i32 to index
    %c0_0 = arith.constant 0 : index
    %c0_1 = arith.constant 0 : index
    %4 = vector.load %arg2[%c0, %3, %c0_0, %c0_1] : memref<1x18x18x128xbf16, #tpu.memory_space<vmem>>, vector<1x16x16x128xbf16>
    %5 = vector.shape_cast %4 : vector<1x16x16x128xbf16> to vector<16x16x128xbf16>
    %6 = vector.shape_cast %5 : vector<16x16x128xbf16> to vector<256x128xbf16>
    %c0_2 = arith.constant 0 : index
    %c0_3 = arith.constant 0 : index
    %c0_4 = arith.constant 0 : index
    %7 = vector.load %arg3[%c0_2, %c0_3, %c0_4] : memref<9x128x128xbf16, #tpu.memory_space<vmem>>, vector<1x128x128xbf16>
    %8 = vector.shape_cast %7 : vector<1x128x128xbf16> to vector<128x128xbf16>
    %cst = arith.constant dense<0.000000e+00> : vector<256x128xf32>
    %9 = tpu.matmul %6, %8, %cst {dimension_numbers = #tpu.dot_dimension_numbers<[1], [0], [0], [1], [0, 0, 1, 1], [], []>} : vector<256x128xbf16>, vector<128x128xbf16>, vector<256x128xf32> -> vector<256x128xf32>
    %c0_i32_5 = arith.constant 0 : i32
    %10 = arith.addi %1, %c0_i32_5 : i32
    %c0_6 = arith.constant 0 : index
    %11 = arith.index_cast %10 : i32 to index
    %c1 = arith.constant 1 : index
    %c0_7 = arith.constant 0 : index
    %12 = vector.load %arg2[%c0_6, %11, %c1, %c0_7] : memref<1x18x18x128xbf16, #tpu.memory_space<vmem>>, vector<1x16x16x128xbf16>
    %13 = vector.shape_cast %12 : vector<1x16x16x128xbf16> to vector<16x16x128xbf16>
    %14 = vector.shape_cast %13 : vector<16x16x128xbf16> to vector<256x128xbf16>
    %c1_8 = arith.constant 1 : index
    %c0_9 = arith.constant 0 : index
    %c0_10 = arith.constant 0 : index
    %15 = vector.load %arg3[%c1_8, %c0_9, %c0_10] : memref<9x128x128xbf16, #tpu.memory_space<vmem>>, vector<1x128x128xbf16>
    %16 = vector.shape_cast %15 : vector<1x128x128xbf16> to vector<128x128xbf16>
    %cst_11 = arith.constant dense<0.000000e+00> : vector<256x128xf32>
    %17 = tpu.matmul %14, %16, %cst_11 {dimension_numbers = #tpu.dot_dimension_numbers<[1], [0], [0], [1], [0, 0, 1, 1], [], []>} : vector<256x128xbf16>, vector<128x128xbf16>, vector<256x128xf32> -> vector<256x128xf32>
    %18 = arith.addf %9, %17 : vector<256x128xf32>
    %c0_i32_12 = arith.constant 0 : i32
    %19 = arith.addi %1, %c0_i32_12 : i32
    %c0_13 = arith.constant 0 : index
    %20 = arith.index_cast %19 : i32 to index
    %c2 = arith.constant 2 : index
    %c0_14 = arith.constant 0 : index
    %21 = vector.load %arg2[%c0_13, %20, %c2, %c0_14] : memref<1x18x18x128xbf16, #tpu.memory_space<vmem>>, vector<1x16x16x128xbf16>
    %22 = vector.shape_cast %21 : vector<1x16x16x128xbf16> to vector<16x16x128xbf16>
    %23 = vector.shape_cast %22 : vector<16x16x128xbf16> to vector<256x128xbf16>
    %c2_15 = arith.constant 2 : index
    %c0_16 = arith.constant 0 : index
    %c0_17 = arith.constant 0 : index
    %24 = vector.load %arg3[%c2_15, %c0_16, %c0_17] : memref<9x128x128xbf16, #tpu.memory_space<vmem>>, vector<1x128x128xbf16>
    %25 = vector.shape_cast %24 : vector<1x128x128xbf16> to vector<128x128xbf16>
    %cst_18 = arith.constant dense<0.000000e+00> : vector<256x128xf32>
    %26 = tpu.matmul %23, %25, %cst_18 {dimension_numbers = #tpu.dot_dimension_numbers<[1], [0], [0], [1], [0, 0, 1, 1], [], []>} : vector<256x128xbf16>, vector<128x128xbf16>, vector<256x128xf32> -> vector<256x128xf32>
    %27 = arith.addf %18, %26 : vector<256x128xf32>
    %c0_19 = arith.constant 0 : index
    %c0_20 = arith.constant 0 : index
    %28 = vector.load %arg7[%c0_19, %c0_20] : memref<256x128xf32, #tpu.memory_space<vmem>>, vector<256x128xf32>
    tpu.vector_store %arg7[%c0_19, %c0_20], %27 {strides = array<i32>} : memref<256x128xf32, #tpu.memory_space<vmem>>, vector<256x128xf32>,
    %c1_i32 = arith.constant 1 : i32
    %29 = arith.addi %1, %c1_i32 : i32
    %c0_21 = arith.constant 0 : index
    %30 = arith.index_cast %29 : i32 to index
    %c0_22 = arith.constant 0 : index
    %c0_23 = arith.constant 0 : index
    %31 = vector.load %arg2[%c0_21, %30, %c0_22, %c0_23] : memref<1x18x18x128xbf16, #tpu.memory_space<vmem>>, vector<1x16x16x128xbf16>
    %32 = vector.shape_cast %31 : vector<1x16x16x128xbf16> to vector<16x16x128xbf16>
    %33 = vector.shape_cast %32 : vector<16x16x128xbf16> to vector<256x128xbf16>
    %c3 = arith.constant 3 : index
    %c0_24 = arith.constant 0 : index
    %c0_25 = arith.constant 0 : index
    %34 = vector.load %arg3[%c3, %c0_24, %c0_25] : memref<9x128x128xbf16, #tpu.memory_space<vmem>>, vector<1x128x128xbf16>
    %35 = vector.shape_cast %34 : vector<1x128x128xbf16> to vector<128x128xbf16>
    %cst_26 = arith.constant dense<0.000000e+00> : vector<256x128xf32>
    %36 = tpu.matmul %33, %35, %cst_26 {dimension_numbers = #tpu.dot_dimension_numbers<[1], [0], [0], [1], [0, 0, 1, 1], [], []>} : vector<256x128xbf16>, vector<128x128xbf16>, vector<256x128xf32> -> vector<256x128xf32>
    %c1_i32_27 = arith.constant 1 : i32
    %37 = arith.addi %1, %c1_i32_27 : i32
    %c0_28 = arith.constant 0 : index
    %38 = arith.index_cast %37 : i32 to index
    %c1_29 = arith.constant 1 : index
    %c0_30 = arith.constant 0 : index
    %39 = vector.load %arg2[%c0_28, %38, %c1_29, %c0_30] : memref<1x18x18x128xbf16, #tpu.memory_space<vmem>>, vector<1x16x16x128xbf16>
    %40 = vector.shape_cast %39 : vector<1x16x16x128xbf16> to vector<16x16x128xbf16>
    %41 = vector.shape_cast %40 : vector<16x16x128xbf16> to vector<256x128xbf16>
    %c4 = arith.constant 4 : index
    %c0_31 = arith.constant 0 : index
    %c0_32 = arith.constant 0 : index
    %42 = vector.load %arg3[%c4, %c0_31, %c0_32] : memref<9x128x128xbf16, #tpu.memory_space<vmem>>, vector<1x128x128xbf16>
    %43 = vector.shape_cast %42 : vector<1x128x128xbf16> to vector<128x128xbf16>
    %cst_33 = arith.constant dense<0.000000e+00> : vector<256x128xf32>
    %44 = tpu.matmul %41, %43, %cst_33 {dimension_numbers = #tpu.dot_dimension_numbers<[1], [0], [0], [1], [0, 0, 1, 1], [], []>} : vector<256x128xbf16>, vector<128x128xbf16>, vector<256x128xf32> -> vector<256x128xf32>
    %45 = arith.addf %36, %44 : vector<256x128xf32>
    %c1_i32_34 = arith.constant 1 : i32
    %46 = arith.addi %1, %c1_i32_34 : i32
    %c0_35 = arith.constant 0 : index
    %47 = arith.index_cast %46 : i32 to index
    %c2_36 = arith.constant 2 : index
    %c0_37 = arith.constant 0 : index
    %48 = vector.load %arg2[%c0_35, %47, %c2_36, %c0_37] : memref<1x18x18x128xbf16, #tpu.memory_space<vmem>>, vector<1x16x16x128xbf16>
    %49 = vector.shape_cast %48 : vector<1x16x16x128xbf16> to vector<16x16x128xbf16>
    %50 = vector.shape_cast %49 : vector<16x16x128xbf16> to vector<256x128xbf16>
    %c5 = arith.constant 5 : index
    %c0_38 = arith.constant 0 : index
    %c0_39 = arith.constant 0 : index
    %51 = vector.load %arg3[%c5, %c0_38, %c0_39] : memref<9x128x128xbf16, #tpu.memory_space<vmem>>, vector<1x128x128xbf16>
    %52 = vector.shape_cast %51 : vector<1x128x128xbf16> to vector<128x128xbf16>
    %cst_40 = arith.constant dense<0.000000e+00> : vector<256x128xf32>
    %53 = tpu.matmul %50, %52, %cst_40 {dimension_numbers = #tpu.dot_dimension_numbers<[1], [0], [0], [1], [0, 0, 1, 1], [], []>} : vector<256x128xbf16>, vector<128x128xbf16>, vector<256x128xf32> -> vector<256x128xf32>
    %54 = arith.addf %45, %53 : vector<256x128xf32>
    %c0_41 = arith.constant 0 : index
    %c0_42 = arith.constant 0 : index
    %55 = vector.load %arg7[%c0_41, %c0_42] : memref<256x128xf32, #tpu.memory_space<vmem>>, vector<256x128xf32>
    %56 = arith.addf %55, %54 : vector<256x128xf32>
    %c0_43 = arith.constant 0 : index
    %c0_44 = arith.constant 0 : index
    %57 = vector.load %arg7[%c0_43, %c0_44] : memref<256x128xf32, #tpu.memory_space<vmem>>, vector<256x128xf32>
    tpu.vector_store %arg7[%c0_43, %c0_44], %56 {strides = array<i32>} : memref<256x128xf32, #tpu.memory_space<vmem>>, vector<256x128xf32>,
    %c2_i32 = arith.constant 2 : i32
    %58 = arith.addi %1, %c2_i32 : i32
    %c0_45 = arith.constant 0 : index
    %59 = arith.index_cast %58 : i32 to index
    %c0_46 = arith.constant 0 : index
    %c0_47 = arith.constant 0 : index
    %60 = vector.load %arg2[%c0_45, %59, %c0_46, %c0_47] : memref<1x18x18x128xbf16, #tpu.memory_space<vmem>>, vector<1x16x16x128xbf16>
    %61 = vector.shape_cast %60 : vector<1x16x16x128xbf16> to vector<16x16x128xbf16>
    %62 = vector.shape_cast %61 : vector<16x16x128xbf16> to vector<256x128xbf16>
    %c6 = arith.constant 6 : index
    %c0_48 = arith.constant 0 : index
    %c0_49 = arith.constant 0 : index
    %63 = vector.load %arg3[%c6, %c0_48, %c0_49] : memref<9x128x128xbf16, #tpu.memory_space<vmem>>, vector<1x128x128xbf16>
    %64 = vector.shape_cast %63 : vector<1x128x128xbf16> to vector<128x128xbf16>
    %cst_50 = arith.constant dense<0.000000e+00> : vector<256x128xf32>
    %65 = tpu.matmul %62, %64, %cst_50 {dimension_numbers = #tpu.dot_dimension_numbers<[1], [0], [0], [1], [0, 0, 1, 1], [], []>} : vector<256x128xbf16>, vector<128x128xbf16>, vector<256x128xf32> -> vector<256x128xf32>
    %c2_i32_51 = arith.constant 2 : i32
    %66 = arith.addi %1, %c2_i32_51 : i32
    %c0_52 = arith.constant 0 : index
    %67 = arith.index_cast %66 : i32 to index
    %c1_53 = arith.constant 1 : index
    %c0_54 = arith.constant 0 : index
    %68 = vector.load %arg2[%c0_52, %67, %c1_53, %c0_54] : memref<1x18x18x128xbf16, #tpu.memory_space<vmem>>, vector<1x16x16x128xbf16>
    %69 = vector.shape_cast %68 : vector<1x16x16x128xbf16> to vector<16x16x128xbf16>
    %70 = vector.shape_cast %69 : vector<16x16x128xbf16> to vector<256x128xbf16>
    %c7 = arith.constant 7 : index
    %c0_55 = arith.constant 0 : index
    %c0_56 = arith.constant 0 : index
    %71 = vector.load %arg3[%c7, %c0_55, %c0_56] : memref<9x128x128xbf16, #tpu.memory_space<vmem>>, vector<1x128x128xbf16>
    %72 = vector.shape_cast %71 : vector<1x128x128xbf16> to vector<128x128xbf16>
    %cst_57 = arith.constant dense<0.000000e+00> : vector<256x128xf32>
    %73 = tpu.matmul %70, %72, %cst_57 {dimension_numbers = #tpu.dot_dimension_numbers<[1], [0], [0], [1], [0, 0, 1, 1], [], []>} : vector<256x128xbf16>, vector<128x128xbf16>, vector<256x128xf32> -> vector<256x128xf32>
    %74 = arith.addf %65, %73 : vector<256x128xf32>
    %c2_i32_58 = arith.constant 2 : i32
    %75 = arith.addi %1, %c2_i32_58 : i32
    %c0_59 = arith.constant 0 : index
    %76 = arith.index_cast %75 : i32 to index
    %c2_60 = arith.constant 2 : index
    %c0_61 = arith.constant 0 : index
    %77 = vector.load %arg2[%c0_59, %76, %c2_60, %c0_61] : memref<1x18x18x128xbf16, #tpu.memory_space<vmem>>, vector<1x16x16x128xbf16>
    %78 = vector.shape_cast %77 : vector<1x16x16x128xbf16> to vector<16x16x128xbf16>
    %79 = vector.shape_cast %78 : vector<16x16x128xbf16> to vector<256x128xbf16>
    %c8 = arith.constant 8 : index
    %c0_62 = arith.constant 0 : index
    %c0_63 = arith.constant 0 : index
    %80 = vector.load %arg3[%c8, %c0_62, %c0_63] : memref<9x128x128xbf16, #tpu.memory_space<vmem>>, vector<1x128x128xbf16>
    %81 = vector.shape_cast %80 : vector<1x128x128xbf16> to vector<128x128xbf16>
    %cst_64 = arith.constant dense<0.000000e+00> : vector<256x128xf32>
    %82 = tpu.matmul %79, %81, %cst_64 {dimension_numbers = #tpu.dot_dimension_numbers<[1], [0], [0], [1], [0, 0, 1, 1], [], []>} : vector<256x128xbf16>, vector<128x128xbf16>, vector<256x128xf32> -> vector<256x128xf32>
    %83 = arith.addf %74, %82 : vector<256x128xf32>
    %c0_65 = arith.constant 0 : index
    %c0_66 = arith.constant 0 : index
    %84 = vector.load %arg7[%c0_65, %c0_66] : memref<256x128xf32, #tpu.memory_space<vmem>>, vector<256x128xf32>
    %85 = arith.addf %84, %83 : vector<256x128xf32>
    %c0_67 = arith.constant 0 : index
    %c0_68 = arith.constant 0 : index
    %86 = vector.load %arg7[%c0_67, %c0_68] : memref<256x128xf32, #tpu.memory_space<vmem>>, vector<256x128xf32>
    tpu.vector_store %arg7[%c0_67, %c0_68], %85 {strides = array<i32>} : memref<256x128xf32, #tpu.memory_space<vmem>>, vector<256x128xf32>,
    %c0_69 = arith.constant 0 : index
    %c0_70 = arith.constant 0 : index
    %87 = vector.load %arg7[%c0_69, %c0_70] : memref<256x128xf32, #tpu.memory_space<vmem>>, vector<256x128xf32>
    %c0_71 = arith.constant 0 : index
    %c0_72 = arith.constant 0 : index
    %88 = vector.load %arg4[%c0_71, %c0_72] : memref<256x128xf32, #tpu.memory_space<vmem>>, vector<256x128xf32>
    tpu.vector_store %arg4[%c0_71, %c0_72], %87 {strides = array<i32>} : memref<256x128xf32, #tpu.memory_space<vmem>>, vector<256x128xf32>,
    %cst_73 = arith.constant dense<0.000000e+00> : vector<128xf32>
    %89 = vector.multi_reduction <add>, %87, %cst_73 [0] : vector<256x128xf32> to vector<128xf32>
    %90 = vector.shape_cast %89 : vector<128xf32> to vector<1x128xf32>
    %91 = vector.shape_cast %90 : vector<1x128xf32> to vector<1x1x128xf32>
    %c0_74 = arith.constant 0 : index
    %c0_75 = arith.constant 0 : index
    %c0_76 = arith.constant 0 : index
    %92 = vector.load %arg5[%c0_74, %c0_75, %c0_76] : memref<1x1x128xf32, #tpu.memory_space<vmem>>, vector<1x1x128xf32>
    tpu.vector_store %arg5[%c0_74, %c0_75, %c0_76], %91 {strides = array<i32>} : memref<1x1x128xf32, #tpu.memory_space<vmem>>, vector<1x1x128xf32>,
    %93 = arith.mulf %87, %87 : vector<256x128xf32>
    %cst_77 = arith.constant dense<0.000000e+00> : vector<128xf32>
    %94 = vector.multi_reduction <add>, %93, %cst_77 [0] : vector<256x128xf32> to vector<128xf32>
    %95 = vector.shape_cast %94 : vector<128xf32> to vector<1x128xf32>
    %96 = vector.shape_cast %95 : vector<1x128xf32> to vector<1x1x128xf32>
    %c0_78 = arith.constant 0 : index
    %c0_79 = arith.constant 0 : index
    %c0_80 = arith.constant 0 : index
    %97 = vector.load %arg6[%c0_78, %c0_79, %c0_80] : memref<1x1x128xf32, #tpu.memory_space<vmem>>, vector<1x1x128xf32>
    tpu.vector_store %arg6[%c0_78, %c0_79, %c0_80], %96 {strides = array<i32>} : memref<1x1x128xf32, #tpu.memory_space<vmem>>, vector<1x1x128xf32>,
    return
  }
  func.func @transform_0(%arg0: i32, %arg1: i32) -> (i32, i32, i32, i32) {
    %c0_i32 = arith.constant 0 : i32
    %c0_i32_0 = arith.constant 0 : i32
    %c0_i32_1 = arith.constant 0 : i32
    %c0_i32_2 = arith.constant 0 : i32
    return %arg0, %c0_i32, %c0_i32_0, %c0_i32_1 : i32, i32, i32, i32
  }
  func.func @transform_1(%arg0: i32, %arg1: i32) -> (i32, i32, i32) {
    %c0_i32 = arith.constant 0 : i32
    %c0_i32_0 = arith.constant 0 : i32
    %c0_i32_1 = arith.constant 0 : i32
    %c0_i32_2 = arith.constant 0 : i32
    return %c0_i32, %c0_i32_0, %c0_i32_1 : i32, i32, i32
  }
  func.func @transform_2(%arg0: i32, %arg1: i32) -> (i32, i32) {
    %c1_i32 = arith.constant 1 : i32
    %0 = arith.muli %arg0, %c1_i32 : i32
    %1 = arith.addi %0, %arg1 : i32
    %c0_i32 = arith.constant 0 : i32
    %c0_i32_0 = arith.constant 0 : i32
    return %1, %c0_i32 : i32, i32
  }
  func.func @transform_3(%arg0: i32, %arg1: i32) -> (i32, i32, i32) {
    %c1_i32 = arith.constant 1 : i32
    %0 = arith.muli %arg0, %c1_i32 : i32
    %1 = arith.addi %0, %arg1 : i32
    %c0_i32 = arith.constant 0 : i32
    %c0_i32_0 = arith.constant 0 : i32
    %c0_i32_1 = arith.constant 0 : i32
    return %1, %c0_i32, %c0_i32_0 : i32, i32, i32
  }
  func.func @transform_4(%arg0: i32, %arg1: i32) -> (i32, i32, i32) {
    %c1_i32 = arith.constant 1 : i32
    %0 = arith.muli %arg0, %c1_i32 : i32
    %1 = arith.addi %0, %arg1 : i32
    %c0_i32 = arith.constant 0 : i32
    %c0_i32_0 = arith.constant 0 : i32
    %c0_i32_1 = arith.constant 0 : i32
    return %1, %c0_i32, %c0_i32_0 : i32, i32, i32
  }
}

module attributes {stable_mosaic.version = 11 : i64} {
  func.func @_affine_relu_kernel(%arg0: i32, %arg1: memref<256x128xf32, #tpu.memory_space<vmem>>, %arg2: memref<1x128xf32, #tpu.memory_space<vmem>>, %arg3: memref<1x128xf32, #tpu.memory_space<vmem>>, %arg4: memref<256x128xbf16, #tpu.memory_space<vmem>>) attributes {dimension_semantics = [#tpu.dimension_semantics<parallel>], iteration_bounds = array<i64: 2>, scalar_prefetch = 0 : i64, scratch_operands = 0 : i64, tpu.core_type = #tpu.core_type<tc>, window_params = [{transform_indices = @transform_0, window_bounds = array<i64: 256, 128>}, {pipeline_mode = #tpu.pipeline_mode<synchronous>, transform_indices = @transform_1, window_bounds = array<i64: 1, 128>}, {pipeline_mode = #tpu.pipeline_mode<synchronous>, transform_indices = @transform_2, window_bounds = array<i64: 1, 128>}, {transform_indices = @transform_3, window_bounds = array<i64: 256, 128>}]} {
    %c0 = arith.constant 0 : index
    %c0_0 = arith.constant 0 : index
    %0 = vector.load %arg1[%c0, %c0_0] : memref<256x128xf32, #tpu.memory_space<vmem>>, vector<256x128xf32>
    %c0_1 = arith.constant 0 : index
    %c0_2 = arith.constant 0 : index
    %1 = vector.load %arg2[%c0_1, %c0_2] : memref<1x128xf32, #tpu.memory_space<vmem>>, vector<1x128xf32>
    %2 = vector.broadcast %1 : vector<1x128xf32> to vector<256x128xf32>
    %3 = arith.mulf %0, %2 : vector<256x128xf32>
    %c0_3 = arith.constant 0 : index
    %c0_4 = arith.constant 0 : index
    %4 = vector.load %arg3[%c0_3, %c0_4] : memref<1x128xf32, #tpu.memory_space<vmem>>, vector<1x128xf32>
    %5 = vector.broadcast %4 : vector<1x128xf32> to vector<256x128xf32>
    %6 = arith.addf %3, %5 : vector<256x128xf32>
    %cst = arith.constant 0.000000e+00 : f32
    %7 = vector.broadcast %cst : f32 to vector<256x128xf32>
    %8 = arith.maximumf %6, %7 : vector<256x128xf32>
    %9 = arith.truncf %8 : vector<256x128xf32> to vector<256x128xbf16>
    %c0_5 = arith.constant 0 : index
    %c0_6 = arith.constant 0 : index
    %10 = vector.load %arg4[%c0_5, %c0_6] : memref<256x128xbf16, #tpu.memory_space<vmem>>, vector<256x128xbf16>
    tpu.vector_store %arg4[%c0_5, %c0_6], %9 {strides = array<i32>} : memref<256x128xbf16, #tpu.memory_space<vmem>>, vector<256x128xbf16>,
    return
  }
  func.func @transform_0(%arg0: i32) -> (i32, i32) {
    %c0_i32 = arith.constant 0 : i32
    %c0_i32_0 = arith.constant 0 : i32
    return %arg0, %c0_i32 : i32, i32
  }
  func.func @transform_1(%arg0: i32) -> (i32, i32) {
    %c0_i32 = arith.constant 0 : i32
    %c0_i32_0 = arith.constant 0 : i32
    %c0_i32_1 = arith.constant 0 : i32
    return %c0_i32, %c0_i32_0 : i32, i32
  }
  func.func @transform_2(%arg0: i32) -> (i32, i32) {
    %c0_i32 = arith.constant 0 : i32
    %c0_i32_0 = arith.constant 0 : i32
    %c0_i32_1 = arith.constant 0 : i32
    return %c0_i32, %c0_i32_0 : i32, i32
  }
  func.func @transform_3(%arg0: i32) -> (i32, i32) {
    %c0_i32 = arith.constant 0 : i32
    %c0_i32_0 = arith.constant 0 : i32
    return %arg0, %c0_i32 : i32, i32
  }
}

module attributes {stable_mosaic.version = 11 : i64} {
  func.func @_affine_relu_kernel(%arg0: i32, %arg1: memref<256x128xf32, #tpu.memory_space<vmem>>, %arg2: memref<1x128xf32, #tpu.memory_space<vmem>>, %arg3: memref<1x128xf32, #tpu.memory_space<vmem>>, %arg4: memref<256x128xf32, #tpu.memory_space<vmem>>) attributes {dimension_semantics = [#tpu.dimension_semantics<parallel>], iteration_bounds = array<i64: 2>, scalar_prefetch = 0 : i64, scratch_operands = 0 : i64, tpu.core_type = #tpu.core_type<tc>, window_params = [{transform_indices = @transform_0, window_bounds = array<i64: 256, 128>}, {pipeline_mode = #tpu.pipeline_mode<synchronous>, transform_indices = @transform_1, window_bounds = array<i64: 1, 128>}, {pipeline_mode = #tpu.pipeline_mode<synchronous>, transform_indices = @transform_2, window_bounds = array<i64: 1, 128>}, {transform_indices = @transform_3, window_bounds = array<i64: 256, 128>}]} {
    %c0 = arith.constant 0 : index
    %c0_0 = arith.constant 0 : index
    %0 = vector.load %arg1[%c0, %c0_0] : memref<256x128xf32, #tpu.memory_space<vmem>>, vector<256x128xf32>
    %c0_1 = arith.constant 0 : index
    %c0_2 = arith.constant 0 : index
    %1 = vector.load %arg2[%c0_1, %c0_2] : memref<1x128xf32, #tpu.memory_space<vmem>>, vector<1x128xf32>
    %2 = vector.broadcast %1 : vector<1x128xf32> to vector<256x128xf32>
    %3 = arith.mulf %0, %2 : vector<256x128xf32>
    %c0_3 = arith.constant 0 : index
    %c0_4 = arith.constant 0 : index
    %4 = vector.load %arg3[%c0_3, %c0_4] : memref<1x128xf32, #tpu.memory_space<vmem>>, vector<1x128xf32>
    %5 = vector.broadcast %4 : vector<1x128xf32> to vector<256x128xf32>
    %6 = arith.addf %3, %5 : vector<256x128xf32>
    %cst = arith.constant 0.000000e+00 : f32
    %7 = vector.broadcast %cst : f32 to vector<256x128xf32>
    %8 = arith.maximumf %6, %7 : vector<256x128xf32>
    %c0_5 = arith.constant 0 : index
    %c0_6 = arith.constant 0 : index
    %9 = vector.load %arg4[%c0_5, %c0_6] : memref<256x128xf32, #tpu.memory_space<vmem>>, vector<256x128xf32>
    tpu.vector_store %arg4[%c0_5, %c0_6], %8 {strides = array<i32>} : memref<256x128xf32, #tpu.memory_space<vmem>>, vector<256x128xf32>,
    return
  }
  func.func @transform_0(%arg0: i32) -> (i32, i32) {
    %c0_i32 = arith.constant 0 : i32
    %c0_i32_0 = arith.constant 0 : i32
    return %arg0, %c0_i32 : i32, i32
  }
  func.func @transform_1(%arg0: i32) -> (i32, i32) {
    %c0_i32 = arith.constant 0 : i32
    %c0_i32_0 = arith.constant 0 : i32
    %c0_i32_1 = arith.constant 0 : i32
    return %c0_i32, %c0_i32_0 : i32, i32
  }
  func.func @transform_2(%arg0: i32) -> (i32, i32) {
    %c0_i32 = arith.constant 0 : i32
    %c0_i32_0 = arith.constant 0 : i32
    %c0_i32_1 = arith.constant 0 : i32
    return %c0_i32, %c0_i32_0 : i32, i32
  }
  func.func @transform_3(%arg0: i32) -> (i32, i32) {
    %c0_i32 = arith.constant 0 : i32
    %c0_i32_0 = arith.constant 0 : i32
    return %arg0, %c0_i32 : i32, i32
  }
}

</mosaic_0001>

<bundles_post_ra>
// kernel: conv_block_3_forward.5
= control target key start
LH: loop header
LB: loop body
LE: loop exit
PB: predicated region body
PF: predicated region fallthrough
CT: control target
= control target key end

     0   :  { %s574_s12 = smov 0   ;;  %s721_s0 = inlined_call_operand.vmem [shape: f32[512,128], index: 0, kind: input, shape index: {}]   ;;  %s722_s1 = inlined_call_operand.vmem [shape: f32[1,128], index: 1, kind: input, shape index: {}]   ;;  %s723_s2 = inlined_call_operand.vmem [shape: f32[1,128], index: 2, kind: input, shape index: {}]   ;;  %s724_s3 = inlined_call_operand.vmem [shape: bf16[512,128], index: 3, kind: output, shape index: {}]  }
   0x1 LB: > { %s430_s13 = sadd.s32 4294967295, %s552_s12   ;;  %p434_p0 = scmp.ge.s32.totalorder %s552_s12, 1  ;;  %s552_s12 = sphi %s574_s12, %s13_s12  }
   0x2   : > { %p138_p1 = scmp.lt.s32.totalorder %s552_s12, 3 }
   0x4   : > { %p139_p2 = pnand %p434_p0, %p138_p1 }
   0x5   : > { %s435_s14 = sshll.u32 (!%p139_p2), %s430_s13, 5 }
   0x6   : > { %142 = sbr.rel (%p139_p2) target bundleno = 49 (0x31), region = 32  ;;  %p163_p3 = scmp.lt.s32.totalorder (!%p139_p2), %s435_s14, 63 }
   0xb   : > { %s726_s14 = smov (!%p163_p3, %s435_s14), 63  ;;  %v587_v0 = vld [vmem:[%s722_s1] ss:$0 sm:$0xff] }
   0xc   : > { %s436_s17 = sshll.u32 %s726_s14, 3  ;;  %v598_v1 = vld [vmem:[%s723_s2] ss:$0 sm:$0xff]  ;;  %s438_s23 = sshll.u32 %s726_s14, 2 }
   0xd   : > { %s593_s20 = scalar_lea.vmem %s721_s0, %s436_s17  ;;  %s630_s26 = scalar_lea.vmem %s724_s3, %s438_s23 }
   0xe   : > { %v174_v2 = vld [vmem:[%s593_s20] sm:$0xff]  ;;  %v175_v3 = vld [vmem:[%s593_s20 + $0x8] sm:$0xff]  ;;  %v176_v4 = vld [vmem:[%s593_s20 + $0x10] sm:$0xff] }
   0xf   : > { %v210_v5 = vmul.f32 %v587_v0, %v174_v2  ;;  %v211_v6 = vmul.f32 %v587_v0, %v175_v3  ;;  %v177_v7 = vld [vmem:[%s593_s20 + $0x18] sm:$0xff]  ;;  %v212_v8 = vmul.f32 %v587_v0, %v176_v4  ;;  %v178_v9 = vld [vmem:[%s593_s20 + $0x20] sm:$0xff]  ;;  %v179_v10 = vld [vmem:[%s593_s20 + $0x28] sm:$0xff] }
  0x10   : > { %v213_v11 = vmul.f32 %v587_v0, %v177_v7  ;;  %v214_v12 = vmul.f32 %v587_v0, %v178_v9  ;;  %v215_v13 = vmul.f32 %v587_v0, %v179_v10  ;;  %v180_v14 = vld [vmem:[%s593_s20 + $0x30] sm:$0xff]  ;;  %v181_v15 = vld [vmem:[%s593_s20 + $0x38] sm:$0xff]  ;;  %v182_v24 = vld [vmem:[%s593_s20 + $0x40] sm:$0xff] }
  0x11   : > { %v246_v16 = vadd.f32 %v598_v1, %v210_v5  ;;  %v247_v17 = vadd.f32 %v598_v1, %v211_v6  ;;  %v248_v18 = vadd.f32 %v598_v1, %v212_v8  ;;  %v216_v19 = vmul.f32 %v587_v0, %v180_v14  ;;  %v183_v25 = vld [vmem:[%s593_s20 + $0x48] sm:$0xff]  ;;  %v184_v30 = vld [vmem:[%s593_s20 + $0x50] sm:$0xff]  ;;  %v185_v35 = vld [vmem:[%s593_s20 + $0x58] sm:$0xff] }
  0x12   : > { %v249_v20 = vadd.f32 %v598_v1, %v213_v11  ;;  %v250_v21 = vadd.f32 %v598_v1, %v214_v12  ;;  %v251_v22 = vadd.f32 %v598_v1, %v215_v13  ;;  %v217_v23 = vmul.f32 %v587_v0, %v181_v15  ;;  %v186_v36 = vld [vmem:[%s593_s20 + $0x60] sm:$0xff]  ;;  %v187_v41 = vld [vmem:[%s593_s20 + $0x68] sm:$0xff]  ;;  %v188_v42 = vld [vmem:[%s593_s20 + $0x70] sm:$0xff] }
  0x13   : > { %v278_v26 = vmax.f32 %v246_v16, 0.0  ;;  %v279_v27 = vmax.f32 %v247_v17, 0.0  ;;  %v280_v28 = vmax.f32 %v248_v18, 0.0  ;;  %v252_v29 = vadd.f32 %v598_v1, %v216_v19  ;;  %v189_v51 = vld [vmem:[%s593_s20 + $0x78] sm:$0xff]  ;;  %v190_v56 = vld [vmem:[%s593_s20 + $0x80] sm:$0xff]  ;;  %v191_v61 = vld [vmem:[%s593_s20 + $0x88] sm:$0xff] }
  0x14   : > { %v281_v31 = vmax.f32 %v249_v20, 0.0  ;;  %v282_v32 = vmax.f32 %v250_v21, 0.0  ;;  %v283_v33 = vmax.f32 %v251_v22, 0.0  ;;  %v253_v34 = vadd.f32 %v598_v1, %v217_v23  ;;  %v192_v4 = vld [vmem:[%s593_s20 + $0x90] sm:$0xff]  ;;  %v193_v5 = vld [vmem:[%s593_s20 + $0x98] sm:$0xff]  ;;  %v194_v10 = vld [vmem:[%s593_s20 + $0xa0] sm:$0xff] }
  0x15   : > { %v444_v37 = vpack.c.bf16 %v279_v27, %v278_v26  ;;  %v284_v38 = vmax.f32 %v252_v29, 0.0  ;;  %v218_v39 = vmul.f32 %v587_v0, %v182_v24  ;;  %v219_v40 = vmul.f32 %v587_v0, %v183_v25  ;;  %v195_v15 = vld [vmem:[%s593_s20 + $0xa8] sm:$0xff]  ;;  %v196_v20 = vld [vmem:[%s593_s20 + $0xb0] sm:$0xff]  ;;  %v197_v25 = vld [vmem:[%s593_s20 + $0xb8] sm:$0xff] }
  0x16   : > { %v449_v43 = vpack.c.bf16 %v281_v31, %v280_v28  ;;  %v454_v44 = vpack.c.bf16 %v283_v33, %v282_v32  ;;  %v285_v45 = vmax.f32 %v253_v34, 0.0  ;;  %v220_v46 = vmul.f32 %v587_v0, %v184_v30  ;;  %v198_v30 = vld [vmem:[%s593_s20 + $0xc0] sm:$0xff] }
  0x17   : > { %445 = vst [vmem:[%s630_s26] sm:$0xff] %v444_v37   ;;  %v254_v47 = vadd.f32 %v598_v1, %v218_v39  ;;  %v255_v48 = vadd.f32 %v598_v1, %v219_v40  ;;  %v221_v49 = vmul.f32 %v587_v0, %v185_v35  ;;  %v222_v50 = vmul.f32 %v587_v0, %v186_v36  ;;  %v199_v35 = vld [vmem:[%s593_s20 + $0xc8] sm:$0xff]  ;;  %v200_v40 = vld [vmem:[%s593_s20 + $0xd0] sm:$0xff] }
  0x18   : > { %521 = vst [vmem:[%s630_s26 + $0x8] sm:$0xff] %v449_v43   ;;  %v459_v52 = vpack.c.bf16 %v285_v45, %v284_v38  ;;  %v256_v53 = vadd.f32 %v598_v1, %v220_v46  ;;  %v223_v54 = vmul.f32 %v587_v0, %v187_v41  ;;  %v224_v55 = vmul.f32 %v587_v0, %v188_v42  ;;  %v201_v41 = vld [vmem:[%s593_s20 + $0xd8] sm:$0xff]  ;;  %v202_v46 = vld [vmem:[%s593_s20 + $0xe0] sm:$0xff] }
  0x19   : > { %522 = vst [vmem:[%s630_s26 + $0x10] sm:$0xff] %v454_v44   ;;  %v286_v57 = vmax.f32 %v254_v47, 0.0  ;;  %v287_v58 = vmax.f32 %v255_v48, 0.0  ;;  %v257_v59 = vadd.f32 %v598_v1, %v221_v49  ;;  %v258_v60 = vadd.f32 %v598_v1, %v222_v50 }
  0x1a   : > { %523 = vst [vmem:[%s630_s26 + $0x18] sm:$0xff] %v459_v52   ;;  %v288_v62 = vmax.f32 %v256_v53, 0.0  ;;  %v259_v63 = vadd.f32 %v598_v1, %v223_v54  ;;  %v225_v2 = vmul.f32 %v587_v0, %v189_v51  ;;  %v260_v3 = vadd.f32 %v598_v1, %v224_v55  ;;  %v203_v51 = vld [vmem:[%s593_s20 + $0xe8] sm:$0xff] }
  0x1b   : > { %v464_v6 = vpack.c.bf16 %v287_v58, %v286_v57  ;;  %v289_v7 = vmax.f32 %v257_v59, 0.0  ;;  %v290_v8 = vmax.f32 %v258_v60, 0.0  ;;  %v226_v9 = vmul.f32 %v587_v0, %v190_v56  ;;  %v204_v56 = vld [vmem:[%s593_s20 + $0xf0] sm:$0xff] }
  0x1c   : > { %v291_v11 = vmax.f32 %v259_v63, 0.0  ;;  %v261_v12 = vadd.f32 %v598_v1, %v225_v2  ;;  %v292_v13 = vmax.f32 %v260_v3, 0.0  ;;  %v227_v14 = vmul.f32 %v587_v0, %v191_v61  ;;  %v205_v61 = vld [vmem:[%s593_s20 + $0xf8] sm:$0xff] }
  0x1d   : > { %524 = vst [vmem:[%s630_s26 + $0x20] sm:$0xff] %v464_v6   ;;  %v469_v16 = vpack.c.bf16 %v289_v7, %v288_v62  ;;  %v262_v17 = vadd.f32 %v598_v1, %v226_v9  ;;  %v228_v18 = vmul.f32 %v587_v0, %v192_v4  ;;  %v229_v19 = vmul.f32 %v587_v0, %v193_v5 }
  0x1e   : > { %v474_v21 = vpack.c.bf16 %v291_v11, %v290_v8  ;;  %v293_v22 = vmax.f32 %v261_v12, 0.0  ;;  %v263_v23 = vadd.f32 %v598_v1, %v227_v14  ;;  %v230_v24 = vmul.f32 %v587_v0, %v194_v10 }
  0x1f   : > { %525 = vst [vmem:[%s630_s26 + $0x28] sm:$0xff] %v469_v16   ;;  %v294_v26 = vmax.f32 %v262_v17, 0.0  ;;  %v264_v27 = vadd.f32 %v598_v1, %v228_v18  ;;  %v265_v28 = vadd.f32 %v598_v1, %v229_v19  ;;  %v231_v29 = vmul.f32 %v587_v0, %v195_v15 }
  0x20   : > { %526 = vst [vmem:[%s630_s26 + $0x30] sm:$0xff] %v474_v21   ;;  %v479_v31 = vpack.c.bf16 %v293_v22, %v292_v13  ;;  %v295_v32 = vmax.f32 %v263_v23, 0.0  ;;  %v266_v33 = vadd.f32 %v598_v1, %v230_v24  ;;  %v232_v34 = vmul.f32 %v587_v0, %v196_v20 }
  0x21   : > { %v296_v36 = vmax.f32 %v264_v27, 0.0  ;;  %v297_v37 = vmax.f32 %v265_v28, 0.0  ;;  %v267_v38 = vadd.f32 %v598_v1, %v231_v29  ;;  %v233_v39 = vmul.f32 %v587_v0, %v197_v25 }
  0x22   : > { %527 = vst [vmem:[%s630_s26 + $0x38] sm:$0xff] %v479_v31   ;;  %v484_v42 = vpack.c.bf16 %v295_v32, %v294_v26  ;;  %v298_v43 = vmax.f32 %v266_v33, 0.0  ;;  %v268_v44 = vadd.f32 %v598_v1, %v232_v34  ;;  %v234_v45 = vmul.f32 %v587_v0, %v198_v30 }
  0x23   : > { %v489_v47 = vpack.c.bf16 %v297_v37, %v296_v36  ;;  %v299_v48 = vmax.f32 %v267_v38, 0.0  ;;  %v269_v49 = vadd.f32 %v598_v1, %v233_v39  ;;  %v235_v50 = vmul.f32 %v587_v0, %v199_v35 }
  0x24   : > { %528 = vst [vmem:[%s630_s26 + $0x40] sm:$0xff] %v484_v42   ;;  %v300_v52 = vmax.f32 %v268_v44, 0.0  ;;  %v270_v53 = vadd.f32 %v598_v1, %v234_v45  ;;  %v236_v54 = vmul.f32 %v587_v0, %v200_v40  ;;  %v237_v55 = vmul.f32 %v587_v0, %v201_v41 }
  0x25   : > { %529 = vst [vmem:[%s630_s26 + $0x48] sm:$0xff] %v489_v47   ;;  %v494_v57 = vpack.c.bf16 %v299_v48, %v298_v43  ;;  %v301_v58 = vmax.f32 %v269_v49, 0.0  ;;  %v271_v59 = vadd.f32 %v598_v1, %v235_v50  ;;  %v238_v60 = vmul.f32 %v587_v0, %v202_v46 }
  0x26   : > { %v302_v62 = vmax.f32 %v270_v53, 0.0  ;;  %v272_v63 = vadd.f32 %v598_v1, %v236_v54  ;;  %v273_v2 = vadd.f32 %v598_v1, %v237_v55  ;;  %v239_v3 = vmul.f32 %v587_v0, %v203_v51 }
  0x27   : > { %530 = vst [vmem:[%s630_s26 + $0x50] sm:$0xff] %v494_v57   ;;  %v499_v4 = vpack.c.bf16 %v301_v58, %v300_v52  ;;  %v303_v5 = vmax.f32 %v271_v59, 0.0  ;;  %v274_v6 = vadd.f32 %v598_v1, %v238_v60  ;;  %v240_v7 = vmul.f32 %v587_v0, %v204_v56 }
  0x28   : > { %v304_v8 = vmax.f32 %v272_v63, 0.0  ;;  %v305_v9 = vmax.f32 %v273_v2, 0.0  ;;  %v275_v10 = vadd.f32 %v598_v1, %v239_v3  ;;  %v241_v11 = vmul.f32 %v587_v0, %v205_v61 }
  0x29   : > { %531 = vst [vmem:[%s630_s26 + $0x58] sm:$0xff] %v499_v4   ;;  %v504_v12 = vpack.c.bf16 %v303_v5, %v302_v62  ;;  %v306_v13 = vmax.f32 %v274_v6, 0.0  ;;  %v276_v14 = vadd.f32 %v598_v1, %v240_v7 }
  0x2a   : > { %v509_v15 = vpack.c.bf16 %v305_v9, %v304_v8  ;;  %v307_v16 = vmax.f32 %v275_v10, 0.0  ;;  %v277_v17 = vadd.f32 %v598_v1, %v241_v11 }
  0x2b   : > { %532 = vst [vmem:[%s630_s26 + $0x60] sm:$0xff] %v504_v12   ;;  %v308_v18 = vmax.f32 %v276_v14, 0.0 }
  0x2c   : > { %533 = vst [vmem:[%s630_s26 + $0x68] sm:$0xff] %v509_v15   ;;  %v514_v19 = vpack.c.bf16 %v307_v16, %v306_v13  ;;  %v309_v20 = vmax.f32 %v277_v17, 0.0 }
  0x2e   : > { %534 = vst [vmem:[%s630_s26 + $0x70] sm:$0xff] %v514_v19   ;;  %v519_v21 = vpack.c.bf16 %v309_v20, %v308_v18 }
  0x30   : > { %535 = vst [vmem:[%s630_s26 + $0x78] sm:$0xff] %v519_v21  }
  0x31 PF: > { %s13_s12 = sadd.s32 1, %s552_s12  }
  0x32   : > { %p10_p4 = scmp.ge.s32.totalorder %s13_s12, 4  }
  0x34   :  { %12 = sbr.rel (!%p10_p4) target bundleno = 1 (0x1), region = 62 }

// kernel: conv_block_3_forward.7
= control target key start
LH: loop header
LB: loop body
LE: loop exit
PB: predicated region body
PF: predicated region fallthrough
CT: control target
= control target key end

     0   :  { %s447_s12 = smov 0   ;;  %s606_s0 = inlined_call_operand.vmem [shape: f32[512,128], index: 0, kind: input, shape index: {}]   ;;  %s607_s1 = inlined_call_operand.vmem [shape: f32[1,128], index: 1, kind: input, shape index: {}]   ;;  %s608_s2 = inlined_call_operand.vmem [shape: f32[1,128], index: 2, kind: input, shape index: {}]   ;;  %s609_s3 = inlined_call_operand.vmem [shape: f32[512,128], index: 3, kind: output, shape index: {}]  }
   0x1 LB: > { %s398_s13 = sadd.s32 4294967295, %s425_s12   ;;  %p402_p0 = scmp.ge.s32.totalorder %s425_s12, 1  ;;  %s425_s12 = sphi %s447_s12, %s13_s12  }
   0x2   : > { %p138_p1 = scmp.lt.s32.totalorder %s425_s12, 3 }
   0x4   : > { %p139_p2 = pnand %p402_p0, %p138_p1 }
   0x5   : > { %s403_s14 = sshll.u32 (!%p139_p2), %s398_s13, 5 }
   0x6   : > { %142 = sbr.rel (%p139_p2) target bundleno = 53 (0x35), region = 32  ;;  %p163_p3 = scmp.lt.s32.totalorder (!%p139_p2), %s403_s14, 63 }
   0xb   : > { %s611_s14 = smov (!%p163_p3, %s403_s14), 63  ;;  %v458_v0 = vld [vmem:[%s607_s1] ss:$0 sm:$0xff] }
   0xc   : > { %s404_s17 = sshll.u32 %s611_s14, 3  ;;  %v468_v1 = vld [vmem:[%s608_s2] ss:$0 sm:$0xff] }
   0xd   : > { %s463_s20 = scalar_lea.vmem %s606_s0, %s404_s17  ;;  %s491_s25 = scalar_lea.vmem %s609_s3, %s404_s17 }
   0xe   : > { %v174_v2 = vld [vmem:[%s463_s20] sm:$0xff]  ;;  %v175_v3 = vld [vmem:[%s463_s20 + $0x8] sm:$0xff]  ;;  %v176_v4 = vld [vmem:[%s463_s20 + $0x10] sm:$0xff] }
   0xf   : > { %v210_v5 = vmul.f32 %v458_v0, %v174_v2  ;;  %v211_v6 = vmul.f32 %v458_v0, %v175_v3  ;;  %v212_v7 = vmul.f32 %v458_v0, %v176_v4  ;;  %v177_v8 = vld [vmem:[%s463_s20 + $0x18] sm:$0xff]  ;;  %v178_v9 = vld [vmem:[%s463_s20 + $0x20] sm:$0xff]  ;;  %v179_v10 = vld [vmem:[%s463_s20 + $0x28] sm:$0xff] }
  0x10   : > { %v213_v11 = vmul.f32 %v458_v0, %v177_v8  ;;  %v214_v12 = vmul.f32 %v458_v0, %v178_v9  ;;  %v215_v13 = vmul.f32 %v458_v0, %v179_v10  ;;  %v180_v14 = vld [vmem:[%s463_s20 + $0x30] sm:$0xff]  ;;  %v181_v15 = vld [vmem:[%s463_s20 + $0x38] sm:$0xff]  ;;  %v182_v24 = vld [vmem:[%s463_s20 + $0x40] sm:$0xff] }
  0x11   : > { %v246_v16 = vadd.f32 %v468_v1, %v210_v5  ;;  %v247_v17 = vadd.f32 %v468_v1, %v211_v6  ;;  %v248_v18 = vadd.f32 %v468_v1, %v212_v7  ;;  %v216_v19 = vmul.f32 %v458_v0, %v180_v14  ;;  %v183_v25 = vld [vmem:[%s463_s20 + $0x48] sm:$0xff]  ;;  %v184_v26 = vld [vmem:[%s463_s20 + $0x50] sm:$0xff]  ;;  %v185_v31 = vld [vmem:[%s463_s20 + $0x58] sm:$0xff] }
  0x12   : > { %v249_v20 = vadd.f32 %v468_v1, %v213_v11  ;;  %v250_v21 = vadd.f32 %v468_v1, %v214_v12  ;;  %v251_v22 = vadd.f32 %v468_v1, %v215_v13  ;;  %v217_v23 = vmul.f32 %v458_v0, %v181_v15  ;;  %v186_v32 = vld [vmem:[%s463_s20 + $0x60] sm:$0xff]  ;;  %v187_v33 = vld [vmem:[%s463_s20 + $0x68] sm:$0xff]  ;;  %v188_v37 = vld [vmem:[%s463_s20 + $0x70] sm:$0xff] }
  0x13   : > { %v278_v27 = vmax.f32 %v246_v16, 0.0  ;;  %v279_v28 = vmax.f32 %v247_v17, 0.0  ;;  %v280_v29 = vmax.f32 %v248_v18, 0.0  ;;  %v252_v30 = vadd.f32 %v468_v1, %v216_v19  ;;  %v189_v42 = vld [vmem:[%s463_s20 + $0x78] sm:$0xff]  ;;  %v190_v54 = vld [vmem:[%s463_s20 + $0x80] sm:$0xff]  ;;  %v191_v55 = vld [vmem:[%s463_s20 + $0x88] sm:$0xff] }
  0x14   : > { %v281_v34 = vmax.f32 %v249_v20, 0.0  ;;  %v282_v35 = vmax.f32 %v250_v21, 0.0  ;;  %v253_v36 = vadd.f32 %v468_v1, %v217_v23  ;;  %v283_v38 = vmax.f32 %v251_v22, 0.0  ;;  %v192_v56 = vld [vmem:[%s463_s20 + $0x90] sm:$0xff]  ;;  %v193_v59 = vld [vmem:[%s463_s20 + $0x98] sm:$0xff]  ;;  %v194_v63 = vld [vmem:[%s463_s20 + $0xa0] sm:$0xff] }
  0x15   : > { %310 = vst [vmem:[%s491_s25] sm:$0xff] %v278_v27  ;;  %v218_v39 = vmul.f32 %v458_v0, %v182_v24  ;;  %v219_v40 = vmul.f32 %v458_v0, %v183_v25  ;;  %v220_v41 = vmul.f32 %v458_v0, %v184_v26  ;;  %v284_v43 = vmax.f32 %v252_v30, 0.0  ;;  %v195_v6 = vld [vmem:[%s463_s20 + $0xa8] sm:$0xff]  ;;  %v196_v10 = vld [vmem:[%s463_s20 + $0xb0] sm:$0xff]  ;;  %v197_v14 = vld [vmem:[%s463_s20 + $0xb8] sm:$0xff] }
  0x16   : > { %311 = vst [vmem:[%s491_s25 + $0x8] sm:$0xff] %v279_v28  ;;  %v221_v44 = vmul.f32 %v458_v0, %v185_v31  ;;  %v222_v45 = vmul.f32 %v458_v0, %v186_v32  ;;  %v223_v46 = vmul.f32 %v458_v0, %v187_v33  ;;  %v224_v50 = vmul.f32 %v458_v0, %v188_v37  ;;  %v198_v18 = vld [vmem:[%s463_s20 + $0xc0] sm:$0xff]  ;;  %v199_v22 = vld [vmem:[%s463_s20 + $0xc8] sm:$0xff]  ;;  %v200_v26 = vld [vmem:[%s463_s20 + $0xd0] sm:$0xff] }
  0x17   : > { %312 = vst [vmem:[%s491_s25 + $0x10] sm:$0xff] %v280_v29  ;;  %v254_v47 = vadd.f32 %v468_v1, %v218_v39  ;;  %v255_v48 = vadd.f32 %v468_v1, %v219_v40  ;;  %v256_v49 = vadd.f32 %v468_v1, %v220_v41  ;;  %v285_v51 = vmax.f32 %v253_v36, 0.0  ;;  %v201_v30 = vld [vmem:[%s463_s20 + $0xd8] sm:$0xff] }
  0x18   : > { %313 = vst [vmem:[%s491_s25 + $0x18] sm:$0xff] %v281_v34  ;;  %v257_v52 = vadd.f32 %v468_v1, %v221_v44  ;;  %v225_v53 = vmul.f32 %v458_v0, %v189_v42  ;;  %v258_v58 = vadd.f32 %v468_v1, %v222_v45  ;;  %v259_v62 = vadd.f32 %v468_v1, %v223_v46  ;;  %v202_v34 = vld [vmem:[%s463_s20 + $0xe0] sm:$0xff]  ;;  %v204_v42 = vld [vmem:[%s463_s20 + $0xf0] sm:$0xff]  ;;  %v205_v46 = vld [vmem:[%s463_s20 + $0xf8] sm:$0xff] }
  0x19   : > { %314 = vst [vmem:[%s491_s25 + $0x20] sm:$0xff] %v282_v35  ;;  %v286_v57 = vmax.f32 %v254_v47, 0.0  ;;  %v287_v60 = vmax.f32 %v255_v48, 0.0  ;;  %v288_v61 = vmax.f32 %v256_v49, 0.0  ;;  %v260_v2 = vadd.f32 %v468_v1, %v224_v50 }
  0x1a   : > { %315 = vst [vmem:[%s491_s25 + $0x28] sm:$0xff] %v283_v38  ;;  %v226_v3 = vmul.f32 %v458_v0, %v190_v54  ;;  %v227_v4 = vmul.f32 %v458_v0, %v191_v55  ;;  %v228_v5 = vmul.f32 %v458_v0, %v192_v56  ;;  %v289_v7 = vmax.f32 %v257_v52, 0.0  ;;  %v203_v38 = vld [vmem:[%s463_s20 + $0xe8] sm:$0xff] }
  0x1b   : > { %316 = vst [vmem:[%s491_s25 + $0x30] sm:$0xff] %v284_v43  ;;  %v261_v8 = vadd.f32 %v468_v1, %v225_v53  ;;  %v229_v9 = vmul.f32 %v458_v0, %v193_v59  ;;  %v290_v11 = vmax.f32 %v258_v58, 0.0  ;;  %v230_v13 = vmul.f32 %v458_v0, %v194_v63 }
  0x1c   : > { %317 = vst [vmem:[%s491_s25 + $0x38] sm:$0xff] %v285_v51  ;;  %v262_v12 = vadd.f32 %v468_v1, %v226_v3  ;;  %v291_v15 = vmax.f32 %v259_v62, 0.0  ;;  %v263_v16 = vadd.f32 %v468_v1, %v227_v4  ;;  %v231_v17 = vmul.f32 %v458_v0, %v195_v6 }
  0x1d   : > { %318 = vst [vmem:[%s491_s25 + $0x40] sm:$0xff] %v286_v57  ;;  %v292_v19 = vmax.f32 %v260_v2, 0.0  ;;  %v264_v20 = vadd.f32 %v468_v1, %v228_v5  ;;  %v232_v21 = vmul.f32 %v458_v0, %v196_v10  ;;  %v293_v23 = vmax.f32 %v261_v8, 0.0 }
  0x1e   : > { %319 = vst [vmem:[%s491_s25 + $0x48] sm:$0xff] %v287_v60  ;;  %v265_v24 = vadd.f32 %v468_v1, %v229_v9  ;;  %v233_v25 = vmul.f32 %v458_v0, %v197_v14  ;;  %v294_v27 = vmax.f32 %v262_v12, 0.0  ;;  %v266_v28 = vadd.f32 %v468_v1, %v230_v13 }
  0x1f   : > { %320 = vst [vmem:[%s491_s25 + $0x50] sm:$0xff] %v288_v61  ;;  %v234_v29 = vmul.f32 %v458_v0, %v198_v18  ;;  %v295_v31 = vmax.f32 %v263_v16, 0.0  ;;  %v267_v32 = vadd.f32 %v468_v1, %v231_v17  ;;  %v235_v33 = vmul.f32 %v458_v0, %v199_v22 }
  0x20   : > { %321 = vst [vmem:[%s491_s25 + $0x58] sm:$0xff] %v289_v7  ;;  %v296_v35 = vmax.f32 %v264_v20, 0.0  ;;  %v268_v36 = vadd.f32 %v468_v1, %v232_v21  ;;  %v236_v37 = vmul.f32 %v458_v0, %v200_v26  ;;  %v297_v39 = vmax.f32 %v265_v24, 0.0 }
  0x21   : > { %322 = vst [vmem:[%s491_s25 + $0x60] sm:$0xff] %v290_v11  ;;  %v269_v40 = vadd.f32 %v468_v1, %v233_v25  ;;  %v237_v41 = vmul.f32 %v458_v0, %v201_v30  ;;  %v298_v43 = vmax.f32 %v266_v28, 0.0  ;;  %v270_v44 = vadd.f32 %v468_v1, %v234_v29 }
  0x22   : > { %323 = vst [vmem:[%s491_s25 + $0x68] sm:$0xff] %v291_v15  ;;  %v238_v45 = vmul.f32 %v458_v0, %v202_v34  ;;  %v299_v47 = vmax.f32 %v267_v32, 0.0  ;;  %v271_v48 = vadd.f32 %v468_v1, %v235_v33  ;;  %v239_v49 = vmul.f32 %v458_v0, %v203_v38 }
  0x23   : > { %324 = vst [vmem:[%s491_s25 + $0x70] sm:$0xff] %v292_v19  ;;  %v300_v50 = vmax.f32 %v268_v36, 0.0  ;;  %v272_v51 = vadd.f32 %v468_v1, %v236_v37  ;;  %v240_v52 = vmul.f32 %v458_v0, %v204_v42  ;;  %v301_v53 = vmax.f32 %v269_v40, 0.0 }
  0x24   : > { %325 = vst [vmem:[%s491_s25 + $0x78] sm:$0xff] %v293_v23  ;;  %v273_v54 = vadd.f32 %v468_v1, %v237_v41  ;;  %v241_v55 = vmul.f32 %v458_v0, %v205_v46  ;;  %v302_v56 = vmax.f32 %v270_v44, 0.0  ;;  %v274_v57 = vadd.f32 %v468_v1, %v238_v45 }
  0x25   : > { %326 = vst [vmem:[%s491_s25 + $0x80] sm:$0xff] %v294_v27  ;;  %v303_v58 = vmax.f32 %v271_v48, 0.0  ;;  %v275_v59 = vadd.f32 %v468_v1, %v239_v49  ;;  %v304_v60 = vmax.f32 %v272_v51, 0.0  ;;  %v276_v61 = vadd.f32 %v468_v1, %v240_v52 }
  0x26   : > { %327 = vst [vmem:[%s491_s25 + $0x88] sm:$0xff] %v295_v31  ;;  %v305_v0 = vmax.f32 %v273_v54, 0.0  ;;  %v277_v62 = vadd.f32 %v468_v1, %v241_v55  ;;  %v306_v63 = vmax.f32 %v274_v57, 0.0 }
  0x27   : > { %328 = vst [vmem:[%s491_s25 + $0x90] sm:$0xff] %v296_v35  ;;  %v307_v2 = vmax.f32 %v275_v59, 0.0  ;;  %v308_v3 = vmax.f32 %v276_v61, 0.0 }
  0x28   : > { %329 = vst [vmem:[%s491_s25 + $0x98] sm:$0xff] %v297_v39  ;;  %v309_v4 = vmax.f32 %v277_v62, 0.0 }
  0x29   : > { %330 = vst [vmem:[%s491_s25 + $0xa0] sm:$0xff] %v298_v43 }
  0x2a   : > { %331 = vst [vmem:[%s491_s25 + $0xa8] sm:$0xff] %v299_v47 }
  0x2b   : > { %332 = vst [vmem:[%s491_s25 + $0xb0] sm:$0xff] %v300_v50 }
  0x2c   : > { %333 = vst [vmem:[%s491_s25 + $0xb8] sm:$0xff] %v301_v53 }
  0x2d   : > { %334 = vst [vmem:[%s491_s25 + $0xc0] sm:$0xff] %v302_v56 }
  0x2e   : > { %335 = vst [vmem:[%s491_s25 + $0xc8] sm:$0xff] %v303_v58 }
  0x2f   : > { %336 = vst [vmem:[%s491_s25 + $0xd0] sm:$0xff] %v304_v60 }
  0x30   : > { %337 = vst [vmem:[%s491_s25 + $0xd8] sm:$0xff] %v305_v0 }
  0x31   : > { %338 = vst [vmem:[%s491_s25 + $0xe0] sm:$0xff] %v306_v63 }
  0x32   : > { %339 = vst [vmem:[%s491_s25 + $0xe8] sm:$0xff] %v307_v2 }
  0x33   : > { %340 = vst [vmem:[%s491_s25 + $0xf0] sm:$0xff] %v308_v3 }
  0x34   : > { %341 = vst [vmem:[%s491_s25 + $0xf8] sm:$0xff] %v309_v4 }
  0x35 PF: > { %s13_s12 = sadd.s32 1, %s425_s12  }
  0x36   : > { %p10_p4 = scmp.ge.s32.totalorder %s13_s12, 4  }
  0x38   :  { %12 = sbr.rel (!%p10_p4) target bundleno = 1 (0x1), region = 62 }

// kernel: conv_block_3_forward.4
= control target key start
LH: loop header
LB: loop body
LE: loop exit
PB: predicated region body
PF: predicated region fallthrough
CT: control target
= control target key end

     0   :  { %s5784_s15 = smov 0   ;;  %s5786_s16 = smov 0   ;;  %s7394_s0 = inlined_call_operand.vmem [shape: bf16[2,18,18,128], index: 0, kind: input, shape index: {}]   ;;  %s7395_s1 = inlined_call_operand.vmem [shape: bf16[9,128,128], index: 1, kind: input, shape index: {}]   ;;  %s7396_s2 = inlined_call_operand.vmem [shape: f32[512,128], index: 2, kind: output, shape index: {0}]   ;;  %s7397_s3 = inlined_call_operand.vmem [shape: f32[2,1,128], index: 3, kind: output, shape index: {1}]   ;;  %s7398_s4 = inlined_call_operand.vmem [shape: f32[2,1,128], index: 4, kind: output, shape index: {2}]  }
   0x1   :  { %s5788_s17 = smov 0  }
   0x2 LB: > { %s27_s18 = sadd.s32 1, %s5753_s16  ;;  %p4724_p0 = scmp.ge.s32.totalorder %s5757_s17, 1  ;;  %s5757_s17 = sphi %s5788_s17, %s15_s17   ;;  %s5753_s16 = sphi %s5786_s16, %s7471_s16   ;;  %s5749_s15 = sphi %s5784_s15, %s7470_s15  }
   0x3   : > { %p29_p1 = scmp.ge.s32.totalorder %s27_s18, 2  ;;  %p185_p2 = scmp.lt.s32.totalorder %s5757_s17, 3 }
   0x5   : > { %s7473_s18 = smov (%p29_p1, %s27_s18), 0  ;;  %p186_p3 = pnand %p4724_p0, %p185_p2 }
   0x7   : > { %189 = sbr.rel (%p186_p3) target bundleno = 778 (0x30a), region = 28 }
   0xc   : > { %v5545_v0 = vld [vmem:[%s7395_s1 + $0x78] sm:$0xff]  ;;  %p220_p4 = scmp.lt.s32.totalorder %s5749_s15, 1  ;;  %v5544_v1 = vld [vmem:[%s7395_s1 + $0x70] sm:$0xff]  ;;  %v5543_v2 = vld [vmem:[%s7395_s1 + $0x68] sm:$0xff]  ;;  %vm311_vm0 = vsmask.f32 3328 }
   0xd   : > { %827 = vmatpush.bf16.msra.mxu0 %v5545_v0  ;;  %5634 = vmatpush.bf16.msra.mxu1 %v5545_v0  ;;  %vm312_vm1 = vsmask.f32 7440  ;;  %v5542_v6 = vld [vmem:[%s7395_s1 + $0x60] sm:$0xff]  ;;  %v5541_v35 = vld [vmem:[%s7395_s1 + $0x58] sm:$0xff]  ;;  %v5540_v54 = vld [vmem:[%s7395_s1 + $0x50] sm:$0xff]  ;;  %vm1197_vm3 = vcmask 1042432  }
   0xe   : > { %s5812_s23 = scalar_select %p220_p4, %s5749_s15, 1  ;;  %5635 = vmatpush.bf16.msra.mxu2 %v5545_v0  ;;  %5636 = vmatpush.bf16.msra.mxu3 %v5545_v0  ;;  %vm5843_vm2 = vmor %vm311_vm0, %vm312_vm1  ;;  %vm1198_vm4 = vcmask 1046532  }
   0xf   : > { %vm6150_vm5 = vmor %vm1197_vm3, %vm1198_vm4  ;;  %s4726_s27 = sshll.u32 %s5749_s15, 5 }
  0x10   : > { %s5658_s24 = smul.u32 216, %s5812_s23  ;;  %p7031_p5 = scmp.lt.s32.totalorder %s4726_s27, 63 }
  0x11   : > { %828 = vmatpush.bf16.msra.mxu0 %v5544_v1  ;;  %5637 = vmatpush.bf16.msra.mxu1 %v5544_v1  ;;  %s236_s8 = scalar_lea.vmem %s7397_s3, %s5812_s23  ;;  %s241_s11 = scalar_lea.vmem %s7398_s4, %s5812_s23 }
  0x12   : > { %s5821_s29 = scalar_lea.vmem %s7394_s0, %s5658_s24  ;;  %5638 = vmatpush.bf16.msra.mxu2 %v5544_v1  ;;  %5639 = vmatpush.bf16.msra.mxu3 %v5544_v1  ;;  %s7475_s27 = smov (!%p7031_p5, %s4726_s27), 63 }
  0x13   : > { %v247_v3 = vld [vmem:[%s5821_s29] sm:$0xf]  ;;  %v5825_v4 = vld [vmem:[%s5821_s29 + $0x4] sm:$0xf]  ;;  %v5828_v5 = vld [vmem:[%s5821_s29 + $0x8] sm:$0x1] }
  0x14   : > { %v315_v7 = vshrl.u32 %v247_v3, 16  ;;  %v318_v8 = vshll.u32 %v247_v3, 16  ;;  %v324_v9 = vshll.u32 %v5825_v4, 16  ;;  %v328_v10 = vshrl.u32 %v5825_v4, 16  ;;  %v255_v11 = vld [vmem:[%s5821_s29 + $0x30] sm:$0xf] }
  0x15   : > { %v334_v12 = vshll.u32 %v5828_v5, 16  ;;  %v256_v13 = vld [vmem:[%s5821_s29 + $0x34] sm:$0xf]  ;;  %v299_v14 = vld [vmem:[%s5821_s29 + $0x38] sm:$0x1]  ;;  %v411_v15 = vshrl.u32 %v255_v11, 16  ;;  %829 = vmatpush.bf16.msra.mxu0 %v5543_v2  ;;  %5640 = vmatpush.bf16.msra.mxu1 %v5543_v2 }
  0x16   : > { %v317_v16 = vrot.slane %v315_v7, 4  ;;  %v320_v17 = vrot.slane %v318_v8, 5  ;;  %v326_v18 = vrot.slane %v324_v9, 5  ;;  %v330_v19 = vrot.slane %v328_v10, 4  ;;  %v263_v20 = vld [vmem:[%s5821_s29 + $0x60] sm:$0xf]  ;;  %5641 = vmatpush.bf16.msra.mxu2 %v5543_v2  ;;  %5642 = vmatpush.bf16.msra.mxu3 %v5543_v2 }
  0x17   : > { %v336_v21 = vrot.slane %v334_v12, 5  ;;  %v413_v22 = vrot.slane %v411_v15, 4  ;;  %v414_v23 = vshll.u32 %v255_v11, 16  ;;  %v420_v24 = vshll.u32 %v256_v13, 16  ;;  %v264_v29 = vld [vmem:[%s5821_s29 + $0x64] sm:$0xf] }
  0x18   : > { %v321_v25 = vor.u32 %v320_v17, %v317_v16  ;;  %v331_v26 = vor.u32 %v330_v19, %v326_v18  ;;  %v424_v27 = vshrl.u32 %v256_v13, 16  ;;  %v430_v28 = vshll.u32 %v299_v14, 16  ;;  %v303_v41 = vld [vmem:[%s5821_s29 + $0x68] sm:$0x1]  ;;  %v271_v49 = vld [vmem:[%s5821_s29 + $0x90] sm:$0xf] }
  0x19   : > { %v416_v31 = vrot.slane %v414_v23, 5  ;;  %v422_v32 = vrot.slane %v420_v24, 5  ;;  %v507_v33 = vshrl.u32 %v263_v20, 16  ;;  %v510_v34 = vshll.u32 %v263_v20, 16  ;;  %830 = vmatpush.bf16.msra.mxu0 %v5542_v6  ;;  %5643 = vmatpush.bf16.msra.mxu1 %v5542_v6  ;;  %v272_v62 = vld [vmem:[%s5821_s29 + $0x94] sm:$0xf] }
  0x1a   : > { %v322_v36 = vrot.slane %v321_v25, 4  ;;  %v332_v37 = vrot.slane %v331_v26, 4  ;;  %v426_v38 = vrot.slane %v424_v27, 4  ;;  %v432_v39 = vrot.slane %v430_v28, 5  ;;  %5644 = vmatpush.bf16.msra.mxu2 %v5542_v6  ;;  %5645 = vmatpush.bf16.msra.mxu3 %v5542_v6  ;;  %v307_v6 = vld [vmem:[%s5821_s29 + $0x98] sm:$0x1] }
  0x1b   : > { %v417_v40 = vor.u32 %v416_v31, %v413_v22  ;;  %v509_v42 = vrot.slane %v507_v33, 4  ;;  %v512_v43 = vrot.slane %v510_v34, 5  ;;  %v516_v44 = vshll.u32 %v264_v29, 16  ;;  %v249_v7 = vld [vmem:[%s5821_s29 + $0xc] sm:$0xf]  ;;  %v5538_v33 = vld [vmem:[%s7395_s1 + $0x40] sm:$0xff] }
  0x1c   : > { %v327_v45 = vsel %vm5843_vm2, %v322_v36, %v326_v18  ;;  %v337_v46 = vsel %vm5843_vm2, %v332_v37, %v336_v21  ;;  %v427_v47 = vor.u32 %v426_v38, %v422_v32  ;;  %v520_v48 = vshrl.u32 %v264_v29, 16  ;;  %v5539_v12 = vld [vmem:[%s7395_s1 + $0x48] sm:$0xff]  ;;  %v5884_v17 = vld [vmem:[%s5821_s29 + $0x10] sm:$0xf]  ;;  %v5889_v21 = vld [vmem:[%s5821_s29 + $0x14] sm:$0x1] }
  0x1d   : > { %v5856_v50 = vunpack.c.l.b16 %v327_v45  ;;  %v5858_v51 = vunpack.c.l.b16 %v337_v46  ;;  %v418_v52 = vrot.slane %v417_v40, 4  ;;  %v513_v53 = vor.u32 %v512_v43, %v509_v42  ;;  %831 = vmatpush.bf16.msra.mxu0 %v5541_v35  ;;  %5646 = vmatpush.bf16.msra.mxu1 %v5541_v35  ;;  %v257_v27 = vld [vmem:[%s5821_s29 + $0x3c] sm:$0xf]  ;;  %v258_v42 = vld [vmem:[%s5821_s29 + $0x40] sm:$0xf]  ;;  %s4727_s15 = sshll.u32 %s7475_s27, 3 }
  0x1e   : > { %v428_v55 = vrot.slane %v427_v47, 4  ;;  %v518_v56 = vrot.slane %v516_v44, 5  ;;  %v522_v57 = vrot.slane %v520_v48, 4  ;;  %v526_v58 = vshll.u32 %v303_v41, 16  ;;  %5647 = vmatpush.bf16.msra.mxu2 %v5541_v35  ;;  %5648 = vmatpush.bf16.msra.mxu3 %v5541_v35  ;;  %v5553_v40 = vld [vmem:[%s7395_s1 + $0xb8] sm:$0xff]  ;;  %s7067_s6 = scalar_lea.vmem %s7396_s2, %s4727_s15 }
  0x1f   : > { %v747_v59 = vpack.c.b16 %v5858_v51, %v5856_v50  ;;  %v423_v60 = vsel %vm5843_vm2, %v418_v52, %v422_v32  ;;  %v514_v61 = vrot.slane %v513_v53, 4  ;;  %v603_v63 = vshrl.u32 %v271_v49, 16  ;;  %v5585_v45 = vld [vmem:[%s7395_s1 + $0x138] sm:$0xff] }
  0x20   : > { %v433_v0 = vsel %vm5843_vm2, %v428_v55, %v432_v39  ;;  %v5870_v1 = vunpack.c.l.b16 %v423_v60  ;;  %v523_v2 = vor.u32 %v522_v57, %v518_v56  ;;  %v528_v3 = vrot.slane %v526_v58, 5  ;;  %v5537_v60 = vld [vmem:[%s7395_s1 + $0x38] sm:$0xff] }
  0x21   : > { %v5874_v8 = vunpack.c.l.b16 %v433_v0  ;;  %v519_v9 = vsel %vm5843_vm2, %v514_v61, %v518_v56  ;;  %v605_v10 = vrot.slane %v603_v63, 4  ;;  %v606_v11 = vshll.u32 %v271_v49, 16  ;;  %832 = vmatpush.bf16.msra.mxu0 %v5540_v54  ;;  %5649 = vmatpush.bf16.msra.mxu1 %v5540_v54  ;;  %v300_v49 = vld [vmem:[%s5821_s29 + $0x44] sm:$0x1]  ;;  %v265_v56 = vld [vmem:[%s5821_s29 + $0x6c] sm:$0xf] }
  0x22   : > { %v524_v13 = vrot.slane %v523_v2, 4  ;;  %v5881_v14 = vunpack.c.l.b16 %v519_v9  ;;  %v612_v15 = vshll.u32 %v272_v62, 16  ;;  %v616_v16 = vshrl.u32 %v272_v62, 16  ;;  %5650 = vmatpush.bf16.msra.mxu2 %v5540_v54  ;;  %5651 = vmatpush.bf16.msra.mxu3 %v5540_v54  ;;  %v5552_v0 = vld [vmem:[%s7395_s1 + $0xb0] sm:$0xff]  ;;  %v5577_v2 = vld [vmem:[%s7395_s1 + $0xf8] sm:$0xff] }
  0x23   : > { %v751_v18 = vpack.c.b16 %v5874_v8, %v5870_v1  ;;  %v608_v19 = vrot.slane %v606_v11, 5  ;;  %v622_v20 = vshll.u32 %v307_v6, 16  ;;  %v339_v22 = vshrl.u32 %v249_v7, 16  ;;  %v5584_v9 = vld [vmem:[%s7395_s1 + $0x130] sm:$0xff] }
  0x24   : > { %v529_v23 = vsel %vm5843_vm2, %v524_v13, %v528_v3  ;;  %v614_v24 = vrot.slane %v612_v15, 5  ;;  %v618_v25 = vrot.slane %v616_v16, 4  ;;  %v342_v26 = vshll.u32 %v249_v7, 16  ;;  %v266_v13 = vld [vmem:[%s5821_s29 + $0x70] sm:$0xf] }
  0x25   : > { %v732_v28 = vunpack.c.l.b16 %v529_v23  ;;  %v609_v29 = vor.u32 %v608_v19, %v605_v10  ;;  %v624_v31 = vrot.slane %v622_v20, 5  ;;  %v341_v32 = vrot.slane %v339_v22, 4  ;;  %833 = vmatpush.bf16.msra.mxu0 %v5539_v12  ;;  %5652 = vmatpush.bf16.msra.mxu1 %v5539_v12  ;;  %v304_v22 = vld [vmem:[%s5821_s29 + $0x74] sm:$0x1]  ;;  %v273_v23 = vld [vmem:[%s5821_s29 + $0x9c] sm:$0xf] }
  0x26   : > { %v619_v34 = vor.u32 %v618_v25, %v614_v24  ;;  %v344_v35 = vrot.slane %v342_v26, 5  ;;  %v348_v36 = vshll.u32 %v5884_v17, 16  ;;  %v352_v37 = vshrl.u32 %v5884_v17, 16  ;;  %5653 = vmatpush.bf16.msra.mxu2 %v5539_v12  ;;  %5654 = vmatpush.bf16.msra.mxu3 %v5539_v12 }
  0x27   : > { %v755_v38 = vpack.c.b16 %v732_v28, %v5881_v14  ;;  %v610_v39 = vrot.slane %v609_v29, 4  ;;  %v358_v41 = vshll.u32 %v5889_v21, 16  ;;  %v435_v43 = vshrl.u32 %v257_v27, 16  ;;  %v5576_v28 = vld [vmem:[%s7395_s1 + $0xf0] sm:$0xff] }
  0x28   : > { %v620_v44 = vrot.slane %v619_v34, 4  ;;  %v345_v46 = vor.u32 %v344_v35, %v341_v32  ;;  %v350_v47 = vrot.slane %v348_v36, 5  ;;  %v354_v48 = vrot.slane %v352_v37, 4  ;;  %v5551_v34 = vld [vmem:[%s7395_s1 + $0xa8] sm:$0xff] }
  0x29   : > { %v615_v52 = vsel %vm5843_vm2, %v610_v39, %v614_v24  ;;  %v360_v53 = vrot.slane %v358_v41, 5  ;;  %v437_v54 = vrot.slane %v435_v43, 4  ;;  %v438_v55 = vshll.u32 %v257_v27, 16  ;;  %834 = vmatpush.bf16.msra.mxu0 %v5538_v33  ;;  %5655 = vmatpush.bf16.msra.mxu1 %v5538_v33  ;;  %v5536_v24 = vld [vmem:[%s7395_s1 + $0x30] sm:$0xff]  ;;  %v274_v27 = vld [vmem:[%s5821_s29 + $0xa0] sm:$0xf] }
  0x2a   : > { %v625_v57 = vsel %vm5843_vm2, %v620_v44, %v624_v31  ;;  %v739_v58 = vunpack.c.l.b16 %v615_v52  ;;  %v346_v61 = vrot.slane %v345_v46, 4  ;;  %v355_v62 = vor.u32 %v354_v48, %v350_v47  ;;  %5656 = vmatpush.bf16.msra.mxu2 %v5538_v33  ;;  %5657 = vmatpush.bf16.msra.mxu3 %v5538_v33  ;;  %v5583_v35 = vld [vmem:[%s7395_s1 + $0x128] sm:$0xff] }
  0x2b   : > { %v740_v63 = vunpack.c.l.b16 %v625_v57  ;;  %v440_v3 = vrot.slane %v438_v55, 5  ;;  %v444_v6 = vshll.u32 %v258_v42, 16  ;;  %v448_v7 = vshrl.u32 %v258_v42, 16  ;;  %v5575_v52 = vld [vmem:[%s7395_s1 + $0xe8] sm:$0xff] }
  0x2c   : > { %v351_v10 = vsel %vm5843_vm2, %v346_v61, %v350_v47  ;;  %v356_v11 = vrot.slane %v355_v62, 4  ;;  %v454_v12 = vshll.u32 %v300_v49, 16  ;;  %v531_v14 = vshrl.u32 %v265_v56, 16  ;;  %835 = vmatmul.bf16.vlgmr.msra.gmra.mxu0 %v747_v59  ;;  %855 = vmatmul.bf16.vlgmr.msra.gmra.mxu1 %v751_v18 }
  0x2d   : > { %v759_v15 = vpack.c.b16 %v740_v63, %v739_v58  ;;  %v5935_v16 = vunpack.c.l.b16 %v351_v10  ;;  %v441_v19 = vor.u32 %v440_v3, %v437_v54  ;;  %v446_v20 = vrot.slane %v444_v6, 5  ;;  %875 = vmatmul.bf16.vlgmr.msra.gmra.mxu2 %v755_v38  ;;  %1060 = vmatpush.bf16.msrb.mxu1 %v5537_v60  ;;  %v5550_v58 = vld [vmem:[%s7395_s1 + $0xa0] sm:$0xff] }
  0x2e   : > { %1441 = vmatpush.bf16.msrb.mxu2 %v5553_v40  ;;  %2176 = vmatpush.bf16.msrb.mxu3 %v5585_v45  ;;  %v361_v50 = vsel %vm5843_vm2, %v356_v11, %v360_v53  ;;  %v450_v51 = vrot.slane %v448_v7, 4  ;;  %v456_v59 = vrot.slane %v454_v12, 5  ;;  %v533_v1 = vrot.slane %v531_v14, 4  ;;  %v308_v40 = vld [vmem:[%s5821_s29 + $0xa4] sm:$0x1]  ;;  %v5535_v45 = vld [vmem:[%s7395_s1 + $0x28] sm:$0xff] }
  0x2f   : > { %895 = vmatmul.bf16.vlgmr.msra.gmra.mxu3 %v759_v15  ;;  %2409 = vmatpush.bf16.msrb.mxu0 %v5577_v2  ;;  %v5944_v8 = vunpack.c.l.b16 %v361_v50  ;;  %v442_v18 = vrot.slane %v441_v19, 4  ;;  %v534_v25 = vshll.u32 %v265_v56, 16  ;;  %v540_v26 = vshll.u32 %v266_v13, 16  ;;  %v251_v53 = vld [vmem:[%s5821_s29 + $0x18] sm:$0xf]  ;;  %v5582_v60 = vld [vmem:[%s7395_s1 + $0x120] sm:$0xff] }
  0x30   : > { %v451_v29 = vor.u32 %v450_v51, %v446_v20  ;;  %v544_v31 = vshrl.u32 %v266_v13, 16  ;;  %v550_v32 = vshll.u32 %v304_v22, 16  ;;  %v627_v33 = vshrl.u32 %v273_v23, 16  ;;  %v5534_v2 = vld [vmem:[%s7395_s1 + $0x20] sm:$0xff]  ;;  %v259_v19 = vld [vmem:[%s5821_s29 + $0x48] sm:$0xf] }
  0x31   : > { %v748_v36 = vpack.c.b16 %v5944_v8, %v5935_v16  ;;  %v447_v37 = vsel %vm5843_vm2, %v442_v18, %v446_v20  ;;  %v536_v38 = vrot.slane %v534_v25, 5  ;;  %v542_v39 = vrot.slane %v540_v26, 5  ;;  %1061 = vmatpush.bf16.msrb.mxu1 %v5536_v24  ;;  %v5988_v14 = vld [vmem:[%s5821_s29 + $0x20] sm:$0x1]  ;;  %v5549_v51 = vld [vmem:[%s7395_s1 + $0x98] sm:$0xff]  ;;  %v5532_v16 = vld [vmem:[%s7395_s1 + $0x10] sm:$0xff] }
  0x32   : > { %1442 = vmatpush.bf16.msrb.mxu2 %v5552_v0  ;;  %2177 = vmatpush.bf16.msrb.mxu3 %v5584_v9  ;;  %v452_v41 = vrot.slane %v451_v29, 4  ;;  %v5961_v42 = vunpack.c.l.b16 %v447_v37  ;;  %v546_v43 = vrot.slane %v544_v31, 4  ;;  %v552_v44 = vrot.slane %v550_v32, 5  ;;  %v5982_v9 = vld [vmem:[%s5821_s29 + $0x1c] sm:$0xf]  ;;  %v5574_v20 = vld [vmem:[%s7395_s1 + $0xe0] sm:$0xff] }
  0x33   : > { %v537_v46 = vor.u32 %v536_v38, %v533_v1  ;;  %v629_v47 = vrot.slane %v627_v33, 4  ;;  %v630_v48 = vshll.u32 %v273_v23, 16  ;;  %v636_v49 = vshll.u32 %v274_v27, 16  ;;  %2410 = vmatpush.bf16.msrb.mxu0 %v5576_v28  ;;  %v5533_v32 = vld [vmem:[%s7395_s1 + $0x18] sm:$0xff]  ;;  %v6011_v38 = vld [vmem:[%s5821_s29 + $0x4c] sm:$0xf] }
  0x34   : > { %v457_v54 = vsel %vm5843_vm2, %v452_v41, %v456_v59  ;;  %v547_v55 = vor.u32 %v546_v43, %v542_v39  ;;  %v640_v56 = vshrl.u32 %v274_v27, 16  ;;  %v646_v57 = vshll.u32 %v308_v40, 16  ;;  %v5581_v59 = vld [vmem:[%s7395_s1 + $0x118] sm:$0xff] }
  0x35   : > { %v726_v61 = vunpack.c.l.b16 %v457_v54  ;;  %v538_v62 = vrot.slane %v537_v46, 4  ;;  %v632_v63 = vrot.slane %v630_v48, 5  ;;  %v638_v0 = vrot.slane %v636_v49, 5  ;;  %1062 = vmatpush.bf16.msrb.mxu1 %v5535_v45  ;;  %v5573_v40 = vld [vmem:[%s7395_s1 + $0xd8] sm:$0xff]  ;;  %v5548_v46 = vld [vmem:[%s7395_s1 + $0x90] sm:$0xff] }
  0x36   : > { %1443 = vmatpush.bf16.msrb.mxu2 %v5551_v34  ;;  %2178 = vmatpush.bf16.msrb.mxu3 %v5583_v35  ;;  %v548_v3 = vrot.slane %v547_v55, 4  ;;  %v642_v6 = vrot.slane %v640_v56, 4  ;;  %v648_v7 = vrot.slane %v646_v57, 5  ;;  %v363_v10 = vshrl.u32 %v251_v53, 16  ;;  %v267_v45 = vld [vmem:[%s5821_s29 + $0x78] sm:$0xf] }
  0x37   : > { %v752_v11 = vpack.c.b16 %v726_v61, %v5961_v42  ;;  %v543_v12 = vsel %vm5843_vm2, %v538_v62, %v542_v39  ;;  %v633_v13 = vor.u32 %v632_v63, %v629_v47  ;;  %2411 = vmatpush.bf16.msrb.mxu0 %v5575_v52  ;;  %v366_v15 = vshll.u32 %v251_v53, 16  ;;  %v6014_v39 = vld [vmem:[%s5821_s29 + $0x50] sm:$0x1] }
  0x38   : > { %v553_v22 = vsel %vm5843_vm2, %v548_v3, %v552_v44  ;;  %v733_v23 = vunpack.c.l.b16 %v543_v12  ;;  %v643_v24 = vor.u32 %v642_v6, %v638_v0  ;;  %v365_v50 = vrot.slane %v363_v10, 4  ;;  %v5580_v47 = vld [vmem:[%s7395_s1 + $0x110] sm:$0xff]  ;;  %v305_v3 = vld [vmem:[%s5821_s29 + $0x80] sm:$0x1]  ;;  %v275_v12 = vld [vmem:[%s5821_s29 + $0xa8] sm:$0xf] }
  0x39   : > { %v734_v1 = vunpack.c.l.b16 %v553_v22  ;;  %v634_v18 = vrot.slane %v633_v13, 4  ;;  %v368_v25 = vrot.slane %v366_v15, 5  ;;  %v372_v26 = vshll.u32 %v5982_v9, 16  ;;  %1063 = vmatpush.bf16.msrb.mxu1 %v5534_v2 }
  0x3a   : > { %1444 = vmatpush.bf16.msrb.mxu2 %v5550_v58  ;;  %2179 = vmatpush.bf16.msrb.mxu3 %v5582_v60  ;;  %v644_v27 = vrot.slane %v643_v24, 4  ;;  %v376_v28 = vshrl.u32 %v5982_v9, 16  ;;  %v382_v29 = vshll.u32 %v5988_v14, 16  ;;  %v459_v31 = vshrl.u32 %v259_v19, 16  ;;  %v268_v60 = vld [vmem:[%s5821_s29 + $0x7c] sm:$0xf] }
  0x3b   : > { %v756_v33 = vpack.c.b16 %v734_v1, %v733_v23  ;;  %v639_v34 = vsel %vm5843_vm2, %v634_v18, %v638_v0  ;;  %v369_v35 = vor.u32 %v368_v25, %v365_v50  ;;  %v374_v37 = vrot.slane %v372_v26, 5  ;;  %2412 = vmatpush.bf16.msrb.mxu0 %v5574_v20  ;;  %v276_v18 = vld [vmem:[%s5821_s29 + $0xac] sm:$0xf] }
  0x3c   : > { %v649_v41 = vsel %vm5843_vm2, %v644_v27, %v648_v7  ;;  %v741_v42 = vunpack.c.l.b16 %v639_v34  ;;  %v378_v43 = vrot.slane %v376_v28, 4  ;;  %v384_v44 = vrot.slane %v382_v29, 5  ;;  %840 = vmatmul.bf16.gmra.mxu0 %v748_v36  ;;  %860 = vmatmul.bf16.gmra.mxu1 %v752_v11 }
  0x3d   : > { %v742_v48 = vunpack.c.l.b16 %v649_v41  ;;  %v370_v49 = vrot.slane %v369_v35, 4  ;;  %v461_v52 = vrot.slane %v459_v31, 4  ;;  %v462_v53 = vshll.u32 %v259_v19, 16  ;;  %880 = vmatmul.bf16.gmra.mxu2 %v756_v33  ;;  %1064 = vmatpush.bf16.msrb.mxu1 %v5533_v32  ;;  %v309_v31 = vld [vmem:[%s5821_s29 + $0xb0] sm:$0x1] }
  0x3e   : > { %1445 = vmatpush.bf16.msrb.mxu2 %v5549_v51  ;;  %2180 = vmatpush.bf16.msrb.mxu3 %v5581_v59  ;;  %v379_v54 = vor.u32 %v378_v43, %v374_v37  ;;  %v468_v55 = vshll.u32 %v6011_v38, 16  ;;  %v472_v56 = vshrl.u32 %v6011_v38, 16  ;;  %v478_v57 = vshll.u32 %v6014_v39, 16  ;;  %v253_v32 = vld [vmem:[%s5821_s29 + $0x24] sm:$0xf] }
  0x3f   : > { %v760_v8 = vpack.c.b16 %v742_v48, %v741_v42  ;;  %v375_v36 = vsel %vm5843_vm2, %v370_v49, %v374_v37  ;;  %v464_v58 = vrot.slane %v462_v53, 5  ;;  %v555_v61 = vshrl.u32 %v267_v45, 16  ;;  %2413 = vmatpush.bf16.msrb.mxu0 %v5573_v40  ;;  %v5531_v53 = vld [vmem:[%s7395_s1 + $0x8] sm:$0xff] }
  0x40   : > { %v380_v62 = vrot.slane %v379_v54, 4  ;;  %v6040_v63 = vunpack.c.l.b16 %v375_v36  ;;  %v470_v0 = vrot.slane %v468_v55, 5  ;;  %v474_v2 = vrot.slane %v472_v56, 4 }
  0x41   : > { %900 = vmatmul.bf16.gmra.mxu3 %v760_v8  ;;  %v465_v6 = vor.u32 %v464_v58, %v461_v52  ;;  %v480_v7 = vrot.slane %v478_v57, 5  ;;  %v557_v10 = vrot.slane %v555_v61, 4  ;;  %v558_v11 = vshll.u32 %v267_v45, 16  ;;  %1065 = vmatpush.bf16.msrb.mxu1 %v5532_v16  ;;  %v5579_v45 = vld [vmem:[%s7395_s1 + $0x108] sm:$0xff] }
  0x42   : > { %1446 = vmatpush.bf16.msrb.mxu2 %v5548_v46  ;;  %2181 = vmatpush.bf16.msrb.mxu3 %v5580_v47  ;;  %v385_v13 = vsel %vm5843_vm2, %v380_v62, %v384_v44  ;;  %v475_v15 = vor.u32 %v474_v2, %v470_v0  ;;  %v564_v19 = vshll.u32 %v268_v60, 16  ;;  %v568_v20 = vshrl.u32 %v268_v60, 16  ;;  %v5547_v44 = vld [vmem:[%s7395_s1 + $0x88] sm:$0xff]  ;;  %v5572_v46 = vld [vmem:[%s7395_s1 + $0xd0] sm:$0xff] }
  0x43   : > { %v720_v22 = vunpack.c.l.b16 %v385_v13  ;;  %v466_v23 = vrot.slane %v465_v6, 4  ;;  %v560_v24 = vrot.slane %v558_v11, 5  ;;  %v574_v50 = vshll.u32 %v305_v3, 16  ;;  %v6069_v16 = vld [vmem:[%s5821_s29 + $0x28] sm:$0xf]  ;;  %2414 = vmatpush.bf16.msrb.mxu0 %v5572_v46 }
  0x44   : > { %v476_v51 = vrot.slane %v475_v15, 4  ;;  %v566_v59 = vrot.slane %v564_v19, 5  ;;  %v570_v1 = vrot.slane %v568_v20, 4  ;;  %v651_v25 = vshrl.u32 %v275_v12, 16  ;;  %v6072_v8 = vld [vmem:[%s5821_s29 + $0x2c] sm:$0x1] }
  0x45   : > { %v749_v26 = vpack.c.b16 %v720_v22, %v6040_v63  ;;  %v471_v27 = vsel %vm5843_vm2, %v466_v23, %v470_v0  ;;  %v561_v28 = vor.u32 %v560_v24, %v557_v10  ;;  %v576_v29 = vrot.slane %v574_v50, 5  ;;  %v261_v62 = vld [vmem:[%s5821_s29 + $0x54] sm:$0xf]  ;;  %1066 = vmatpush.bf16.msrb.mxu1 %v5531_v53  ;;  %v5546_v63 = vld [vmem:[%s7395_s1 + $0x80] sm:$0xff]  ;;  %v5571_v10 = vld [vmem:[%s7395_s1 + $0xc8] sm:$0xff] }
  0x46   : > { %v481_v33 = vsel %vm5843_vm2, %v476_v51, %v480_v7  ;;  %v727_v34 = vunpack.c.l.b16 %v471_v27  ;;  %v571_v35 = vor.u32 %v570_v1, %v566_v59  ;;  %v653_v37 = vrot.slane %v651_v25, 4  ;;  %1447 = vmatpush.bf16.msrb.mxu2 %v5547_v44  ;;  %2182 = vmatpush.bf16.msrb.mxu3 %v5579_v45  ;;  %v5578_v0 = vld [vmem:[%s7395_s1 + $0x100] sm:$0xff]  ;;  %v6093_v24 = vld [vmem:[%s5821_s29 + $0x58] sm:$0xf]  ;;  %v6096_v25 = vld [vmem:[%s5821_s29 + $0x5c] sm:$0x1] }
  0x47   : > { %v728_v40 = vunpack.c.l.b16 %v481_v33  ;;  %v562_v41 = vrot.slane %v561_v28, 4  ;;  %v654_v42 = vshll.u32 %v275_v12, 16  ;;  %v660_v43 = vshll.u32 %v276_v18, 16  ;;  %v5530_v19 = vld [vmem:[%s7395_s1] sm:$0xff]  ;;  %2415 = vmatpush.bf16.msrb.mxu0 %v5571_v10 }
  0x48   : > { %v572_v47 = vrot.slane %v571_v35, 4  ;;  %v664_v48 = vshrl.u32 %v276_v18, 16  ;;  %v670_v49 = vshll.u32 %v309_v31, 16  ;;  %v387_v52 = vshrl.u32 %v253_v32, 16  ;;  %v269_v31 = vld [vmem:[%s5821_s29 + $0x84] sm:$0xf] }
  0x49   : > { %v753_v54 = vpack.c.b16 %v728_v40, %v727_v34  ;;  %v567_v55 = vsel %vm5843_vm2, %v562_v41, %v566_v59  ;;  %v656_v56 = vrot.slane %v654_v42, 5  ;;  %v662_v57 = vrot.slane %v660_v43, 5  ;;  %1067 = vmatpush.bf16.msrb.mxu1 %v5530_v19  ;;  %v5625_v19 = vld [vmem:[%s7395_s1 + $0x1f8] sm:$0xff] }
  0x4a   : > { %v577_v36 = vsel %vm5843_vm2, %v572_v47, %v576_v29  ;;  %v735_v58 = vunpack.c.l.b16 %v567_v55  ;;  %v666_v60 = vrot.slane %v664_v48, 4  ;;  %v672_v61 = vrot.slane %v670_v49, 5  ;;  %1448 = vmatpush.bf16.msrb.mxu2 %v5546_v63  ;;  %2183 = vmatpush.bf16.msrb.mxu3 %v5578_v0  ;;  %v270_v47 = vld [vmem:[%s5821_s29 + $0x88] sm:$0xf]  ;;  %v306_v55 = vld [vmem:[%s5821_s29 + $0x8c] sm:$0x1] }
  0x4b   : > { %v736_v2 = vunpack.c.l.b16 %v577_v36  ;;  %v657_v3 = vor.u32 %v656_v56, %v653_v37  ;;  %v389_v6 = vrot.slane %v387_v52, 4  ;;  %v390_v7 = vshll.u32 %v253_v32, 16  ;;  %v5570_v32 = vld [vmem:[%s7395_s1 + $0xc0] sm:$0xff]  ;;  %v277_v56 = vld [vmem:[%s5821_s29 + $0xb4] sm:$0xf] }
  0x4c   : > { %v667_v11 = vor.u32 %v666_v60, %v662_v57  ;;  %v396_v12 = vshll.u32 %v6069_v16, 16  ;;  %v400_v13 = vshrl.u32 %v6069_v16, 16  ;;  %v406_v15 = vshll.u32 %v6072_v8, 16  ;;  %845 = vmatmul.bf16.gmra.mxu0 %v749_v26  ;;  %865 = vmatmul.bf16.gmra.mxu1 %v753_v54 }
  0x4d   : > { %v757_v20 = vpack.c.b16 %v736_v2, %v735_v58  ;;  %v658_v22 = vrot.slane %v657_v3, 4  ;;  %v392_v23 = vrot.slane %v390_v7, 5  ;;  %v483_v50 = vshrl.u32 %v261_v62, 16  ;;  %2416 = vmatpush.bf16.msrb.mxu0 %v5570_v32  ;;  %v278_v7 = vld [vmem:[%s5821_s29 + $0xb8] sm:$0xf] }
  0x4e   : > { %v668_v51 = vrot.slane %v667_v11, 4  ;;  %v398_v59 = vrot.slane %v396_v12, 5  ;;  %v402_v1 = vrot.slane %v400_v13, 4  ;;  %v408_v18 = vrot.slane %v406_v15, 5  ;;  %3586 = vmatpush.bf16.msra.mxu2 %v5625_v19 }
  0x4f   : > { %885 = vmatmul.bf16.gmra.mxu2 %v757_v20  ;;  %v663_v26 = vsel %vm5843_vm2, %v658_v22, %v662_v57  ;;  %v393_v27 = vor.u32 %v392_v23, %v389_v6  ;;  %v485_v28 = vrot.slane %v483_v50, 4  ;;  %v486_v29 = vshll.u32 %v261_v62, 16  ;;  %v5617_v20 = vld [vmem:[%s7395_s1 + $0x1b8] sm:$0xff] }
  0x50   : > { %v673_v33 = vsel %vm5843_vm2, %v668_v51, %v672_v61  ;;  %v743_v34 = vunpack.c.l.b16 %v663_v26  ;;  %v403_v35 = vor.u32 %v402_v1, %v398_v59  ;;  %v492_v37 = vshll.u32 %v6093_v24, 16  ;;  %v5593_v22 = vld [vmem:[%s7395_s1 + $0x178] sm:$0xff]  ;;  %3819 = vmatpush.bf16.msra.mxu3 %v5617_v20 }
  0x51   : > { %v744_v40 = vunpack.c.l.b16 %v673_v33  ;;  %v394_v41 = vrot.slane %v393_v27, 4  ;;  %v488_v42 = vrot.slane %v486_v29, 5  ;;  %v496_v43 = vshrl.u32 %v6093_v24, 16  ;;  %v310_v1 = vld [vmem:[%s5821_s29 + $0xbc] sm:$0x1]  ;;  %2787 = vmatpush.bf16.msra.mxu1 %v5593_v22 }
  0x52   : > { %v404_v44 = vrot.slane %v403_v35, 4  ;;  %v494_v45 = vrot.slane %v492_v37, 5  ;;  %v502_v46 = vshll.u32 %v6096_v25, 16  ;;  %v579_v48 = vshrl.u32 %v269_v31, 16 }
  0x53   : > { %v761_v49 = vpack.c.b16 %v744_v40, %v743_v34  ;;  %v399_v52 = vsel %vm5843_vm2, %v394_v41, %v398_v59  ;;  %v489_v53 = vor.u32 %v488_v42, %v485_v28  ;;  %v498_v54 = vrot.slane %v496_v43, 4 }
  0x54   : > { %v409_v57 = vsel %vm5843_vm2, %v404_v44, %v408_v18  ;;  %v721_v36 = vunpack.c.l.b16 %v399_v52  ;;  %v504_v58 = vrot.slane %v502_v46, 5  ;;  %v581_v60 = vrot.slane %v579_v48, 4  ;;  %v5633_v18 = vld [vmem:[%s7395_s1 + $0x238] sm:$0xff]  ;;  %v4937_v48 = vld [vmem:[%s5821_s29 + $0x10] sm:$0xf] }
  0x55   : > { %905 = vmatmul.bf16.gmra.mxu3 %v761_v49  ;;  %v722_v61 = vunpack.c.l.b16 %v409_v57  ;;  %v490_v62 = vrot.slane %v489_v53, 4  ;;  %v499_v63 = vor.u32 %v498_v54, %v494_v45  ;;  %v582_v0 = vshll.u32 %v269_v31, 16  ;;  %4197 = vmatpush.bf16.msra.mxu0 %v5633_v18 }
  0x56   : > { %v588_v2 = vshll.u32 %v270_v47, 16  ;;  %v592_v3 = vshrl.u32 %v270_v47, 16  ;;  %v598_v6 = vshll.u32 %v306_v55, 16  ;;  %v675_v10 = vshrl.u32 %v277_v56, 16  ;;  %v4936_v47 = vld [vmem:[%s5821_s29 + $0xc] sm:$0xf] }
  0x57   : > { %v750_v11 = vpack.c.b16 %v722_v61, %v721_v36  ;;  %v495_v12 = vsel %vm5843_vm2, %v490_v62, %v494_v45  ;;  %v500_v13 = vrot.slane %v499_v63, 4  ;;  %v584_v15 = vrot.slane %v582_v0, 5  ;;  %v1149_v55 = vld [vmem:[%s5821_s29] sm:$0xe] }
  0x58   : > { %v729_v23 = vunpack.c.l.b16 %v495_v12  ;;  %v590_v50 = vrot.slane %v588_v2, 5  ;;  %v594_v51 = vrot.slane %v592_v3, 4  ;;  %v600_v59 = vrot.slane %v598_v6, 5  ;;  %v4984_v6 = vld [vmem:[%s5821_s29 + $0x14] sm:$0x1] }
  0x59   : > { %v505_v26 = vsel %vm5843_vm2, %v500_v13, %v504_v58  ;;  %v585_v27 = vor.u32 %v584_v15, %v581_v60  ;;  %v677_v28 = vrot.slane %v675_v10, 4  ;;  %v678_v29 = vshll.u32 %v277_v56, 16 }
  0x5a   : > { %v730_v31 = vunpack.c.l.b16 %v505_v26  ;;  %v595_v32 = vor.u32 %v594_v51, %v590_v50  ;;  %v684_v33 = vshll.u32 %v278_v7, 16  ;;  %v688_v34 = vshrl.u32 %v278_v7, 16 }
  0x5b   : > { %v586_v35 = vrot.slane %v585_v27, 4  ;;  %v680_v37 = vrot.slane %v678_v29, 5  ;;  %v694_v40 = vshll.u32 %v310_v1, 16  ;;  %v1202_v36 = vrot.slane %v5825_v4, 5  ;;  %v4938_v1 = vld [vmem:[%s5821_s29 + $0x18] sm:$0xf] }
  0x5c   : > { %v754_v41 = vpack.c.b16 %v730_v31, %v729_v23  ;;  %v596_v42 = vrot.slane %v595_v32, 4  ;;  %v686_v43 = vrot.slane %v684_v33, 5  ;;  %v690_v44 = vrot.slane %v688_v34, 4  ;;  %850 = vmatmul.bf16.gmra.mxu0 %v750_v11  ;;  %v5554_v31 = vld [vmem:[%s5821_s29 + $0xc] sm:$0xff]  ;;  %v4939_v32 = vld [vmem:[%s5821_s29 + $0x1c] sm:$0xf] }
  0x5d   : > { %v591_v45 = vsel %vm5843_vm2, %v586_v35, %v590_v50  ;;  %v681_v46 = vor.u32 %v680_v37, %v677_v28  ;;  %v696_v54 = vrot.slane %v694_v40, 5  ;;  %v1664_v60 = vshrl.u32 %v4936_v47, 16  ;;  %v5514_v33 = vld [vmem:[%s5821_s29] sm:$0xff] }
  0x5e   : > { %870 = vmatmul.bf16.gmra.mxu1 %v754_v41  ;;  %v601_v49 = vsel %vm5843_vm2, %v596_v42, %v600_v59  ;;  %v737_v52 = vunpack.c.l.b16 %v591_v45  ;;  %v691_v53 = vor.u32 %v690_v44, %v686_v43  ;;  %v1667_v61 = vshll.u32 %v4936_v47, 16  ;;  %v1150_v45 = vld [vmem:[%s5821_s29 + $0xc] sm:$0xe] }
  0x5f   : > { %v738_v56 = vunpack.c.l.b16 %v601_v49  ;;  %v682_v57 = vrot.slane %v681_v46, 4  ;;  %v1673_v62 = vshll.u32 %v4937_v48, 16  ;;  %v4872_v2 = vrot.slane %v1149_v55, 9 }
  0x60   : > { %v692_v58 = vrot.slane %v691_v53, 4  ;;  %v1205_v3 = vrot.slane %v5828_v5, 5  ;;  %v1204_v11 = vrot.slane %v1202_v36, 4  ;;  %v1666_v12 = vrot.slane %v1664_v60, 4 }
  0x61   : > { %v758_v63 = vpack.c.b16 %v738_v56, %v737_v52  ;;  %v687_v0 = vsel %vm5843_vm2, %v682_v57, %v686_v43  ;;  %v1669_v15 = vrot.slane %v1667_v61, 5  ;;  %v1675_v19 = vrot.slane %v1673_v62, 5  ;;  %v4985_v61 = vld [vmem:[%s5821_s29 + $0x20] sm:$0x1] }
  0x62   : > { %v697_v7 = vsel %vm5843_vm2, %v692_v58, %v696_v54  ;;  %v745_v10 = vunpack.c.l.b16 %v687_v0  ;;  %v1677_v5 = vshrl.u32 %v4937_v48, 16  ;;  %v1683_v20 = vshll.u32 %v4984_v6, 16  ;;  %v1151_v48 = vld [vmem:[%s5821_s29 + $0x18] sm:$0xe] }
  0x63   : > { %890 = vmatmul.bf16.gmra.mxu2 %v758_v63  ;;  %v746_v4 = vunpack.c.l.b16 %v697_v7  ;;  %v1670_v23 = vor.u32 %v1669_v15, %v1666_v12  ;;  %v1203_v50 = vsel %vm6150_vm5, %v4872_v2, %v1202_v36  ;;  %v1206_v51 = vsel %vm6150_vm5, %v1204_v11, %v1205_v3  ;;  %v4940_v12 = vld [vmem:[%s5821_s29 + $0x24] sm:$0xf]  ;;  %v5624_v15 = vld [vmem:[%s7395_s1 + $0x1f0] sm:$0xff] }
  0x64   : > { %v1679_v59 = vrot.slane %v1677_v5, 4  ;;  %v1685_v27 = vrot.slane %v1683_v20, 5  ;;  %v1329_v28 = vunpack.c.l.b16 %v1203_v50  ;;  %v1330_v29 = vunpack.c.l.b16 %v1206_v51  ;;  %v5592_v5 = vld [vmem:[%s7395_s1 + $0x170] sm:$0xff]  ;;  %3587 = vmatpush.bf16.msra.mxu2 %v5624_v15 }
  0x65   : > { %v762_v22 = vpack.c.b16 %v746_v4, %v745_v10  ;;  %v1671_v18 = vrot.slane %v1670_v23, 4  ;;  %v1688_v35 = vshrl.u32 %v4938_v1, 16  ;;  %v1691_v37 = vshll.u32 %v4938_v1, 16  ;;  %v4941_v23 = vld [vmem:[%s5821_s29 + $0x28] sm:$0xf]  ;;  %v5632_v50 = vld [vmem:[%s7395_s1 + $0x230] sm:$0xff]  ;;  %2788 = vmatpush.bf16.msra.mxu1 %v5592_v5 }
  0x66   : > { %v1680_v26 = vor.u32 %v1679_v59, %v1675_v19  ;;  %v1697_v42 = vshll.u32 %v4939_v32, 16  ;;  %v1701_v43 = vshrl.u32 %v4939_v32, 16  ;;  %v1361_v44 = vpack.c.b16 %v1330_v29, %v1329_v28  ;;  %v5555_v1 = vld [vmem:[%s5821_s29 + $0x18] sm:$0xff]  ;;  %4198 = vmatpush.bf16.msra.mxu0 %v5632_v50  ;;  %v5623_v50 = vld [vmem:[%s7395_s1 + $0x1e8] sm:$0xff] }
  0x67   : > { %910 = vmatmul.bf16.gmra.mxu3 %v762_v22  ;;  %v1676_v40 = vsel %vm5843_vm2, %v1671_v18, %v1675_v19  ;;  %v1209_v46 = vrot.slane %v5884_v17, 5  ;;  %v1690_v47 = vrot.slane %v1688_v35, 4  ;;  %v1216_v49 = vrot.slane %v5982_v9, 5  ;;  %v5616_v19 = vld [vmem:[%s7395_s1 + $0x1b0] sm:$0xff] }
  0x68   : > { %v1681_v34 = vrot.slane %v1680_v26, 4  ;;  %v1219_v52 = vrot.slane %v5988_v14, 5  ;;  %v2064_v53 = vunpack.c.l.b16 %v1676_v40  ;;  %v1693_v55 = vrot.slane %v1691_v37, 5  ;;  %3820 = vmatpush.bf16.msra.mxu3 %v5616_v19  ;;  %v5515_v26 = vld [vmem:[%s5821_s29 + $0xc] sm:$0xff]  ;;  %v1152_v40 = vld [vmem:[%s5821_s29 + $0x24] sm:$0xe]  ;;  %3588 = vmatpush.bf16.msra.mxu2 %v5623_v50 }
  0x69   : > { %v4874_v56 = vrot.slane %v1151_v48, 9  ;;  %v1699_v57 = vrot.slane %v1697_v42, 5  ;;  %v1703_v36 = vrot.slane %v1701_v43, 4  ;;  %v1218_v58 = vrot.slane %v1216_v49, 4  ;;  %v4987_v19 = vld [vmem:[%s5821_s29 + $0x38] sm:$0x1] }
  0x6a   : > { %v1686_v41 = vsel %vm5843_vm2, %v1681_v34, %v1685_v27  ;;  %v4873_v60 = vrot.slane %v1150_v45, 9  ;;  %v1211_v17 = vrot.slane %v1209_v46, 4  ;;  %v1212_v63 = vrot.slane %v5889_v21, 5 }
  0x6b   : > { %v2065_v54 = vunpack.c.l.b16 %v1686_v41  ;;  %v1217_v62 = vsel %vm6150_vm5, %v4874_v56, %v1216_v49  ;;  %v1220_v9 = vsel %vm6150_vm5, %v1218_v58, %v1219_v52  ;;  %v1694_v2 = vor.u32 %v1693_v55, %v1690_v47  ;;  %v4986_v47 = vld [vmem:[%s5821_s29 + $0x2c] sm:$0x1] }
  0x6c   : > { %2417 = vmatmul.bf16.vlgmr.msrb.gmra.mxu0 %v5554_v31  ;;  %v1333_v14 = vunpack.c.l.b16 %v1217_v62  ;;  %v1334_v3 = vunpack.c.l.b16 %v1220_v9  ;;  %v1704_v6 = vor.u32 %v1703_v36, %v1699_v57  ;;  %v1707_v7 = vshll.u32 %v4985_v61, 16  ;;  %v5556_v61 = vld [vmem:[%s5821_s29 + $0x24] sm:$0xff]  ;;  %v4942_v62 = vld [vmem:[%s5821_s29 + $0x30] sm:$0xf] }
  0x6d   : > { %v2096_v0 = vpack.c.b16 %v2065_v54, %v2064_v53  ;;  %v1210_v11 = vsel %vm6150_vm5, %v4873_v60, %v1209_v46  ;;  %v1213_v21 = vsel %vm6150_vm5, %v1211_v17, %v1212_v63  ;;  %v1695_v4 = vrot.slane %v1694_v2, 4  ;;  %v4943_v17 = vld [vmem:[%s5821_s29 + $0x34] sm:$0xf]  ;;  %v5516_v63 = vld [vmem:[%s5821_s29 + $0x18] sm:$0xff] }
  0x6e   : > { %1068 = vmatmul.bf16.vlgmr.msrb.gmra.mxu1 %v5514_v33  ;;  %v6177_v10 = vpack.c.b16 %v1334_v3, %v1333_v14  ;;  %v1705_v20 = vrot.slane %v1704_v6, 4  ;;  %v1709_v22 = vrot.slane %v1707_v7, 5  ;;  %v1331_v51 = vunpack.c.l.b16 %v1210_v11 }
  0x6f   : > { %v1332_v59 = vunpack.c.l.b16 %v1213_v21  ;;  %v1712_v18 = vshrl.u32 %v4940_v12, 16  ;;  %v1715_v27 = vshll.u32 %v4940_v12, 16  ;;  %v1700_v28 = vsel %vm5843_vm2, %v1695_v4, %v1699_v57 }
  0x70   : > { %v1721_v29 = vshll.u32 %v4941_v23, 16  ;;  %v1725_v31 = vshrl.u32 %v4941_v23, 16  ;;  %v1710_v32 = vsel %vm5843_vm2, %v1705_v20, %v1709_v22  ;;  %v2066_v35 = vunpack.c.l.b16 %v1700_v28  ;;  %v5557_v28 = vld [vmem:[%s5821_s29 + $0x30] sm:$0xff] }
  0x71   : > { %v1362_v33 = vpack.c.b16 %v1332_v59, %v1331_v51  ;;  %v1714_v34 = vrot.slane %v1712_v18, 4  ;;  %v1717_v37 = vrot.slane %v1715_v27, 5  ;;  %v1223_v41 = vrot.slane %v6069_v16, 5  ;;  %v5615_v51 = vld [vmem:[%s7395_s1 + $0x1a8] sm:$0xff] }
  0x72   : > { %v1226_v42 = vrot.slane %v6072_v8, 5  ;;  %v2067_v43 = vunpack.c.l.b16 %v1710_v32  ;;  %v1727_v45 = vrot.slane %v1725_v31, 4  ;;  %v4875_v46 = vrot.slane %v1152_v40, 9  ;;  %v5591_v59 = vld [vmem:[%s7395_s1 + $0x168] sm:$0xff]  ;;  %3821 = vmatpush.bf16.msra.mxu3 %v5615_v51  ;;  %v1154_v51 = vld [vmem:[%s5821_s29 + $0x3c] sm:$0xe] }
  0x73   : > { %1449 = vmatmul.bf16.vlgmr.msrb.gmra.mxu2 %v1361_v44  ;;  %v1723_v44 = vrot.slane %v1721_v29, 5  ;;  %v1225_v48 = vrot.slane %v1223_v41, 4  ;;  %v1718_v52 = vor.u32 %v1717_v37, %v1714_v34  ;;  %v1731_v55 = vshll.u32 %v4986_v47, 16  ;;  %v5631_v27 = vld [vmem:[%s7395_s1 + $0x228] sm:$0xff]  ;;  %v4945_v29 = vld [vmem:[%s5821_s29 + $0x40] sm:$0xf]  ;;  %2789 = vmatpush.bf16.msra.mxu1 %v5591_v59 }
  0x74   : > { %v1224_v49 = vsel %vm6150_vm5, %v4875_v46, %v1223_v41  ;;  %v2097_v8 = vpack.c.b16 %v2067_v43, %v2066_v35  ;;  %v1739_v2 = vshll.u32 %v4942_v62, 16  ;;  %v1745_v3 = vshll.u32 %v4943_v17, 16  ;;  %v5517_v31 = vld [vmem:[%s5821_s29 + $0x24] sm:$0xff]  ;;  %4199 = vmatpush.bf16.msra.mxu0 %v5631_v27  ;;  %v5683_v46 = vld [vmem:[%s5821_s29 + $0x34] sm:$0xf] }
  0x75   : > { %v1227_v53 = vsel %vm6150_vm5, %v1225_v48, %v1226_v42  ;;  %v1335_v16 = vunpack.c.l.b16 %v1224_v49  ;;  %v1728_v54 = vor.u32 %v1727_v45, %v1723_v44  ;;  %v1719_v36 = vrot.slane %v1718_v52, 4  ;;  %v1153_v45 = vld [vmem:[%s5821_s29 + $0x30] sm:$0xe]  ;;  %v4988_v52 = vld [vmem:[%s5821_s29 + $0x44] sm:$0x1] }
  0x76   : > { %v1336_v56 = vunpack.c.l.b16 %v1227_v53  ;;  %v1733_v60 = vrot.slane %v1731_v55, 5  ;;  %v1749_v6 = vshrl.u32 %v4943_v17, 16  ;;  %v1741_v12 = vrot.slane %v1739_v2, 5  ;;  %v5684_v55 = vld [vmem:[%s5821_s29 + $0x38] sm:$0x1] }
  0x77   : > { %2184 = vmatmul.bf16.vlgmr.msrb.gmra.mxu3 %v2096_v0  ;;  %v1729_v58 = vrot.slane %v1728_v54, 4  ;;  %v1724_v9 = vsel %vm5843_vm2, %v1719_v36, %v1723_v44  ;;  %v1736_v0 = vshrl.u32 %v4942_v62, 16  ;;  %v1747_v4 = vrot.slane %v1745_v3, 5  ;;  %v5518_v3 = vld [vmem:[%s5821_s29 + $0x30] sm:$0xff]  ;;  %v5685_v59 = vld [vmem:[%s5821_s29 + $0x40] sm:$0xf] }
  0x78   : > { %v1364_v57 = vpack.c.b16 %v1336_v56, %v1335_v16  ;;  %v2068_v7 = vunpack.c.l.b16 %v1724_v9  ;;  %v1751_v15 = vrot.slane %v1749_v6, 4  ;;  %v1755_v23 = vshll.u32 %v4987_v19, 16  ;;  %v5558_v9 = vld [vmem:[%s5821_s29 + $0x3c] sm:$0xff]  ;;  %v4989_v27 = vld [vmem:[%s5821_s29 + $0x50] sm:$0x1] }
  0x79   : > { %v1734_v14 = vsel %vm5843_vm2, %v1729_v58, %v1733_v60  ;;  %v1738_v21 = vrot.slane %v1736_v0, 4  ;;  %v1769_v37 = vshll.u32 %v4945_v29, 16  ;;  %v1773_v40 = vshrl.u32 %v4945_v29, 16 }
  0x7a   : > { %v2069_v11 = vunpack.c.l.b16 %v1734_v14  ;;  %v1752_v22 = vor.u32 %v1751_v15, %v1747_v4  ;;  %v1757_v18 = vrot.slane %v1755_v23, 5  ;;  %v1230_v47 = vrot.slane %v5683_v46, 5  ;;  %v4947_v14 = vld [vmem:[%s5821_s29 + $0x4c] sm:$0xf]  ;;  %v5614_v46 = vld [vmem:[%s7395_s1 + $0x1a0] sm:$0xff] }
  0x7b   : > { %v1742_v20 = vor.u32 %v1741_v12, %v1738_v21  ;;  %v1771_v48 = vrot.slane %v1769_v37, 5  ;;  %v1775_v49 = vrot.slane %v1773_v40, 4  ;;  %v4876_v16 = vrot.slane %v1153_v45, 9  ;;  %v5686_v37 = vld [vmem:[%s5821_s29 + $0x44] sm:$0x1]  ;;  %3822 = vmatpush.bf16.msra.mxu3 %v5614_v46 }
  0x7c   : > { %2422 = vmatmul.bf16.gmra.mxu0 %v5555_v1  ;;  %v2098_v5 = vpack.c.b16 %v2069_v11, %v2068_v7  ;;  %v1232_v54 = vrot.slane %v1230_v47, 4  ;;  %v1233_v56 = vrot.slane %v5684_v55, 5  ;;  %v1779_v58 = vshll.u32 %v4988_v52, 16  ;;  %v5622_v45 = vld [vmem:[%s7395_s1 + $0x1e0] sm:$0xff]  ;;  %v4948_v52 = vld [vmem:[%s5821_s29 + $0x54] sm:$0xf] }
  0x7d   : > { %v1743_v1 = vrot.slane %v1742_v20, 4  ;;  %v1776_v36 = vor.u32 %v1775_v49, %v1771_v48  ;;  %v1231_v60 = vsel %vm6150_vm5, %v4876_v16, %v1230_v47  ;;  %v1793_v15 = vshll.u32 %v4947_v14, 16  ;;  %v5630_v16 = vld [vmem:[%s7395_s1 + $0x220] sm:$0xff]  ;;  %v4949_v55 = vld [vmem:[%s5821_s29 + $0x58] sm:$0xf]  ;;  %3589 = vmatpush.bf16.msra.mxu2 %v5622_v45 }
  0x7e   : > { %1073 = vmatmul.bf16.gmra.mxu1 %v5515_v26  ;;  %v4944_v26 = vld [vmem:[%s5821_s29 + $0x3c] sm:$0xf]  ;;  %v1234_v62 = vsel %vm6150_vm5, %v1232_v54, %v1233_v56  ;;  %v1781_v17 = vrot.slane %v1779_v58, 5  ;;  %v1337_v6 = vunpack.c.l.b16 %v1231_v60  ;;  %v1797_v19 = vshrl.u32 %v4947_v14, 16  ;;  %v5559_v54 = vld [vmem:[%s5821_s29 + $0x48] sm:$0xff]  ;;  %4200 = vmatpush.bf16.msra.mxu0 %v5630_v16 }
  0x7f   : > { %v1760_v32 = vshrl.u32 %v4944_v26, 16  ;;  %v1748_v34 = vsel %vm5843_vm2, %v1743_v1, %v1747_v4  ;;  %v1338_v7 = vunpack.c.l.b16 %v1234_v62  ;;  %v1237_v1 = vrot.slane %v5685_v59, 5  ;;  %v5519_v58 = vld [vmem:[%s5821_s29 + $0x3c] sm:$0xff] }
  0x80   : > { %v2070_v41 = vunpack.c.l.b16 %v1748_v34  ;;  %v1240_v40 = vrot.slane %v5686_v37, 5  ;;  %v1817_v14 = vshll.u32 %v4949_v55, 16 }
  0x81   : > { %v1762_v43 = vrot.slane %v1760_v32, 4  ;;  %v1365_v20 = vpack.c.b16 %v1338_v7, %v1337_v6 }
  0x83   : > { %1454 = vmatmul.bf16.gmra.mxu2 %v1362_v33  ;;  %v1763_v33 = vshll.u32 %v4944_v26, 16 }
  0x85   : > { %v1765_v44 = vrot.slane %v1763_v33, 5  ;;  %v4877_v33 = vrot.slane %v1154_v51, 9 }
  0x87   : > { %2189 = vmatmul.bf16.gmra.mxu3 %v2097_v8  ;;  %v1766_v8 = vor.u32 %v1765_v44, %v1762_v43  ;;  %v1238_v43 = vsel %vm6150_vm5, %v4877_v33, %v1237_v1 }
  0x88   : > { %v1339_v60 = vunpack.c.l.b16 %v1238_v43 }
  0x8c   : > { %2427 = vmatmul.bf16.gmra.mxu0 %v5556_v61  ;;  %v1767_v61 = vrot.slane %v1766_v8, 4 }
  0x8e   : > { %1078 = vmatmul.bf16.gmra.mxu1 %v5516_v63  ;;  %v4946_v63 = vld [vmem:[%s5821_s29 + $0x48] sm:$0xf]  ;;  %v1772_v11 = vsel %vm5843_vm2, %v1767_v61, %v1771_v48 }
  0x8f   : > { %v1784_v21 = vshrl.u32 %v4946_v63, 16  ;;  %v1787_v12 = vshll.u32 %v4946_v63, 16  ;;  %v1811_v63 = vshll.u32 %v4948_v52, 16 }
  0x91   : > { %v1786_v23 = vrot.slane %v1784_v21, 4  ;;  %v1789_v50 = vrot.slane %v1787_v12, 5  ;;  %v1813_v12 = vrot.slane %v1811_v63, 5 }
  0x93   : > { %1459 = vmatmul.bf16.gmra.mxu2 %v6177_v10  ;;  %v1753_v10 = vrot.slane %v1752_v22, 4  ;;  %v1790_v34 = vor.u32 %v1789_v50, %v1786_v23 }
  0x95   : > { %v1758_v35 = vsel %vm5843_vm2, %v1753_v10, %v1757_v18  ;;  %v1795_v10 = vrot.slane %v1793_v15, 5  ;;  %v1799_v18 = vrot.slane %v1797_v19, 4  ;;  %v1791_v44 = vrot.slane %v1790_v34, 4 }
  0x96   : > { %v2071_v42 = vunpack.c.l.b16 %v1758_v35  ;;  %v1239_v35 = vrot.slane %v1237_v1, 4  ;;  %v1244_v15 = vrot.slane %v6011_v38, 5  ;;  %v1819_v19 = vrot.slane %v1817_v14, 5 }
  0x97   : > { %2194 = vmatmul.bf16.gmra.mxu3 %v2098_v5  ;;  %v2072_v5 = vunpack.c.l.b16 %v1772_v11 }
  0x98   : > { %v2099_v53 = vpack.c.b16 %v2071_v42, %v2070_v41  ;;  %v1800_v41 = vor.u32 %v1799_v18, %v1795_v10  ;;  %v1803_v42 = vshll.u32 %v4989_v27, 16  ;;  %v1241_v47 = vsel %vm6150_vm5, %v1239_v35, %v1240_v40  ;;  %v4950_v35 = vld [vmem:[%s5821_s29 + $0x60] sm:$0xf] }
  0x99   : > { %v1340_v62 = vunpack.c.l.b16 %v1241_v47  ;;  %v1246_v38 = vrot.slane %v1244_v15, 4  ;;  %v1247_v18 = vrot.slane %v6014_v39, 5  ;;  %v5520_v39 = vld [vmem:[%s5821_s29 + $0x48] sm:$0xff]  ;;  %v1832_v47 = vshrl.u32 %v4950_v35, 16 }
  0x9a   : > { %v1801_v48 = vrot.slane %v1800_v41, 4  ;;  %v1805_v49 = vrot.slane %v1803_v42, 5  ;;  %v4951_v42 = vld [vmem:[%s5821_s29 + $0x64] sm:$0xf] }
  0x9b   : > { %v1366_v7 = vpack.c.b16 %v1340_v62, %v1339_v60  ;;  %v1248_v37 = vsel %vm6150_vm5, %v1246_v38, %v1247_v18  ;;  %v1841_v16 = vshll.u32 %v4951_v42, 16  ;;  %v1834_v62 = vrot.slane %v1832_v47, 4  ;;  %v5621_v38 = vld [vmem:[%s7395_s1 + $0x1d8] sm:$0xff] }
  0x9c   : > { %2432 = vmatmul.bf16.gmra.mxu0 %v5557_v28  ;;  %v5613_v18 = vld [vmem:[%s7395_s1 + $0x198] sm:$0xff]  ;;  %3590 = vmatpush.bf16.msra.mxu2 %v5621_v38 }
  0x9d   : > { %3823 = vmatpush.bf16.msra.mxu3 %v5613_v18  ;;  %v5688_v18 = vld [vmem:[%s5821_s29 + $0x68] sm:$0x1] }
  0x9e   : > { %1083 = vmatmul.bf16.gmra.mxu1 %v5517_v31 }
  0xa3   : > { %1464 = vmatmul.bf16.gmra.mxu2 %v1364_v57  ;;  %v1777_v57 = vrot.slane %v1776_v36, 4 }
  0xa5   : > { %v1782_v4 = vsel %vm5843_vm2, %v1777_v57, %v1781_v17  ;;  %v1796_v57 = vsel %vm5843_vm2, %v1791_v44, %v1795_v10  ;;  %v1808_v17 = vshrl.u32 %v4948_v52, 16  ;;  %v5560_v44 = vld [vmem:[%s5821_s29 + $0x54] sm:$0xff]  ;;  %v1342_v52 = vunpack.c.l.b16 %v1248_v37  ;;  %v5561_v37 = vld [vmem:[%s5821_s29 + $0x60] sm:$0xff] }
  0xa6   : > { %v2073_v22 = vunpack.c.l.b16 %v1782_v4  ;;  %v2074_v6 = vunpack.c.l.b16 %v1796_v57  ;;  %v1155_v4 = vld [vmem:[%s5821_s29 + $0x48] sm:$0xe] }
  0xa7   : > { %2199 = vmatmul.bf16.gmra.mxu3 %v2099_v53  ;;  %v5590_v53 = vld [vmem:[%s7395_s1 + $0x160] sm:$0xff]  ;;  %v1810_v21 = vrot.slane %v1808_v17, 4  ;;  %v4878_v59 = vrot.slane %v1155_v4, 9 }
  0xa8   : > { %v2100_v31 = vpack.c.b16 %v2073_v22, %v2072_v5  ;;  %2790 = vmatpush.bf16.msra.mxu1 %v5590_v53  ;;  %v4990_v22 = vld [vmem:[%s5821_s29 + $0x5c] sm:$0x1] }
  0xa9   : > { %v6252_v0 = vpop.f32.mrf.mxu0  ;;  %v6254_v2 = vpop.f32.mrf.mxu1  ;;  %v1814_v1 = vor.u32 %v1813_v12, %v1810_v21  ;;  %v1245_v33 = vsel %vm6150_vm5, %v4878_v59, %v1244_v15 }
  0xaa   : > { %v1341_v46 = vunpack.c.l.b16 %v1245_v33 }
  0xab   : > { %v1815_v34 = vrot.slane %v1814_v1, 4  ;;  %v4952_v1 = vld [vmem:[%s5821_s29 + $0x6c] sm:$0xf] }
  0xac   : > { %2437 = vmatmul.bf16.gmra.mxu0 %v5558_v9  ;;  %v1806_v9 = vsel %vm5843_vm2, %v1801_v48, %v1805_v49  ;;  %v1835_v48 = vshll.u32 %v4950_v35, 16  ;;  %v1367_v17 = vpack.c.b16 %v1342_v52, %v1341_v46  ;;  %v4953_v35 = vld [vmem:[%s5821_s29 + $0x70] sm:$0xf] }
  0xad   : > { %v2075_v11 = vunpack.c.l.b16 %v1806_v9  ;;  %v1820_v53 = vsel %vm5843_vm2, %v1815_v34, %v1819_v19  ;;  %v1843_v9 = vrot.slane %v1841_v16, 5  ;;  %v1865_v52 = vshll.u32 %v4953_v35, 16  ;;  %v5589_v16 = vld [vmem:[%s7395_s1 + $0x158] sm:$0xff] }
  0xae   : > { %1088 = vmatmul.bf16.gmra.mxu1 %v5518_v3  ;;  %v1821_v3 = vshrl.u32 %v4949_v55, 16  ;;  %v2076_v60 = vunpack.c.l.b16 %v1820_v53  ;;  %v1837_v57 = vrot.slane %v1835_v48, 5  ;;  %v1869_v53 = vshrl.u32 %v4953_v35, 16  ;;  %v4954_v35 = vld [vmem:[%s5821_s29 + $0x78] sm:$0xf] }
  0xaf   : > { %v2101_v50 = vpack.c.b16 %v2075_v11, %v2074_v6  ;;  %v1156_v6 = vld [vmem:[%s5821_s29 + $0x54] sm:$0xe]  ;;  %2791 = vmatpush.bf16.msra.mxu1 %v5589_v16 }
  0xb0   : > { %v6263_v26 = vpop.f32.mrf.mxu2  ;;  %v1823_v5 = vrot.slane %v1821_v3, 4  ;;  %v1251_v3 = vrot.slane %v6093_v24, 5  ;;  %v1838_v12 = vor.u32 %v1837_v57, %v1834_v62 }
  0xb1   : > { %v6268_v29 = vpop.f32.mrf.mxu0  ;;  %v6270_v32 = vpop.f32.mrf.mxu1 }
  0xb2   : > { %v6266_v28 = vpop.f32.mrf.mxu3  ;;  %v1824_v27 = vor.u32 %v1823_v5, %v1819_v19  ;;  %v4879_v5 = vrot.slane %v1156_v6, 9  ;;  %v1839_v59 = vrot.slane %v1838_v12, 4 }
  0xb3   : > { %1469 = vmatmul.bf16.gmra.mxu2 %v1365_v20 }
  0xb4   : > { %v1825_v40 = vrot.slane %v1824_v27, 4 }
  0xb7   : > { %2204 = vmatmul.bf16.gmra.mxu3 %v2100_v31  ;;  %v1827_v31 = vshll.u32 %v4990_v22, 16  ;;  %v1253_v22 = vrot.slane %v1251_v3, 4 }
  0xb8   : > { %v6290_v8 = vpop.f32.mrf.mxu2 }
  0xb9   : > { %v6296_v36 = vpop.f32.mrf.mxu0  ;;  %v6299_v61 = vpop.f32.mrf.mxu1  ;;  %v1829_v41 = vrot.slane %v1827_v31, 5  ;;  %v1252_v31 = vsel %vm6150_vm5, %v4879_v5, %v1251_v3  ;;  %v1871_v3 = vrot.slane %v1869_v53, 4  ;;  %v5522_v53 = vld [vmem:[%s5821_s29 + $0x60] sm:$0xff] }
  0xba   : > { %v6294_v56 = vpop.f32.mrf.mxu3  ;;  %v1343_v47 = vunpack.c.l.b16 %v1252_v31  ;;  %v1261_v31 = vrot.slane %v5688_v18, 5 }
  0xbb   : > { %v1830_v55 = vsel %vm5843_vm2, %v1825_v40, %v1829_v41  ;;  %v5521_v41 = vld [vmem:[%s5821_s29 + $0x54] sm:$0xff] }
  0xbc   : > { %2442 = vmatmul.bf16.gmra.mxu0 %v5559_v54  ;;  %v1845_v54 = vshrl.u32 %v4951_v42, 16  ;;  %v2077_v63 = vunpack.c.l.b16 %v1830_v55  ;;  %v1844_v42 = vsel %vm5843_vm2, %v1839_v59, %v1843_v9 }
  0xbd   : > { %v2078_v62 = vunpack.c.l.b16 %v1844_v42 }
  0xbe   : > { %1093 = vmatmul.bf16.gmra.mxu1 %v5519_v58  ;;  %v1847_v14 = vrot.slane %v1845_v54, 4  ;;  %v2102_v4 = vpack.c.b16 %v2077_v63, %v2076_v60  ;;  %v5629_v54 = vld [vmem:[%s7395_s1 + $0x218] sm:$0xff] }
  0xbf   : > { %4201 = vmatpush.bf16.msra.mxu0 %v5629_v54  ;;  %v1880_v54 = vshrl.u32 %v4954_v35, 16 }
  0xc0   : > { %v6307_v20 = vpop.f32.mrf.mxu2  ;;  %v1848_v19 = vor.u32 %v1847_v14, %v1843_v9  ;;  %v1867_v14 = vrot.slane %v1865_v52, 5 }
  0xc1   : > { %v6310_v23 = vpop.f32.mrf.mxu0  ;;  %v6312_v51 = vpop.f32.mrf.mxu1 }
  0xc2   : > { %v1849_v33 = vrot.slane %v1848_v19, 4  ;;  %v4992_v19 = vld [vmem:[%s5821_s29 + $0x74] sm:$0x1]  ;;  %v1872_v59 = vor.u32 %v1871_v3, %v1867_v14 }
  0xc3   : > { %1474 = vmatmul.bf16.gmra.mxu2 %v1366_v7  ;;  %v4991_v7 = vld [vmem:[%s5821_s29 + $0x68] sm:$0x1] }
  0xc4   : > { %v6314_v10 = vpop.f32.mrf.mxu3  ;;  %v1851_v24 = vshll.u32 %v4991_v7, 16  ;;  %v5687_v7 = vld [vmem:[%s5821_s29 + $0x64] sm:$0xf]  ;;  %v1873_v42 = vrot.slane %v1872_v59, 4 }
  0xc5   : > { %v1258_v12 = vrot.slane %v5687_v7, 5 }
  0xc6   : > { %v1853_v34 = vrot.slane %v1851_v24, 5 }
  0xc7   : > { %2209 = vmatmul.bf16.gmra.mxu3 %v2101_v50  ;;  %v1254_v50 = vrot.slane %v6096_v25, 5  ;;  %v1260_v38 = vrot.slane %v1258_v12, 4 }
  0xc8   : > { %v6323_v43 = vpop.f32.mrf.mxu2  ;;  %v1854_v60 = vsel %vm5843_vm2, %v1849_v33, %v1853_v34 }
  0xc9   : > { %v6326_v45 = vpop.f32.mrf.mxu0  ;;  %v6329_v49 = vpop.f32.mrf.mxu1  ;;  %v1255_v25 = vsel %vm6150_vm5, %v1253_v22, %v1254_v50  ;;  %v2079_v9 = vunpack.c.l.b16 %v1854_v60  ;;  %v1883_v60 = vshll.u32 %v4954_v35, 16 }
  0xca   : > { %v1344_v48 = vunpack.c.l.b16 %v1255_v25  ;;  %v1875_v25 = vshll.u32 %v4992_v19, 16 }
  0xcb   : > { %v2103_v50 = vpack.c.b16 %v2079_v9, %v2078_v62  ;;  %v1885_v19 = vrot.slane %v1883_v60, 5 }
  0xcc   : > { %2447 = vmatmul.bf16.gmra.mxu0 %v5560_v44  ;;  %v6335_v58 = vpop.f32.mrf.mxu3  ;;  %v1856_v44 = vshrl.u32 %v4952_v1, 16  ;;  %v1368_v63 = vpack.c.b16 %v1344_v48, %v1343_v47  ;;  %v5562_v47 = vld [vmem:[%s5821_s29 + $0x6c] sm:$0xff] }
  0xce   : > { %1098 = vmatmul.bf16.gmra.mxu1 %v5520_v39  ;;  %v1859_v39 = vshll.u32 %v4952_v1, 16  ;;  %v1858_v57 = vrot.slane %v1856_v44, 4  ;;  %v1877_v44 = vrot.slane %v1875_v25, 5  ;;  %v1158_v25 = vld [vmem:[%s5821_s29 + $0x6c] sm:$0xe] }
  0xd0   : > { %v1878_v7 = vsel %vm5843_vm2, %v1873_v42, %v1877_v44 }
  0xd1   : > { %v6342_v21 = vpop.f32.mrf.mxu0  ;;  %v6344_v15 = vpop.f32.mrf.mxu1 }
  0xd2   : > { %v6340_v11 = vpop.f32.mrf.mxu2 }
  0xd3   : > { %1479 = vmatmul.bf16.gmra.mxu2 %v1367_v17  ;;  %v1861_v17 = vrot.slane %v1859_v39, 5  ;;  %v4955_v39 = vld [vmem:[%s5821_s29 + $0x7c] sm:$0xf] }
  0xd4   : > { %v1893_v9 = vshrl.u32 %v4955_v39, 16 }
  0xd5   : > { %v1862_v22 = vor.u32 %v1861_v17, %v1858_v57 }
  0xd7   : > { %2214 = vmatmul.bf16.gmra.mxu3 %v2102_v4  ;;  %v1157_v4 = vld [vmem:[%s5821_s29 + $0x60] sm:$0xe]  ;;  %v1863_v34 = vrot.slane %v1862_v22, 4 }
  0xd8   : > { %v6354_v27 = vpop.f32.mrf.mxu3  ;;  %v4880_v1 = vrot.slane %v1157_v4, 9  ;;  %v1882_v4 = vrot.slane %v1880_v54, 4 }
  0xd9   : > { %v6362_v40 = vpop.f32.mrf.mxu0  ;;  %v1868_v16 = vsel %vm5843_vm2, %v1863_v34, %v1867_v14 }
  0xda   : > { %v6375_v55 = vpop.f32.mrf.mxu2  ;;  %v2080_v14 = vunpack.c.l.b16 %v1868_v16  ;;  %v1886_v35 = vor.u32 %v1885_v19, %v1882_v4  ;;  %v5690_v16 = vld [vmem:[%s5821_s29 + $0x74] sm:$0x1] }
  0xdb   : > { %v6367_v46 = vpop.f32.mrf.mxu1  ;;  %v1268_v54 = vrot.slane %v5690_v16, 5  ;;  %v5628_v16 = vld [vmem:[%s7395_s1 + $0x210] sm:$0xff] }
  0xdc   : > { %2452 = vmatmul.bf16.gmra.mxu0 %v5561_v37  ;;  %v1259_v37 = vsel %vm6150_vm5, %v4880_v1, %v1258_v12  ;;  %v1895_v1 = vrot.slane %v1893_v9, 4 }
  0xdd   : > { %v1345_v57 = vunpack.c.l.b16 %v1259_v37  ;;  %4202 = vmatpush.bf16.msra.mxu0 %v5628_v16 }
  0xde   : > { %1103 = vmatmul.bf16.gmra.mxu1 %v5521_v41  ;;  %v1262_v41 = vsel %vm6150_vm5, %v1260_v38, %v1261_v31  ;;  %v5689_v38 = vld [vmem:[%s5821_s29 + $0x70] sm:$0xf]  ;;  %v4993_v31 = vld [vmem:[%s5821_s29 + $0x80] sm:$0x1] }
  0xdf   : > { %v1346_v17 = vunpack.c.l.b16 %v1262_v41  ;;  %v1265_v18 = vrot.slane %v5689_v38, 5  ;;  %v1899_v44 = vshll.u32 %v4993_v31, 16  ;;  %v5523_v31 = vld [vmem:[%s5821_s29 + $0x6c] sm:$0xff] }
  0xe0   : > { %v6379_v6 = vpop.f32.mrf.mxu3 }
  0xe1   : > { %v6384_v5 = vpop.f32.mrf.mxu0  ;;  %v1369_v22 = vpack.c.b16 %v1346_v17, %v1345_v57  ;;  %v4956_v57 = vld [vmem:[%s5821_s29 + $0x84] sm:$0xf]  ;;  %v1901_v9 = vrot.slane %v1899_v44, 5 }
  0xe3   : > { %1484 = vmatmul.bf16.gmra.mxu2 %v1368_v63  ;;  %v6386_v24 = vpop.f32.mrf.mxu1  ;;  %v1889_v63 = vshll.u32 %v4955_v39, 16 }
  0xe5   : > { %v1891_v59 = vrot.slane %v1889_v63, 5 }
  0xe6   : > { %v6389_v33 = vpop.f32.mrf.mxu2 }
  0xe7   : > { %2219 = vmatmul.bf16.gmra.mxu3 %v2103_v50  ;;  %v2081_v50 = vunpack.c.l.b16 %v1878_v7  ;;  %v1896_v42 = vor.u32 %v1895_v1, %v1891_v59  ;;  %v4957_v7 = vld [vmem:[%s5821_s29 + $0x88] sm:$0xf] }
  0xe9   : > { %v2418_v52 = vpop.f32.mrf.mxu0  ;;  %v2104_v37 = vpack.c.b16 %v2081_v50, %v2080_v14  ;;  %v1897_v63 = vrot.slane %v1896_v42, 4  ;;  %v5620_v14 = vld [vmem:[%s7395_s1 + $0x1d0] sm:$0xff]  ;;  %v1907_v50 = vshll.u32 %v4956_v57, 16 }
  0xea   : > { %v6398_v48 = vpop.f32.mrf.mxu3  ;;  %3591 = vmatpush.bf16.msra.mxu2 %v5620_v14 }
  0xeb   : > { %v1069_v62 = vpop.f32.mrf.mxu1 }
  0xec   : > { %v1070_v3 = vadd.f32 %v1069_v62, %v6252_v0  ;;  %2457 = vmatmul.bf16.gmra.mxu0 %v5562_v47  ;;  %v4881_v47 = vrot.slane %v1158_v25, 9  ;;  %v1887_v62 = vrot.slane %v1886_v35, 4  ;;  %v1913_v35 = vshll.u32 %v4957_v7, 16 }
  0xee   : > { %v6406_v12 = vpop.f32.mrf.mxu2  ;;  %1108 = vmatmul.bf16.gmra.mxu1 %v5522_v53  ;;  %v1267_v53 = vrot.slane %v1265_v18, 4  ;;  %v1266_v4 = vsel %vm6150_vm5, %v4881_v47, %v1265_v18  ;;  %v1892_v25 = vsel %vm5843_vm2, %v1887_v62, %v1891_v59  ;;  %v1902_v47 = vsel %vm5843_vm2, %v1897_v63, %v1901_v9 }
  0xef   : > { %v1347_v42 = vunpack.c.l.b16 %v1266_v4  ;;  %v2082_v62 = vunpack.c.l.b16 %v1892_v25  ;;  %v1915_v63 = vrot.slane %v1913_v35, 5 }
  0xf0   : > { %v1269_v19 = vsel %vm6150_vm5, %v1267_v53, %v1268_v54  ;;  %v5588_v53 = vld [vmem:[%s7395_s1 + $0x150] sm:$0xff]  ;;  %v1909_v54 = vrot.slane %v1907_v50, 5 }
  0xf1   : > { %v6413_v34 = vpop.f32.mrf.mxu0  ;;  %v1348_v44 = vunpack.c.l.b16 %v1269_v19  ;;  %2792 = vmatpush.bf16.msra.mxu1 %v5588_v53  ;;  %v1159_v19 = vld [vmem:[%s5821_s29 + $0x78] sm:$0xe] }
  0xf2   : > { %v6411_v0 = vpop.f32.mrf.mxu3  ;;  %v4882_v25 = vrot.slane %v1159_v19, 9  ;;  %v5524_v19 = vld [vmem:[%s5821_s29 + $0x78] sm:$0xff] }
  0xf3   : > { %1489 = vmatmul.bf16.gmra.mxu2 %v1369_v22  ;;  %v1071_v41 = vpop.f32.mrf.mxu1  ;;  %v5563_v22 = vld [vmem:[%s5821_s29 + $0x78] sm:$0xff]  ;;  %v1370_v14 = vpack.c.b16 %v1348_v44, %v1347_v42 }
  0xf4   : > { %v1072_v39 = vadd.f32 %v1071_v41, %v6268_v29  ;;  %v5612_v29 = vld [vmem:[%s7395_s1 + $0x190] sm:$0xff] }
  0xf5   : > { %3824 = vmatpush.bf16.msra.mxu3 %v5612_v29  ;;  %v5691_v29 = vld [vmem:[%s5821_s29 + $0x7c] sm:$0xf] }
  0xf6   : > { %v1450_v60 = vpop.f32.mrf.mxu2  ;;  %v1272_v4 = vrot.slane %v5691_v29, 5  ;;  %v5564_v29 = vld [vmem:[%s5821_s29 + $0x84] sm:$0xff] }
  0xf7   : > { %2224 = vmatmul.bf16.gmra.mxu3 %v2104_v37  ;;  %v6418_v17 = vadd.f32 %v1450_v60, %v1070_v3  ;;  %v1904_v3 = vshrl.u32 %v4956_v57, 16  ;;  %v1917_v37 = vshrl.u32 %v4957_v7, 16  ;;  %v2083_v57 = vunpack.c.l.b16 %v1902_v47 }
  0xf8   : > { %v1274_v35 = vrot.slane %v1272_v4, 4 }
  0xf9   : > { %v6432_v38 = vpop.f32.mrf.mxu0  ;;  %v1919_v9 = vrot.slane %v1917_v37, 4  ;;  %v5692_v37 = vld [vmem:[%s5821_s29 + $0x80] sm:$0x1] }
  0xfa   : > { %v2185_v1 = vpop.f32.mrf.mxu3  ;;  %v1275_v42 = vrot.slane %v5692_v37, 5 }
  0xfb   : > { %v6437_v41 = vadd.f32 %v2418_v52, %v2185_v1  ;;  %v1074_v18 = vpop.f32.mrf.mxu1  ;;  %v1906_v52 = vrot.slane %v1904_v3, 4  ;;  %v2105_v3 = vpack.c.b16 %v2083_v57, %v2082_v62  ;;  %v4958_v57 = vld [vmem:[%s5821_s29 + $0x90] sm:$0xf] }
  0xfc   : > { %v1075_v59 = vadd.f32 %v1074_v18, %v6296_v36  ;;  %2462 = vmatmul.bf16.gmra.mxu0 %v5563_v22  ;;  %v4994_v36 = vld [vmem:[%s5821_s29 + $0x8c] sm:$0x1]  ;;  %v1920_v18 = vor.u32 %v1919_v9, %v1915_v63  ;;  %v4959_v9 = vld [vmem:[%s5821_s29 + $0x94] sm:$0xf] }
  0xfd   : > { %v1910_v22 = vor.u32 %v1909_v54, %v1906_v52  ;;  %v1923_v53 = vshll.u32 %v4994_v36, 16 }
  0xfe   : > { %v1452_v60 = vpop.f32.mrf.mxu2  ;;  %1113 = vmatmul.bf16.gmra.mxu1 %v5523_v31  ;;  %v1921_v52 = vrot.slane %v1920_v18, 4 }
  0xff   : > { %v6448_v7 = vadd.f32 %v1452_v60, %v1072_v39  ;;  %v1911_v47 = vrot.slane %v1910_v22, 4  ;;  %v1276_v60 = vsel %vm6150_vm5, %v1274_v35, %v1275_v42  ;;  %v1925_v62 = vrot.slane %v1923_v53, 5 }
 0x101   : > { %v2425_v50 = vpop.f32.mrf.mxu0  ;;  %v1926_v53 = vsel %vm5843_vm2, %v1921_v52, %v1925_v62  ;;  %v4995_v62 = vld [vmem:[%s5821_s29 + $0x98] sm:$0x1] }
 0x102   : > { %v2187_v1 = vpop.f32.mrf.mxu3  ;;  %v2085_v42 = vunpack.c.l.b16 %v1926_v53  ;;  %v5694_v53 = vld [vmem:[%s5821_s29 + $0x8c] sm:$0x1] }
 0x103   : > { %v6454_v31 = vadd.f32 %v6413_v34, %v2187_v1  ;;  %1494 = vmatmul.bf16.gmra.mxu2 %v1370_v14  ;;  %v1076_v39 = vpop.f32.mrf.mxu1  ;;  %v1273_v34 = vsel %vm6150_vm5, %v4882_v25, %v1272_v4  ;;  %v1916_v14 = vsel %vm5843_vm2, %v1911_v47, %v1915_v63  ;;  %v1928_v1 = vshrl.u32 %v4958_v57, 16 }
 0x104   : > { %v1077_v44 = vadd.f32 %v1076_v39, %v6310_v23  ;;  %v1349_v22 = vunpack.c.l.b16 %v1273_v34  ;;  %v1937_v39 = vshll.u32 %v4959_v9, 16  ;;  %v1941_v63 = vshrl.u32 %v4959_v9, 16  ;;  %v1160_v9 = vld [vmem:[%s5821_s29 + $0x84] sm:$0xe] }
 0x105   : > { %v2084_v37 = vunpack.c.l.b16 %v1916_v14  ;;  %v1930_v47 = vrot.slane %v1928_v1, 4 }
 0x106   : > { %v1455_v16 = vpop.f32.mrf.mxu2 }
 0x107   : > { %2229 = vmatmul.bf16.gmra.mxu3 %v2105_v3  ;;  %v6458_v54 = vadd.f32 %v1455_v16, %v1075_v59  ;;  %v1350_v59 = vunpack.c.l.b16 %v1276_v60  ;;  %v1931_v3 = vshll.u32 %v4958_v57, 16  ;;  %v1939_v60 = vrot.slane %v1937_v39, 5 }
 0x108   : > { %v1943_v57 = vrot.slane %v1941_v63, 4  ;;  %v2106_v14 = vpack.c.b16 %v2085_v42, %v2084_v37  ;;  %v1282_v39 = vrot.slane %v5694_v53, 5  ;;  %v4961_v42 = vld [vmem:[%s5821_s29 + $0xa0] sm:$0xf] }
 0x109   : > { %7403 = vst [vmem:[#allocation3_spill] sm:$0xff] %v6458_v54  ;;  %v6469_v36 = vpop.f32.mrf.mxu0  ;;  %v1933_v16 = vrot.slane %v1931_v3, 5  ;;  %v1371_v34 = vpack.c.b16 %v1350_v59, %v1349_v22  ;;  %v1947_v22 = vshll.u32 %v4995_v62, 16  ;;  %v4883_v3 = vrot.slane %v1160_v9, 9 }
 0x10a   : > { %v2190_v23 = vpop.f32.mrf.mxu3  ;;  %v1944_v1 = vor.u32 %v1943_v57, %v1939_v60  ;;  %v5565_v57 = vld [vmem:[%s5821_s29 + $0x90] sm:$0xff] }
 0x10b   : > { %v6473_v4 = vadd.f32 %v6432_v38, %v2190_v23  ;;  %v1079_v18 = vpop.f32.mrf.mxu1  ;;  %v5693_v23 = vld [vmem:[%s5821_s29 + $0x88] sm:$0xf]  ;;  %v1949_v37 = vrot.slane %v1947_v22, 5  ;;  %v1965_v22 = vshrl.u32 %v4961_v42, 16 }
 0x10c   : > { %v1080_v25 = vadd.f32 %v1079_v18, %v6326_v45  ;;  %2467 = vmatmul.bf16.gmra.mxu0 %v5564_v29  ;;  %v1279_v52 = vrot.slane %v5693_v23, 5  ;;  %v1934_v29 = vor.u32 %v1933_v16, %v1930_v47  ;;  %v4960_v23 = vld [vmem:[%s5821_s29 + $0x9c] sm:$0xf]  ;;  %v5619_v47 = vld [vmem:[%s7395_s1 + $0x1c8] sm:$0xff] }
 0x10d   : > { %v1955_v62 = vshll.u32 %v4960_v23, 16  ;;  %3592 = vmatpush.bf16.msra.mxu2 %v5619_v47 }
 0x10e   : > { %v1457_v35 = vpop.f32.mrf.mxu2  ;;  %1118 = vmatmul.bf16.gmra.mxu1 %v5524_v19  ;;  %v1281_v18 = vrot.slane %v1279_v52, 4  ;;  %v1280_v16 = vsel %vm6150_vm5, %v4883_v3, %v1279_v52 }
 0x10f   : > { %v6478_v38 = vadd.f32 %v1457_v35, %v1077_v44  ;;  %v1935_v35 = vrot.slane %v1934_v29, 4  ;;  %v1351_v3 = vunpack.c.l.b16 %v1280_v16 }
 0x111   : > { %7404 = vst [vmem:[#allocation4_spill] sm:$0xff] %v6478_v38  ;;  %v6483_v45 = vpop.f32.mrf.mxu0 }
 0x112   : > { %v2192_v54 = vpop.f32.mrf.mxu3 }
 0x113   : > { %v6485_v19 = vadd.f32 %v2425_v50, %v2192_v54  ;;  %1499 = vmatmul.bf16.gmra.mxu2 %v1371_v34  ;;  %v1081_v44 = vpop.f32.mrf.mxu1  ;;  %v1945_v54 = vrot.slane %v1944_v1, 4  ;;  %v1283_v34 = vsel %vm6150_vm5, %v1281_v18, %v1282_v39  ;;  %v1961_v1 = vshll.u32 %v4961_v42, 16 }
 0x114   : > { %v1082_v59 = vadd.f32 %v1081_v44, %v6342_v21  ;;  %v5611_v21 = vld [vmem:[%s7395_s1 + $0x188] sm:$0xff]  ;;  %v1940_v44 = vsel %vm5843_vm2, %v1935_v35, %v1939_v60  ;;  %v1352_v18 = vunpack.c.l.b16 %v1283_v34 }
 0x115   : > { %3825 = vmatpush.bf16.msra.mxu3 %v5611_v21  ;;  %v1950_v39 = vsel %vm5843_vm2, %v1945_v54, %v1949_v37  ;;  %v5627_v60 = vld [vmem:[%s7395_s1 + $0x208] sm:$0xff]  ;;  %v2086_v54 = vunpack.c.l.b16 %v1940_v44  ;;  %v1963_v47 = vrot.slane %v1961_v1, 5  ;;  %v1967_v21 = vrot.slane %v1965_v22, 4  ;;  %v5696_v22 = vld [vmem:[%s5821_s29 + $0x98] sm:$0x1] }
 0x116   : > { %v1460_v63 = vpop.f32.mrf.mxu2  ;;  %v2087_v37 = vunpack.c.l.b16 %v1950_v39  ;;  %4203 = vmatpush.bf16.msra.mxu0 %v5627_v60  ;;  %v1372_v34 = vpack.c.b16 %v1352_v18, %v1351_v3  ;;  %v1289_v3 = vrot.slane %v5696_v22, 5 }
 0x117   : > { %2234 = vmatmul.bf16.gmra.mxu3 %v2106_v14  ;;  %v6490_v50 = vadd.f32 %v1460_v63, %v1080_v25  ;;  %v1952_v25 = vshrl.u32 %v4960_v23, 16  ;;  %v5525_v14 = vld [vmem:[%s5821_s29 + $0x84] sm:$0xff]  ;;  %v1957_v23 = vrot.slane %v1955_v62, 5 }
 0x118   : > { %v5587_v63 = vld [vmem:[%s7395_s1 + $0x148] sm:$0xff] }
 0x119   : > { %7405 = vst [vmem:[#allocation5_spill] sm:$0xff] %v6490_v50  ;;  %v6504_v29 = vpop.f32.mrf.mxu0  ;;  %2793 = vmatpush.bf16.msra.mxu1 %v5587_v63  ;;  %v1968_v63 = vor.u32 %v1967_v21, %v1963_v47 }
 0x11a   : > { %v2195_v9 = vpop.f32.mrf.mxu3 }
 0x11b   : > { %v6510_v53 = vadd.f32 %v6469_v36, %v2195_v9  ;;  %v1084_v52 = vpop.f32.mrf.mxu1  ;;  %v1954_v36 = vrot.slane %v1952_v25, 4  ;;  %v5695_v9 = vld [vmem:[%s5821_s29 + $0x94] sm:$0xf]  ;;  %v2107_v25 = vpack.c.b16 %v2087_v37, %v2086_v54  ;;  %v4962_v54 = vld [vmem:[%s5821_s29 + $0xa8] sm:$0xf] }
 0x11c   : > { %v1085_v35 = vadd.f32 %v1084_v52, %v6362_v40  ;;  %2472 = vmatmul.bf16.gmra.mxu0 %v5565_v57  ;;  %v1286_v50 = vrot.slane %v5695_v9, 5  ;;  %v4996_v40 = vld [vmem:[%s5821_s29 + $0xa4] sm:$0x1]  ;;  %v1161_v52 = vld [vmem:[%s5821_s29 + $0x90] sm:$0xe] }
 0x11d   : > { %7406 = vst [vmem:[#allocation6_spill] sm:$0xff] %v6510_v53  ;;  %v1958_v57 = vor.u32 %v1957_v23, %v1954_v36  ;;  %v1971_v38 = vshll.u32 %v4996_v40, 16  ;;  %v4884_v44 = vrot.slane %v1161_v52, 9  ;;  %v1969_v36 = vrot.slane %v1968_v63, 4  ;;  %v4963_v37 = vld [vmem:[%s5821_s29 + $0xac] sm:$0xf] }
 0x11e   : > { %v1462_v42 = vpop.f32.mrf.mxu2  ;;  %1123 = vmatmul.bf16.gmra.mxu1 %v5525_v14  ;;  %v1288_v1 = vrot.slane %v1286_v50, 4  ;;  %v5526_v40 = vld [vmem:[%s5821_s29 + $0x90] sm:$0xff]  ;;  %v1979_v63 = vshll.u32 %v4962_v54, 16 }
 0x11f   : > { %v6521_v16 = vadd.f32 %v1462_v42, %v1082_v59  ;;  %v1959_v39 = vrot.slane %v1958_v57, 4  ;;  %v1973_v23 = vrot.slane %v1971_v38, 5  ;;  %v1976_v57 = vshrl.u32 %v4962_v54, 16  ;;  %v4997_v54 = vld [vmem:[%s5821_s29 + $0xb0] sm:$0x1] }
 0x121   : > { %v2435_v62 = vpop.f32.mrf.mxu0  ;;  %v1964_v21 = vsel %vm5843_vm2, %v1959_v39, %v1963_v47  ;;  %v1989_v47 = vshrl.u32 %v4963_v37, 16  ;;  %v1978_v39 = vrot.slane %v1976_v57, 4 }
 0x122   : > { %v2197_v53 = vpop.f32.mrf.mxu3  ;;  %v2088_v22 = vunpack.c.l.b16 %v1964_v21 }
 0x123   : > { %v6527_v14 = vadd.f32 %v6483_v45, %v2197_v53  ;;  %1504 = vmatmul.bf16.gmra.mxu2 %v1372_v34  ;;  %v1086_v59 = vpop.f32.mrf.mxu1  ;;  %v1287_v45 = vsel %vm6150_vm5, %v4884_v44, %v1286_v50  ;;  %v1290_v53 = vsel %vm6150_vm5, %v1288_v1, %v1289_v3  ;;  %v5566_v34 = vld [vmem:[%s5821_s29 + $0x9c] sm:$0xff] }
 0x124   : > { %v1087_v18 = vadd.f32 %v1086_v59, %v6384_v5  ;;  %v1353_v52 = vunpack.c.l.b16 %v1287_v45  ;;  %v1354_v38 = vunpack.c.l.b16 %v1290_v53  ;;  %v1985_v59 = vshll.u32 %v4963_v37, 16  ;;  %v5697_v45 = vld [vmem:[%s5821_s29 + $0xa0] sm:$0xf] }
 0x125   : > { %v1293_v53 = vrot.slane %v5697_v45, 5  ;;  %v4964_v45 = vld [vmem:[%s5821_s29 + $0xb4] sm:$0xf] }
 0x126   : > { %v1465_v60 = vpop.f32.mrf.mxu2  ;;  %v1373_v1 = vpack.c.b16 %v1354_v38, %v1353_v52 }
 0x127   : > { %2239 = vmatmul.bf16.gmra.mxu3 %v2107_v25  ;;  %v6531_v42 = vadd.f32 %v1465_v60, %v1085_v35  ;;  %v1974_v35 = vsel %vm5843_vm2, %v1969_v36, %v1973_v23  ;;  %v1981_v36 = vrot.slane %v1979_v63, 5  ;;  %v6550_v23 = vrot.slane %v1985_v59, 5  ;;  %v5698_v59 = vld [vmem:[%s5821_s29 + $0xa4] sm:$0x1] }
 0x128   : > { %v2089_v3 = vunpack.c.l.b16 %v1974_v35  ;;  %v1995_v35 = vshll.u32 %v4997_v54, 16  ;;  %v1295_v63 = vrot.slane %v1293_v53, 4  ;;  %v2003_v54 = vshll.u32 %v4964_v45, 16 }
 0x129   : > { %v2438_v9 = vpop.f32.mrf.mxu0  ;;  %v1982_v52 = vor.u32 %v1981_v36, %v1978_v39  ;;  %v5618_v36 = vld [vmem:[%s7395_s1 + $0x1c0] sm:$0xff] }
 0x12a   : > { %v2200_v5 = vpop.f32.mrf.mxu3  ;;  %v1997_v39 = vrot.slane %v1995_v35, 5  ;;  %3593 = vmatpush.bf16.msra.mxu2 %v5618_v36  ;;  %v5527_v35 = vld [vmem:[%s5821_s29 + $0x9c] sm:$0xff] }
 0x12b   : > { %v6546_v50 = vadd.f32 %v6504_v29, %v2200_v5  ;;  %v1089_v25 = vpop.f32.mrf.mxu1  ;;  %v1991_v29 = vrot.slane %v1989_v47, 4  ;;  %v1162_v5 = vld [vmem:[%s5821_s29 + $0x9c] sm:$0xe]  ;;  %v1296_v47 = vrot.slane %v5698_v59, 5 }
 0x12c   : > { %2477 = vmatmul.bf16.gmra.mxu0 %v5566_v34  ;;  %v2108_v34 = vpack.c.b16 %v2089_v3, %v2088_v22  ;;  %v4885_v57 = vrot.slane %v1162_v5, 9  ;;  %v4965_v22 = vld [vmem:[%s5821_s29 + $0xb8] sm:$0xf]  ;;  %v5567_v5 = vld [vmem:[%s5821_s29 + $0xa8] sm:$0xff] }
 0x12d   : > { %v1992_v38 = vor.u32 %v1991_v29, %v6550_v23  ;;  %v5610_v29 = vld [vmem:[%s7395_s1 + $0x180] sm:$0xff] }
 0x12e   : > { %v1467_v44 = vpop.f32.mrf.mxu2  ;;  %1128 = vmatmul.bf16.gmra.mxu1 %v5526_v40  ;;  %3826 = vmatpush.bf16.msra.mxu3 %v5610_v29 }
 0x12f   : > { %v6548_v60 = vadd.f32 %v1467_v44, %v1087_v18  ;;  %v1090_v44 = vadd.f32 %v1089_v25, %v6254_v2  ;;  %v1294_v2 = vsel %vm6150_vm5, %v4885_v57, %v1293_v53  ;;  %v1297_v25 = vsel %vm6150_vm5, %v1295_v63, %v1296_v47  ;;  %v5586_v57 = vld [vmem:[%s7395_s1 + $0x140] sm:$0xff] }
 0x130   : > { %v1356_v53 = vunpack.c.l.b16 %v1297_v25  ;;  %v5626_v63 = vld [vmem:[%s7395_s1 + $0x200] sm:$0xff]  ;;  %2794 = vmatpush.bf16.msra.mxu1 %v5586_v57 }
 0x131   : > { %7407 = vst [vmem:[#allocation7_spill] sm:$0xff] %v6548_v60  ;;  %v6555_v40 = vpop.f32.mrf.mxu0  ;;  %4204 = vmatpush.bf16.msra.mxu0 %v5626_v63  ;;  %v5700_v63 = vld [vmem:[%s5821_s29 + $0xb0] sm:$0x1] }
 0x132   : > { %v2202_v37 = vpop.f32.mrf.mxu3 }
 0x133   : > { %v6557_v21 = vadd.f32 %v2435_v62, %v2202_v37  ;;  %1509 = vmatmul.bf16.gmra.mxu2 %v1373_v1  ;;  %v1091_v18 = vpop.f32.mrf.mxu1  ;;  %v1983_v62 = vrot.slane %v1982_v52, 4  ;;  %v1993_v1 = vrot.slane %v1992_v38, 4  ;;  %v2009_v37 = vshll.u32 %v4965_v22, 16 }
 0x134   : > { %v1092_v36 = vadd.f32 %v1091_v18, %v6270_v32 }
 0x135   : > { %7408 = vst [vmem:[#allocation8_spill] sm:$0xff] %v6557_v21  ;;  %v1988_v47 = vsel %vm5843_vm2, %v1983_v62, %v6550_v23  ;;  %v2011_v29 = vrot.slane %v2009_v37, 5  ;;  %v1163_v21 = vld [vmem:[%s5821_s29 + $0xa8] sm:$0xe] }
 0x136   : > { %v1470_v60 = vpop.f32.mrf.mxu2  ;;  %v2090_v62 = vunpack.c.l.b16 %v1988_v47  ;;  %v1303_v47 = vrot.slane %v5700_v63, 5 }
 0x137   : > { %2244 = vmatmul.bf16.gmra.mxu3 %v2108_v34  ;;  %v6564_v3 = vadd.f32 %v1470_v60, %v1090_v44  ;;  %v2000_v60 = vshrl.u32 %v4964_v45, 16  ;;  %v2013_v34 = vshrl.u32 %v4965_v22, 16  ;;  %v2005_v22 = vrot.slane %v2003_v54, 5 }
 0x139   : > { %7409 = vst [vmem:[#allocation9_spill] sm:$0xff] %v6564_v3  ;;  %v6577_v38 = vpop.f32.mrf.mxu0  ;;  %v1355_v3 = vunpack.c.l.b16 %v1294_v2  ;;  %v2002_v45 = vrot.slane %v2000_v60, 4  ;;  %v2015_v2 = vrot.slane %v2013_v34, 4 }
 0x13a   : > { %v2205_v52 = vpop.f32.mrf.mxu3 }
 0x13b   : > { %v6580_v59 = vadd.f32 %v2438_v9, %v2205_v52  ;;  %v1094_v44 = vpop.f32.mrf.mxu1  ;;  %v1998_v9 = vsel %vm5843_vm2, %v1993_v1, %v1997_v39  ;;  %v4998_v52 = vld [vmem:[%s5821_s29 + $0xbc] sm:$0x1]  ;;  %v1374_v23 = vpack.c.b16 %v1356_v53, %v1355_v3  ;;  %v5699_v39 = vld [vmem:[%s5821_s29 + $0xac] sm:$0xf]  ;;  %v2006_v54 = vor.u32 %v2005_v22, %v2002_v45 }
 0x13c   : > { %2482 = vmatmul.bf16.gmra.mxu0 %v5567_v5  ;;  %v2091_v1 = vunpack.c.l.b16 %v1998_v9  ;;  %v1300_v60 = vrot.slane %v5699_v39, 5  ;;  %v2016_v32 = vor.u32 %v2015_v2, %v2011_v29  ;;  %v2019_v18 = vshll.u32 %v4998_v52, 16  ;;  %v4966_v2 = vld [vmem:[%s5821_s29 + $0xc0] sm:$0xf]  ;;  %v4967_v52 = vld [vmem:[%s5821_s29 + $0xc4] sm:$0xf] }
 0x13d   : > { %7410 = vst [vmem:[#allocation10_spill] sm:$0xff] %v6580_v59  ;;  %v4886_v53 = vrot.slane %v1163_v21, 9  ;;  %v2007_v9 = vrot.slane %v2006_v54, 4  ;;  %v1095_v45 = vadd.f32 %v1094_v44, %v6299_v61  ;;  %v2024_v61 = vshrl.u32 %v4966_v2, 16 }
 0x13e   : > { %v1472_v25 = vpop.f32.mrf.mxu2  ;;  %1133 = vmatmul.bf16.gmra.mxu1 %v5527_v35  ;;  %v2109_v35 = vpack.c.b16 %v2091_v1, %v2090_v62  ;;  %v1302_v57 = vrot.slane %v1300_v60, 4  ;;  %v2017_v22 = vrot.slane %v2016_v32, 4  ;;  %v5568_v1 = vld [vmem:[%s5821_s29 + $0xb4] sm:$0xff]  ;;  %v2027_v39 = vshll.u32 %v4966_v2, 16 }
 0x13f   : > { %v6595_v59 = vadd.f32 %v1472_v25, %v1092_v36  ;;  %v2021_v36 = vrot.slane %v2019_v18, 5  ;;  %v1301_v21 = vsel %vm6150_vm5, %v4886_v53, %v1300_v60  ;;  %v2012_v62 = vsel %vm5843_vm2, %v2007_v9, %v2011_v29  ;;  %v5701_v18 = vld [vmem:[%s5821_s29 + $0x10] sm:$0xf]  ;;  %v5528_v60 = vld [vmem:[%s5821_s29 + $0xa8] sm:$0xff] }
 0x140   : > { %v2033_v54 = vshll.u32 %v4967_v52, 16  ;;  %v2037_v32 = vshrl.u32 %v4967_v52, 16  ;;  %v1357_v29 = vunpack.c.l.b16 %v1301_v21  ;;  %v2092_v9 = vunpack.c.l.b16 %v2012_v62  ;;  %v5703_v21 = vld [vmem:[%s5821_s29 + $0xb8] sm:$0xf] }
 0x141   : > { %7411 = vst [vmem:[#allocation11_spill] sm:$0xff] %v6595_v59  ;;  %v6599_v37 = vpop.f32.mrf.mxu0  ;;  %v2022_v44 = vsel %vm5843_vm2, %v2017_v22, %v2021_v36  ;;  %v2026_v22 = vrot.slane %v2024_v61, 4  ;;  %v2029_v2 = vrot.slane %v2027_v39, 5 }
 0x142   : > { %v2207_v5 = vpop.f32.mrf.mxu3  ;;  %v2039_v52 = vrot.slane %v2037_v32, 4 }
 0x143   : > { %v6602_v34 = vadd.f32 %v6555_v40, %v2207_v5  ;;  %1514 = vmatmul.bf16.gmra.mxu2 %v1374_v23  ;;  %v1096_v3 = vpop.f32.mrf.mxu1  ;;  %v1304_v23 = vsel %vm6150_vm5, %v1302_v57, %v1303_v47  ;;  %v2548_v5 = vrot.slane %v5701_v18, 5  ;;  %v2030_v39 = vor.u32 %v2029_v2, %v2026_v22  ;;  %v5224_v2 = vld [vmem:[%s5821_s29 + $0x18] sm:$0xf] }
 0x144   : > { %v1358_v47 = vunpack.c.l.b16 %v1304_v23  ;;  %v1097_v36 = vadd.f32 %v1096_v3, %v6312_v51  ;;  %v1307_v23 = vrot.slane %v5703_v21, 5  ;;  %v5144_v51 = vld [vmem:[%s5821_s29 + $0xc] sm:$0xe] }
 0x145   : > { %v2550_v18 = vrot.slane %v2548_v5, 4  ;;  %v5160_v3 = vrot.slane %v5144_v51, 9  ;;  %v5225_v51 = vld [vmem:[%s5821_s29 + $0x1c] sm:$0xf] }
 0x146   : > { %v1475_v25 = vpop.f32.mrf.mxu2  ;;  %v1375_v61 = vpack.c.b16 %v1358_v47, %v1357_v29  ;;  %v1309_v21 = vrot.slane %v1307_v23, 4 }
 0x147   : > { %2249 = vmatmul.bf16.gmra.mxu3 %v2109_v35  ;;  %v6608_v40 = vadd.f32 %v1475_v25, %v1095_v45  ;;  %v2093_v45 = vunpack.c.l.b16 %v2022_v44  ;;  %v6627_v25 = vrot.slane %v2033_v54, 5  ;;  %v1164_v44 = vld [vmem:[%s5821_s29 + $0xb4] sm:$0xe] }
 0x149   : > { %7412 = vst [vmem:[#allocation12_spill] sm:$0xff] %v6608_v40  ;;  %v6620_v63 = vpop.f32.mrf.mxu0  ;;  %v2040_v54 = vor.u32 %v2039_v52, %v6627_v25 }
 0x14a   : > { %v2210_v35 = vpop.f32.mrf.mxu3 }
 0x14b   : > { %v6624_v53 = vadd.f32 %v6577_v38, %v2210_v35  ;;  %v1099_v57 = vpop.f32.mrf.mxu1  ;;  %v5702_v38 = vld [vmem:[%s5821_s29 + $0x14] sm:$0x1] }
 0x14c   : > { %2487 = vmatmul.bf16.gmra.mxu0 %v5568_v1  ;;  %v2551_v35 = vrot.slane %v5702_v38, 5  ;;  %v2110_v1 = vpack.c.b16 %v2093_v45, %v2092_v9  ;;  %v5704_v45 = vld [vmem:[%s5821_s29 + $0xbc] sm:$0x1]  ;;  %v1100_v52 = vadd.f32 %v1099_v57, %v6329_v49  ;;  %v3077_v49 = vshll.u32 %v5224_v2, 16 }
 0x14d   : > { %7413 = vst [vmem:[#allocation13_spill] sm:$0xff] %v6624_v53  ;;  %v4999_v53 = vld [vmem:[%s5821_s29 + $0xc8] sm:$0x1]  ;;  %v1310_v22 = vrot.slane %v5704_v45, 5  ;;  %v3083_v57 = vshll.u32 %v5225_v51, 16  ;;  %v5569_v45 = vld [vmem:[%s5821_s29 + $0xc0] sm:$0xff] }
 0x14e   : > { %v1477_v40 = vpop.f32.mrf.mxu2  ;;  %1138 = vmatmul.bf16.gmra.mxu1 %v5528_v60  ;;  %v2043_v32 = vshll.u32 %v4999_v53, 16  ;;  %v4887_v60 = vrot.slane %v1164_v44, 9  ;;  %v2552_v29 = vsel %vm6150_vm5, %v2550_v18, %v2551_v35 }
 0x14f   : > { %v6632_v62 = vadd.f32 %v1477_v40, %v1097_v36  ;;  %v2549_v40 = vsel %vm6150_vm5, %v5160_v3, %v2548_v5  ;;  %v2676_v36 = vunpack.c.l.b16 %v2552_v29  ;;  %v1311_v3 = vsel %vm6150_vm5, %v1309_v21, %v1310_v22 }
 0x150   : > { %v2675_v53 = vunpack.c.l.b16 %v2549_v40  ;;  %v1308_v18 = vsel %vm6150_vm5, %v4887_v60, %v1307_v23  ;;  %v2045_v35 = vrot.slane %v2043_v32, 5  ;;  %v3074_v40 = vshrl.u32 %v5224_v2, 16  ;;  %v5529_v23 = vld [vmem:[%s5821_s29 + $0xb4] sm:$0xff] }
 0x151   : > { %7414 = vst [vmem:[#allocation14_spill] sm:$0xff] %v6632_v62  ;;  %v6637_v38 = vpop.f32.mrf.mxu0  ;;  %v3087_v29 = vshrl.u32 %v5225_v51, 16  ;;  %v5432_v32 = vld [vmem:[%s5821_s29 + $0x18] sm:$0xe]  ;;  %v3958_v60 = vrot.slane %v5225_v51, 5  ;;  %v3085_v62 = vrot.slane %v3083_v57, 5 }
 0x152   : > { %v2212_v59 = vpop.f32.mrf.mxu3  ;;  %v6649_v44 = vpack.c.b16 %v2676_v36, %v2675_v53 }
 0x153   : > { %v6644_v47 = vadd.f32 %v6599_v37, %v2212_v59  ;;  %1519 = vmatmul.bf16.gmra.mxu2 %v1375_v61  ;;  %v1101_v9 = vpop.f32.mrf.mxu1  ;;  %v2031_v59 = vrot.slane %v2030_v39, 4  ;;  %v2041_v37 = vrot.slane %v2040_v54, 4  ;;  %v1359_v39 = vunpack.c.l.b16 %v1308_v18 }
 0x154   : > { %v1360_v54 = vunpack.c.l.b16 %v1311_v3  ;;  %v1102_v18 = vadd.f32 %v1101_v9, %v6344_v15  ;;  %v5448_v3 = vrot.slane %v5432_v32, 9 }
 0x155   : > { %7415 = vst [vmem:[#allocation15_spill] sm:$0xff] %v6644_v47  ;;  %v2046_v2 = vsel %vm5843_vm2, %v2041_v37, %v2045_v35  ;;  %v3089_v47 = vrot.slane %v3087_v29, 4  ;;  %v5226_v29 = vld [vmem:[%s5821_s29 + $0x24] sm:$0xf] }
 0x156   : > { %v1480_v5 = vpop.f32.mrf.mxu2  ;;  %v1376_v37 = vpack.c.b16 %v1360_v54, %v1359_v39  ;;  %v3959_v57 = vsel %vm6150_vm5, %v5448_v3, %v3958_v60 }
 0x157   : > { %2254 = vmatmul.bf16.gmra.mxu3 %v2110_v1  ;;  %v6654_v61 = vadd.f32 %v1480_v5, %v1100_v52  ;;  %v2036_v1 = vsel %vm5843_vm2, %v2031_v59, %v6627_v25  ;;  %v3076_v52 = vrot.slane %v3074_v40, 4  ;;  %v3079_v5 = vrot.slane %v3077_v49, 5 }
 0x158   : > { %v2094_v51 = vunpack.c.l.b16 %v2036_v1  ;;  %v3960_v59 = vrot.slane %v3958_v60, 4  ;;  %v3090_v49 = vor.u32 %v3089_v47, %v3085_v62  ;;  %v3101_v60 = vshll.u32 %v5226_v29, 16 }
 0x159   : > { %7416 = vst [vmem:[#allocation16_spill] sm:$0xff] %v6654_v61  ;;  %v6659_v36 = vpop.f32.mrf.mxu0  ;;  %v5272_v61 = vld [vmem:[%s5821_s29 + $0x20] sm:$0x1]  ;;  %v3080_v35 = vor.u32 %v3079_v5, %v3076_v52  ;;  %v3098_v52 = vshrl.u32 %v5226_v29, 16 }
 0x15a   : > { %v2215_v53 = vpop.f32.mrf.mxu3  ;;  %v3093_v40 = vshll.u32 %v5272_v61, 16  ;;  %v3091_v47 = vrot.slane %v3090_v49, 4 }
 0x15b   : > { %v6667_v21 = vadd.f32 %v6620_v63, %v2215_v53  ;;  %v1104_v22 = vpop.f32.mrf.mxu1  ;;  %v2095_v63 = vunpack.c.l.b16 %v2046_v2  ;;  %v3961_v53 = vrot.slane %v5272_v61, 5  ;;  %v3081_v54 = vrot.slane %v3080_v35, 4 }
 0x15c   : > { %2492 = vmatmul.bf16.gmra.mxu0 %v5569_v45  ;;  %v3095_v61 = vrot.slane %v3093_v40, 5  ;;  %v4085_v2 = vunpack.c.l.b16 %v3959_v57  ;;  %v1105_v5 = vadd.f32 %v1104_v22, %v6367_v46  ;;  %v5273_v57 = vld [vmem:[%s5821_s29 + $0x2c] sm:$0x1] }
 0x15d   : > { %7417 = vst [vmem:[#allocation17_spill] sm:$0xff] %v6667_v21  ;;  %v3962_v45 = vsel %vm6150_vm5, %v3960_v59, %v3961_v53  ;;  %v2111_v32 = vpack.c.b16 %v2095_v63, %v2094_v51  ;;  %v3100_v63 = vrot.slane %v3098_v52, 4 }
 0x15e   : > { %v1482_v25 = vpop.f32.mrf.mxu2  ;;  %1143 = vmatmul.bf16.gmra.mxu1 %v5529_v23  ;;  %v5227_v23 = vld [vmem:[%s5821_s29 + $0x28] sm:$0xf]  ;;  %v3096_v51 = vsel %vm5843_vm2, %v3091_v47, %v3095_v61  ;;  %v5433_v47 = vld [vmem:[%s5821_s29 + $0x24] sm:$0xe] }
 0x15f   : > { %v6673_v21 = vadd.f32 %v1482_v25, %v1102_v18  ;;  %v4086_v18 = vunpack.c.l.b16 %v3962_v45  ;;  %v3107_v3 = vshll.u32 %v5227_v23, 16  ;;  %v3111_v25 = vshrl.u32 %v5227_v23, 16 }
 0x160   : > { %v3965_v29 = vrot.slane %v5227_v23, 5 }
 0x161   : > { %v6678_v9 = vpop.f32.mrf.mxu0  ;;  %v4117_v46 = vpack.c.b16 %v4086_v18, %v4085_v2  ;;  %v3109_v22 = vrot.slane %v3107_v3, 5  ;;  %v3113_v35 = vrot.slane %v3111_v25, 4  ;;  %v3117_v18 = vshll.u32 %v5273_v57, 16 }
 0x162   : > { %v2217_v15 = vpop.f32.mrf.mxu3  ;;  %v3967_v25 = vrot.slane %v3965_v29, 4 }
 0x163   : > { %v6684_v1 = vadd.f32 %v6637_v38, %v2217_v15  ;;  %1524 = vmatmul.bf16.gmra.mxu2 %v1376_v37  ;;  %v1106_v39 = vpop.f32.mrf.mxu1  ;;  %v3086_v38 = vsel %vm5843_vm2, %v3081_v54, %v3085_v62  ;;  %v3103_v37 = vrot.slane %v3101_v60, 5  ;;  %v5145_v54 = vld [vmem:[%s5821_s29 + $0x18] sm:$0xe]  ;;  %v3114_v60 = vor.u32 %v3113_v35, %v3109_v22 }
 0x164   : > { %v3474_v62 = vunpack.c.l.b16 %v3086_v38  ;;  %v1107_v2 = vadd.f32 %v1106_v39, %v6386_v24  ;;  %v5161_v23 = vrot.slane %v5145_v54, 9  ;;  %v3119_v35 = vrot.slane %v3117_v18, 5  ;;  %v5594_v54 = vld [vmem:[%s5821_s29 + $0x18] sm:$0xff] }
 0x165   : > { %v3104_v52 = vor.u32 %v3103_v37, %v3100_v63  ;;  %v3115_v24 = vrot.slane %v3114_v60, 4 }
 0x166   : > { %v1485_v59 = vpop.f32.mrf.mxu2 }
 0x167   : > { %2259 = vmatmul.bf16.gmra.mxu3 %v2111_v32  ;;  %v6687_v53 = vadd.f32 %v1485_v59, %v1105_v5  ;;  %v3475_v32 = vunpack.c.l.b16 %v3096_v51  ;;  %v5705_v5 = vld [vmem:[%s5821_s29 + $0x1c] sm:$0xf]  ;;  %v3968_v59 = vrot.slane %v5273_v57, 5  ;;  %v3105_v37 = vrot.slane %v3104_v52, 4 }
 0x168   : > { %v2555_v61 = vrot.slane %v5705_v5, 5  ;;  %v5706_v5 = vld [vmem:[%s5821_s29 + $0x20] sm:$0x1] }
 0x169   : > { %v6693_v49 = vpop.f32.mrf.mxu0  ;;  %v3506_v51 = vpack.c.b16 %v3475_v32, %v3474_v62  ;;  %v2558_v63 = vrot.slane %v5706_v5, 5  ;;  %v3969_v62 = vsel %vm6150_vm5, %v3967_v25, %v3968_v59 }
 0x16a   : > { %v2220_v40 = vpop.f32.mrf.mxu3 }
 0x16b   : > { %v6697_v15 = vadd.f32 %v6659_v36, %v2220_v40  ;;  %v1109_v45 = vpop.f32.mrf.mxu1  ;;  %v5449_v36 = vrot.slane %v5433_v47, 9  ;;  %v2557_v40 = vrot.slane %v2555_v61, 4 }
 0x16c   : > { %4205 = vmatmul.bf16.vlgmr.msra.gmra.mxu0 %v4117_v46  ;;  %v1110_v60 = vadd.f32 %v1109_v45, %v6263_v26 }
 0x16d   : > { %v3966_v57 = vsel %vm6150_vm5, %v5449_v36, %v3965_v29  ;;  %v2559_v52 = vsel %vm6150_vm5, %v2557_v40, %v2558_v63 }
 0x16e   : > { %v1487_v3 = vpop.f32.mrf.mxu2  ;;  %2795 = vmatmul.bf16.vlgmr.msra.gmra.mxu1 %v6649_v44  ;;  %v2556_v44 = vsel %vm6150_vm5, %v5161_v23, %v2555_v61  ;;  %v3110_v61 = vsel %vm5843_vm2, %v3105_v37, %v3109_v22  ;;  %v4087_v29 = vunpack.c.l.b16 %v3966_v57  ;;  %v5229_v23 = vld [vmem:[%s5821_s29 + $0x34] sm:$0xf]  ;;  %v2678_v25 = vunpack.c.l.b16 %v2559_v52  ;;  %v5707_v52 = vld [vmem:[%s5821_s29 + $0x28] sm:$0xf] }
 0x16f   : > { %v6704_v38 = vadd.f32 %v1487_v3, %v1107_v2  ;;  %v5228_v2 = vld [vmem:[%s5821_s29 + $0x30] sm:$0xf]  ;;  %v2677_v18 = vunpack.c.l.b16 %v2556_v44  ;;  %v4088_v3 = vunpack.c.l.b16 %v3969_v62  ;;  %v3131_v5 = vshll.u32 %v5229_v23, 16 }
 0x170   : > { %v3122_v59 = vshrl.u32 %v5228_v2, 16  ;;  %v3135_v22 = vshrl.u32 %v5229_v23, 16  ;;  %v3476_v26 = vunpack.c.l.b16 %v3110_v61 }
 0x171   : > { %7418 = vst [vmem:[#allocation18_spill] sm:$0xff] %v6704_v38  ;;  %v6707_v46 = vpop.f32.mrf.mxu0  ;;  %v4118_v63 = vpack.c.b16 %v4088_v3, %v4087_v29  ;;  %v2708_v44 = vpack.c.b16 %v2678_v25, %v2677_v18  ;;  %v6738_v61 = vrot.slane %v3131_v5, 5  ;;  %v5274_v18 = vld [vmem:[%s5821_s29 + $0x38] sm:$0x1]  ;;  %v5708_v5 = vld [vmem:[%s5821_s29 + $0x2c] sm:$0x1] }
 0x172   : > { %v2222_v39 = vpop.f32.mrf.mxu3  ;;  %v3124_v57 = vrot.slane %v3122_v59, 4  ;;  %v3137_v29 = vrot.slane %v3135_v22, 4  ;;  %v2565_v22 = vrot.slane %v5708_v5, 5 }
 0x173   : > { %v6716_v32 = vadd.f32 %v6678_v9, %v2222_v39  ;;  %3594 = vmatmul.bf16.vlgmr.msra.gmra.mxu2 %v3506_v51  ;;  %v1111_v47 = vpop.f32.mrf.mxu1  ;;  %v3120_v9 = vsel %vm5843_vm2, %v3115_v24, %v3119_v35  ;;  %v3125_v51 = vshll.u32 %v5228_v2, 16  ;;  %v3972_v35 = vrot.slane %v5229_v23, 5 }
 0x174   : > { %v3477_v45 = vunpack.c.l.b16 %v3120_v9  ;;  %v2562_v2 = vrot.slane %v5707_v52, 5  ;;  %v1112_v3 = vadd.f32 %v1111_v47, %v6290_v8  ;;  %v3138_v8 = vor.u32 %v3137_v29, %v6738_v61 }
 0x175   : > { %v3127_v24 = vrot.slane %v3125_v51, 5  ;;  %v3974_v59 = vrot.slane %v3972_v35, 4  ;;  %v3975_v51 = vrot.slane %v5274_v18, 5  ;;  %v3141_v47 = vshll.u32 %v5274_v18, 16 }
 0x176   : > { %v1490_v36 = vpop.f32.mrf.mxu2  ;;  %v3507_v9 = vpack.c.b16 %v3477_v45, %v3476_v26  ;;  %v5230_v26 = vld [vmem:[%s5821_s29 + $0x3c] sm:$0xf]  ;;  %v3139_v5 = vrot.slane %v3138_v8, 4 }
 0x177   : > { %3827 = vmatmul.bf16.vlgmr.msra.gmra.mxu3 %v5594_v54  ;;  %v6728_v40 = vadd.f32 %v1490_v36, %v1110_v60  ;;  %v5434_v60 = vld [vmem:[%s5821_s29 + $0x30] sm:$0xe]  ;;  %v5146_v36 = vld [vmem:[%s5821_s29 + $0x24] sm:$0xe]  ;;  %v3128_v23 = vor.u32 %v3127_v24, %v3124_v57  ;;  %v3976_v57 = vsel %vm6150_vm5, %v3974_v59, %v3975_v51 }
 0x178   : > { %v5162_v52 = vrot.slane %v5146_v36, 9 }
 0x179   : > { %7419 = vst [vmem:[#allocation19_spill] sm:$0xff] %v6728_v40  ;;  %v6730_v39 = vpop.f32.mrf.mxu0  ;;  %v2564_v40 = vrot.slane %v2562_v2, 4  ;;  %v3129_v18 = vrot.slane %v3128_v23, 4 }
 0x17a   : > { %v2225_v37 = vpop.f32.mrf.mxu3  ;;  %v2563_v29 = vsel %vm6150_vm5, %v5162_v52, %v2562_v2 }
 0x17b   : > { %v6733_v62 = vadd.f32 %v6693_v49, %v2225_v37  ;;  %v1114_v54 = vpop.f32.mrf.mxu1  ;;  %v5450_v49 = vrot.slane %v5434_v60, 9  ;;  %v5595_v60 = vld [vmem:[%s5821_s29 + $0x24] sm:$0xff]  ;;  %v3134_v23 = vsel %vm5843_vm2, %v3129_v18, %v6738_v61 }
 0x17c   : > { %4210 = vmatmul.bf16.gmra.mxu0 %v4118_v63  ;;  %v1115_v59 = vadd.f32 %v1114_v54, %v6307_v20  ;;  %v3478_v18 = vunpack.c.l.b16 %v3134_v23 }
 0x17d   : > { %7420 = vst [vmem:[#allocation20_spill] sm:$0xff] %v6733_v62 }
 0x17e   : > { %v1492_v25 = vpop.f32.mrf.mxu2  ;;  %2800 = vmatmul.bf16.gmra.mxu1 %v2708_v44  ;;  %v3973_v44 = vsel %vm6150_vm5, %v5450_v49, %v3972_v35  ;;  %v3146_v35 = vshrl.u32 %v5230_v26, 16  ;;  %v3149_v49 = vshll.u32 %v5230_v26, 16 }
 0x17f   : > { %v6742_v37 = vadd.f32 %v1492_v25, %v1112_v3  ;;  %v2566_v3 = vsel %vm6150_vm5, %v2564_v40, %v2565_v22  ;;  %v5231_v25 = vld [vmem:[%s5821_s29 + $0x40] sm:$0xf] }
 0x180   : > { %v3155_v2 = vshll.u32 %v5231_v25, 16  ;;  %v3159_v52 = vshrl.u32 %v5231_v25, 16  ;;  %v3148_v20 = vrot.slane %v3146_v35, 4  ;;  %v3151_v54 = vrot.slane %v3149_v49, 5  ;;  %v5435_v35 = vld [vmem:[%s5821_s29 + $0x3c] sm:$0xe] }
 0x181   : > { %7421 = vst [vmem:[#allocation21_spill] sm:$0xff] %v6742_v37  ;;  %v6747_v63 = vpop.f32.mrf.mxu0  ;;  %v3143_v37 = vrot.slane %v3141_v47, 5  ;;  %v5709_v47 = vld [vmem:[%s5821_s29 + $0x34] sm:$0xf] }
 0x182   : > { %v2227_v45 = vpop.f32.mrf.mxu3  ;;  %v2569_v26 = vrot.slane %v5709_v47, 5  ;;  %v3152_v49 = vor.u32 %v3151_v54, %v3148_v20 }
 0x183   : > { %v6754_v24 = vadd.f32 %v6707_v46, %v2227_v45  ;;  %3599 = vmatmul.bf16.gmra.mxu2 %v3507_v9  ;;  %v1116_v36 = vpop.f32.mrf.mxu1  ;;  %v4089_v46 = vunpack.c.l.b16 %v3973_v44  ;;  %v4090_v9 = vunpack.c.l.b16 %v3976_v57  ;;  %v2679_v45 = vunpack.c.l.b16 %v2563_v29  ;;  %v5275_v44 = vld [vmem:[%s5821_s29 + $0x44] sm:$0x1] }
 0x184   : > { %v3144_v22 = vsel %vm5843_vm2, %v3139_v5, %v3143_v37  ;;  %v2571_v62 = vrot.slane %v2569_v26, 4  ;;  %v3153_v20 = vrot.slane %v3152_v49, 4 }
 0x185   : > { %7422 = vst [vmem:[#allocation22_spill] sm:$0xff] %v6754_v24  ;;  %v2680_v24 = vunpack.c.l.b16 %v2566_v3  ;;  %v4119_v8 = vpack.c.b16 %v4090_v9, %v4089_v46  ;;  %v5147_v3 = vld [vmem:[%s5821_s29 + $0x30] sm:$0xe]  ;;  %v3479_v5 = vunpack.c.l.b16 %v3144_v22  ;;  %v3165_v46 = vshll.u32 %v5275_v44, 16 }
 0x186   : > { %v1495_v51 = vpop.f32.mrf.mxu2  ;;  %v1117_v9 = vadd.f32 %v1116_v36, %v6323_v43  ;;  %v5163_v47 = vrot.slane %v5147_v3, 9 }
 0x187   : > { %3832 = vmatmul.bf16.gmra.mxu3 %v5595_v60  ;;  %v6763_v40 = vadd.f32 %v1495_v51, %v1115_v59  ;;  %v2709_v60 = vpack.c.b16 %v2680_v24, %v2679_v45  ;;  %v3157_v59 = vrot.slane %v3155_v2, 5  ;;  %v3161_v51 = vrot.slane %v3159_v52, 4  ;;  %v5710_v24 = vld [vmem:[%s5821_s29 + $0x38] sm:$0x1] }
 0x188   : > { %v2572_v45 = vrot.slane %v5710_v24, 5  ;;  %v5451_v2 = vrot.slane %v5435_v35, 9  ;;  %v3982_v52 = vrot.slane %v5275_v44, 5  ;;  %v3508_v22 = vpack.c.b16 %v3479_v5, %v3478_v18  ;;  %v5232_v44 = vld [vmem:[%s5821_s29 + $0x48] sm:$0xf] }
 0x189   : > { %7423 = vst [vmem:[#allocation23_spill] sm:$0xff] %v6763_v40  ;;  %v6772_v29 = vpop.f32.mrf.mxu0  ;;  %v3979_v40 = vrot.slane %v5231_v25, 5  ;;  %v3162_v25 = vor.u32 %v3161_v51, %v3157_v59  ;;  %v2570_v43 = vsel %vm6150_vm5, %v5163_v47, %v2569_v26  ;;  %v5596_v26 = vld [vmem:[%s5821_s29 + $0x30] sm:$0xff]  ;;  %v5233_v5 = vld [vmem:[%s5821_s29 + $0x4c] sm:$0xf]  ;;  %v3158_v49 = vsel %vm5843_vm2, %v3153_v20, %v3157_v59 }
 0x18a   : > { %v2230_v57 = vpop.f32.mrf.mxu3  ;;  %v2573_v36 = vsel %vm6150_vm5, %v2571_v62, %v2572_v45  ;;  %v2681_v62 = vunpack.c.l.b16 %v2570_v43  ;;  %v3170_v47 = vshrl.u32 %v5232_v44, 16 }
 0x18b   : > { %v6776_v61 = vadd.f32 %v6730_v39, %v2230_v57  ;;  %v1119_v37 = vpop.f32.mrf.mxu1  ;;  %v3981_v39 = vrot.slane %v3979_v40, 4  ;;  %v3163_v57 = vrot.slane %v3162_v25, 4  ;;  %v3980_v3 = vsel %vm6150_vm5, %v5451_v2, %v3979_v40 }
 0x18c   : > { %4215 = vmatmul.bf16.gmra.mxu0 %v4119_v8  ;;  %v2682_v35 = vunpack.c.l.b16 %v2573_v36  ;;  %v3179_v25 = vshll.u32 %v5233_v5, 16  ;;  %v3183_v2 = vshrl.u32 %v5233_v5, 16 }
 0x18e   : > { %v1497_v38 = vpop.f32.mrf.mxu2  ;;  %2805 = vmatmul.bf16.gmra.mxu1 %v2709_v60  ;;  %v3167_v60 = vrot.slane %v3165_v46, 5  ;;  %v1120_v46 = vadd.f32 %v1119_v37, %v6340_v11  ;;  %v2710_v59 = vpack.c.b16 %v2682_v35, %v2681_v62  ;;  %v3172_v37 = vrot.slane %v3170_v47, 4  ;;  %v5148_v62 = vld [vmem:[%s5821_s29 + $0x3c] sm:$0xe] }
 0x18f   : > { %v6781_v23 = vadd.f32 %v1497_v38, %v1117_v9  ;;  %v3983_v38 = vsel %vm6150_vm5, %v3981_v39, %v3982_v52  ;;  %v4091_v9 = vunpack.c.l.b16 %v3980_v3  ;;  %v3480_v52 = vunpack.c.l.b16 %v3158_v49 }
 0x190   : > { %v4092_v40 = vunpack.c.l.b16 %v3983_v38  ;;  %v3168_v45 = vsel %vm5843_vm2, %v3163_v57, %v3167_v60  ;;  %v3185_v57 = vrot.slane %v3183_v2, 4  ;;  %v5436_v60 = vld [vmem:[%s5821_s29 + $0x48] sm:$0xe]  ;;  %v3986_v3 = vrot.slane %v5233_v5, 5 }
 0x191   : > { %v6787_v8 = vpop.f32.mrf.mxu0 }
 0x192   : > { %v2232_v54 = vpop.f32.mrf.mxu3  ;;  %v4120_v11 = vpack.c.b16 %v4092_v40, %v4091_v9  ;;  %v5276_v9 = vld [vmem:[%s5821_s29 + $0x50] sm:$0x1]  ;;  %v5452_v40 = vrot.slane %v5436_v60, 9 }
 0x193   : > { %v6795_v51 = vadd.f32 %v6747_v63, %v2232_v54  ;;  %3604 = vmatmul.bf16.gmra.mxu2 %v3508_v22  ;;  %v1121_v18 = vpop.f32.mrf.mxu1  ;;  %v3173_v63 = vshll.u32 %v5232_v44, 16  ;;  %v3481_v22 = vunpack.c.l.b16 %v3168_v45  ;;  %v6808_v54 = vrot.slane %v3179_v25, 5 }
 0x194   : > { %v1122_v35 = vadd.f32 %v1121_v18, %v6375_v55  ;;  %v3989_v45 = vrot.slane %v5276_v9, 5  ;;  %v5164_v25 = vrot.slane %v5148_v62, 9  ;;  %v3189_v18 = vshll.u32 %v5276_v9, 16 }
 0x195   : > { %v3175_v36 = vrot.slane %v3173_v63, 5  ;;  %v3186_v5 = vor.u32 %v3185_v57, %v6808_v54  ;;  %v6830_v57 = vld [vmem:[%s5821_s29 + $0x58] sm:$0xf] }
 0x196   : > { %v1500_v24 = vpop.f32.mrf.mxu2 }
 0x197   : > { %3837 = vmatmul.bf16.gmra.mxu3 %v5596_v26  ;;  %v6804_v39 = vadd.f32 %v1500_v24, %v1120_v46  ;;  %v5711_v26 = vld [vmem:[%s5821_s29 + $0x40] sm:$0xf]  ;;  %v3509_v46 = vpack.c.b16 %v3481_v22, %v3480_v52  ;;  %v3176_v24 = vor.u32 %v3175_v36, %v3172_v37  ;;  %v3987_v52 = vsel %vm6150_vm5, %v5452_v40, %v3986_v3  ;;  %v5234_v22 = vld [vmem:[%s5821_s29 + $0x54] sm:$0xf] }
 0x198   : > { %v2576_v49 = vrot.slane %v5711_v26, 5  ;;  %v5597_v26 = vld [vmem:[%s5821_s29 + $0x3c] sm:$0xff]  ;;  %v3187_v9 = vrot.slane %v3186_v5, 4  ;;  %v3191_v40 = vrot.slane %v3189_v18, 5 }
 0x199   : > { %v6806_v43 = vpop.f32.mrf.mxu0  ;;  %v3177_v37 = vrot.slane %v3176_v24, 4  ;;  %v3194_v24 = vshrl.u32 %v5234_v22, 16 }
 0x19a   : > { %v2235_v20 = vpop.f32.mrf.mxu3  ;;  %v2578_v2 = vrot.slane %v2576_v49, 4 }
 0x19b   : > { %v6812_v38 = vadd.f32 %v6772_v29, %v2235_v20  ;;  %v1124_v44 = vpop.f32.mrf.mxu1  ;;  %v3988_v29 = vrot.slane %v3986_v3, 4  ;;  %v5712_v20 = vld [vmem:[%s5821_s29 + $0x44] sm:$0x1]  ;;  %v3182_v5 = vsel %vm5843_vm2, %v3177_v37, %v6808_v54 }
 0x19c   : > { %4220 = vmatmul.bf16.gmra.mxu0 %v4120_v11  ;;  %v2579_v55 = vrot.slane %v5712_v20, 5  ;;  %v3197_v20 = vshll.u32 %v5234_v22, 16 }
 0x19d   : > { %v3990_v36 = vsel %vm6150_vm5, %v3988_v29, %v3989_v45  ;;  %v1125_v29 = vadd.f32 %v1124_v44, %v6389_v33  ;;  %v3192_v33 = vsel %vm5843_vm2, %v3187_v9, %v3191_v40  ;;  %v3196_v44 = vrot.slane %v3194_v24, 4  ;;  %v5149_v40 = vld [vmem:[%s5821_s29 + $0x48] sm:$0xe]  ;;  %v5713_v24 = vld [vmem:[%s5821_s29 + $0x4c] sm:$0xf] }
 0x19e   : > { %v1502_v47 = vpop.f32.mrf.mxu2  ;;  %2810 = vmatmul.bf16.gmra.mxu1 %v2710_v59  ;;  %v2580_v3 = vsel %vm6150_vm5, %v2578_v2, %v2579_v55  ;;  %v4094_v45 = vunpack.c.l.b16 %v3990_v36  ;;  %v3483_v9 = vunpack.c.l.b16 %v3192_v33 }
 0x19f   : > { %v6819_v63 = vadd.f32 %v1502_v47, %v1122_v35  ;;  %v2577_v35 = vsel %vm6150_vm5, %v5164_v25, %v2576_v49  ;;  %v4093_v47 = vunpack.c.l.b16 %v3987_v52  ;;  %v3199_v25 = vrot.slane %v3197_v20, 5 }
 0x1a0   : > { %v2583_v20 = vrot.slane %v5713_v24, 5  ;;  %v5714_v24 = vld [vmem:[%s5821_s29 + $0x50] sm:$0x1] }
 0x1a1   : > { %7424 = vst [vmem:[#allocation24_spill] sm:$0xff] %v6819_v63  ;;  %v6825_v59 = vpop.f32.mrf.mxu0  ;;  %v2683_v63 = vunpack.c.l.b16 %v2577_v35  ;;  %v4121_v2 = vpack.c.b16 %v4094_v45, %v4093_v47  ;;  %v3993_v35 = vrot.slane %v6830_v57, 5  ;;  %v5437_v47 = vld [vmem:[%s5821_s29 + $0x54] sm:$0xe] }
 0x1a2   : > { %v2237_v11 = vpop.f32.mrf.mxu3 }
 0x1a3   : > { %v6833_v60 = vadd.f32 %v6787_v8, %v2237_v11  ;;  %3609 = vmatmul.bf16.gmra.mxu2 %v3509_v46  ;;  %v1126_v62 = vpop.f32.mrf.mxu1  ;;  %v3203_v8 = vshll.u32 %v6830_v57, 16  ;;  %v3207_v46 = vshrl.u32 %v6830_v57, 16  ;;  %v5165_v57 = vrot.slane %v5149_v40, 9 }
 0x1a4   : > { %v1127_v45 = vadd.f32 %v1126_v62, %v6406_v12 }
 0x1a5   : > { %7425 = vst [vmem:[#allocation25_spill] sm:$0xff] %v6833_v60  ;;  %v2684_v60 = vunpack.c.l.b16 %v2580_v3  ;;  %v3205_v55 = vrot.slane %v3203_v8, 5  ;;  %v3209_v18 = vrot.slane %v3207_v46, 4  ;;  %v3482_v3 = vunpack.c.l.b16 %v3182_v5 }
 0x1a6   : > { %v1505_v11 = vpop.f32.mrf.mxu2  ;;  %v5453_v46 = vrot.slane %v5437_v47, 9 }
 0x1a7   : > { %3842 = vmatmul.bf16.gmra.mxu3 %v5597_v26  ;;  %v6843_v49 = vadd.f32 %v1505_v11, %v1125_v29  ;;  %v2711_v36 = vpack.c.b16 %v2684_v60, %v2683_v63  ;;  %v5277_v26 = vld [vmem:[%s5821_s29 + $0x5c] sm:$0x1]  ;;  %v3200_v29 = vor.u32 %v3199_v25, %v3196_v44  ;;  %v3210_v8 = vor.u32 %v3209_v18, %v3205_v55 }
 0x1a8   : > { %v3213_v63 = vshll.u32 %v5277_v26, 16  ;;  %v3996_v11 = vrot.slane %v5277_v26, 5  ;;  %v3510_v33 = vpack.c.b16 %v3483_v9, %v3482_v3  ;;  %v5598_v9 = vld [vmem:[%s5821_s29 + $0x48] sm:$0xff] }
 0x1a9   : > { %7426 = vst [vmem:[#allocation26_spill] sm:$0xff] %v6843_v49  ;;  %v6850_v22 = vpop.f32.mrf.mxu0  ;;  %v2586_v49 = vrot.slane %v5714_v24, 5  ;;  %v3201_v44 = vrot.slane %v3200_v29, 4  ;;  %v3211_v25 = vrot.slane %v3210_v8, 4  ;;  %v5236_v29 = vld [vmem:[%s5821_s29 + $0x60] sm:$0xf] }
 0x1aa   : > { %v2240_v52 = vpop.f32.mrf.mxu3  ;;  %v3215_v18 = vrot.slane %v3213_v63, 5 }
 0x1ab   : > { %v6855_v54 = vadd.f32 %v6806_v43, %v2240_v52  ;;  %v1129_v37 = vpop.f32.mrf.mxu1  ;;  %v3995_v43 = vrot.slane %v3993_v35, 4  ;;  %v2585_v52 = vrot.slane %v2583_v20, 4 }
 0x1ac   : > { %4225 = vmatmul.bf16.gmra.mxu0 %v4121_v2  ;;  %v2584_v2 = vsel %vm6150_vm5, %v5165_v57, %v2583_v20  ;;  %v3206_v20 = vsel %vm5843_vm2, %v3201_v44, %v3205_v55 }
 0x1ad   : > { %v3997_v26 = vsel %vm6150_vm5, %v3995_v43, %v3996_v11  ;;  %v2587_v47 = vsel %vm6150_vm5, %v2585_v52, %v2586_v49  ;;  %v2685_v8 = vunpack.c.l.b16 %v2584_v2  ;;  %v3218_v43 = vshrl.u32 %v5236_v29, 16 }
 0x1ae   : > { %v1507_v60 = vpop.f32.mrf.mxu2  ;;  %2815 = vmatmul.bf16.gmra.mxu1 %v2711_v36  ;;  %v3994_v36 = vsel %vm6150_vm5, %v5453_v46, %v3993_v35  ;;  %v4096_v63 = vunpack.c.l.b16 %v3997_v26  ;;  %v2686_v46 = vunpack.c.l.b16 %v2587_v47  ;;  %v3221_v11 = vshll.u32 %v5236_v29, 16  ;;  %v5438_v29 = vld [vmem:[%s5821_s29 + $0x60] sm:$0xe] }
 0x1af   : > { %v6861_v5 = vadd.f32 %v1507_v60, %v1127_v45  ;;  %v1130_v45 = vadd.f32 %v1129_v37, %v6266_v28  ;;  %v4095_v35 = vunpack.c.l.b16 %v3994_v36  ;;  %v5237_v60 = vld [vmem:[%s5821_s29 + $0x64] sm:$0xf]  ;;  %v3484_v28 = vunpack.c.l.b16 %v3206_v20 }
 0x1b0   : > { %v3231_v55 = vshrl.u32 %v5237_v60, 16  ;;  %v3220_v2 = vrot.slane %v3218_v43, 4 }
 0x1b1   : > { %v6864_v62 = vpop.f32.mrf.mxu0  ;;  %v4122_v52 = vpack.c.b16 %v4096_v63, %v4095_v35 }
 0x1b2   : > { %v2242_v12 = vpop.f32.mrf.mxu3 }
 0x1b3   : > { %v6873_v3 = vadd.f32 %v6825_v59, %v2242_v12  ;;  %3614 = vmatmul.bf16.gmra.mxu2 %v3510_v33  ;;  %v1131_v40 = vpop.f32.mrf.mxu1  ;;  %v3216_v59 = vsel %vm5843_vm2, %v3211_v25, %v3215_v18  ;;  %v3227_v33 = vshll.u32 %v5237_v60, 16  ;;  %v2712_v12 = vpack.c.b16 %v2686_v46, %v2685_v8  ;;  %v5278_v8 = vld [vmem:[%s5821_s29 + $0x68] sm:$0x1] }
 0x1b4   : > { %v3485_v37 = vunpack.c.l.b16 %v3216_v59  ;;  %v3223_v25 = vrot.slane %v3221_v11, 5  ;;  %v4000_v18 = vrot.slane %v5237_v60, 5  ;;  %v1132_v35 = vadd.f32 %v1131_v40, %v6294_v56  ;;  %v5238_v40 = vld [vmem:[%s5821_s29 + $0x6c] sm:$0xf] }
 0x1b5   : > { %v3229_v20 = vrot.slane %v3227_v33, 5  ;;  %v4003_v43 = vrot.slane %v5278_v8, 5  ;;  %v5716_v33 = vld [vmem:[%s5821_s29 + $0x5c] sm:$0x1]  ;;  %v3237_v56 = vshll.u32 %v5278_v8, 16 }
 0x1b6   : > { %v1510_v57 = vpop.f32.mrf.mxu2  ;;  %v3511_v63 = vpack.c.b16 %v3485_v37, %v3484_v28  ;;  %v3224_v60 = vor.u32 %v3223_v25, %v3220_v2  ;;  %v4002_v59 = vrot.slane %v4000_v18, 4  ;;  %v5239_v2 = vld [vmem:[%s5821_s29 + $0x70] sm:$0xf] }
 0x1b7   : > { %3847 = vmatmul.bf16.gmra.mxu3 %v5598_v9  ;;  %v6885_v49 = vadd.f32 %v1510_v57, %v1130_v45  ;;  %v5715_v9 = vld [vmem:[%s5821_s29 + $0x58] sm:$0xf]  ;;  %v5150_v45 = vld [vmem:[%s5821_s29 + $0x54] sm:$0xe]  ;;  %v3233_v57 = vrot.slane %v3231_v55, 4  ;;  %v2593_v55 = vrot.slane %v5716_v33, 5 }
 0x1b8   : > { %v2590_v47 = vrot.slane %v5715_v9, 5  ;;  %v3225_v8 = vrot.slane %v3224_v60, 4  ;;  %v3239_v33 = vrot.slane %v3237_v56, 5 }
 0x1b9   : > { %7427 = vst [vmem:[#allocation27_spill] sm:$0xff] %v6885_v49  ;;  %v6887_v44 = vpop.f32.mrf.mxu0  ;;  %v3234_v49 = vor.u32 %v3233_v57, %v3229_v20 }
 0x1ba   : > { %v2245_v24 = vpop.f32.mrf.mxu3  ;;  %v2592_v9 = vrot.slane %v2590_v47, 4 }
 0x1bb   : > { %v6890_v36 = vadd.f32 %v6850_v22, %v2245_v24  ;;  %v1134_v26 = vpop.f32.mrf.mxu1  ;;  %v5454_v22 = vrot.slane %v5438_v29, 9  ;;  %v5166_v24 = vrot.slane %v5150_v45, 9  ;;  %v5599_v29 = vld [vmem:[%s5821_s29 + $0x54] sm:$0xff] }
 0x1bc   : > { %4230 = vmatmul.bf16.gmra.mxu0 %v4122_v52 }
 0x1bd   : > { %7428 = vst [vmem:[#allocation28_spill] sm:$0xff] %v6890_v36  ;;  %v4001_v52 = vsel %vm6150_vm5, %v5454_v22, %v4000_v18  ;;  %v2591_v57 = vsel %vm6150_vm5, %v5166_v24, %v2590_v47  ;;  %v3242_v18 = vshrl.u32 %v5238_v40, 16  ;;  %v3245_v22 = vshll.u32 %v5238_v40, 16 }
 0x1be   : > { %v1512_v46 = vpop.f32.mrf.mxu2  ;;  %2820 = vmatmul.bf16.gmra.mxu1 %v2712_v12  ;;  %v4004_v12 = vsel %vm6150_vm5, %v4002_v59, %v4003_v43  ;;  %v1135_v59 = vadd.f32 %v1134_v26, %v6314_v10  ;;  %v4097_v43 = vunpack.c.l.b16 %v4001_v52  ;;  %v3255_v36 = vshrl.u32 %v5239_v2, 16  ;;  %v5151_v52 = vld [vmem:[%s5821_s29 + $0x60] sm:$0xe] }
 0x1bf   : > { %v6897_v11 = vadd.f32 %v1512_v46, %v1132_v35  ;;  %v2594_v35 = vsel %vm6150_vm5, %v2592_v9, %v2593_v55  ;;  %v3235_v46 = vrot.slane %v3234_v49, 4  ;;  %v3230_v49 = vsel %vm5843_vm2, %v3225_v8, %v3229_v20 }
 0x1c0   : > { %v3244_v10 = vrot.slane %v3242_v18, 4  ;;  %v3247_v26 = vrot.slane %v3245_v22, 5  ;;  %v3486_v8 = vunpack.c.l.b16 %v3230_v49  ;;  %v5279_v22 = vld [vmem:[%s5821_s29 + $0x74] sm:$0x1] }
 0x1c1   : > { %7429 = vst [vmem:[#allocation29_spill] sm:$0xff] %v6897_v11  ;;  %v6901_v37 = vpop.f32.mrf.mxu0  ;;  %v4098_v11 = vunpack.c.l.b16 %v4004_v12  ;;  %v3240_v60 = vsel %vm5843_vm2, %v3235_v46, %v3239_v33  ;;  %v3257_v12 = vrot.slane %v3255_v36, 4  ;;  %v5717_v33 = vld [vmem:[%s5821_s29 + $0x64] sm:$0xf] }
 0x1c2   : > { %v2247_v28 = vpop.f32.mrf.mxu3  ;;  %v3487_v46 = vunpack.c.l.b16 %v3240_v60  ;;  %v2597_v18 = vrot.slane %v5717_v33, 5  ;;  %v5600_v33 = vld [vmem:[%s5821_s29 + $0x60] sm:$0xff] }
 0x1c3   : > { %v6909_v25 = vadd.f32 %v6864_v62, %v2247_v28  ;;  %3619 = vmatmul.bf16.gmra.mxu2 %v3511_v63  ;;  %v1136_v45 = vpop.f32.mrf.mxu1  ;;  %v3251_v62 = vshll.u32 %v5239_v2, 16  ;;  %v2687_v28 = vunpack.c.l.b16 %v2591_v57  ;;  %v4123_v24 = vpack.c.b16 %v4098_v11, %v4097_v43 }
 0x1c4   : > { %v4007_v57 = vrot.slane %v5239_v2, 5  ;;  %v3248_v11 = vor.u32 %v3247_v26, %v3244_v10  ;;  %v5167_v43 = vrot.slane %v5151_v52, 9  ;;  %v3261_v2 = vshll.u32 %v5279_v22, 16 }
 0x1c5   : > { %7430 = vst [vmem:[#allocation30_spill] sm:$0xff] %v6909_v25  ;;  %v2688_v25 = vunpack.c.l.b16 %v2594_v35  ;;  %v3253_v9 = vrot.slane %v3251_v62, 5  ;;  %v3512_v49 = vpack.c.b16 %v3487_v46, %v3486_v8  ;;  %v2599_v60 = vrot.slane %v2597_v18, 4  ;;  %v5240_v8 = vld [vmem:[%s5821_s29 + $0x78] sm:$0xf] }
 0x1c6   : > { %v1515_v63 = vpop.f32.mrf.mxu2  ;;  %v3249_v26 = vrot.slane %v3248_v11, 4  ;;  %v5241_v11 = vld [vmem:[%s5821_s29 + $0x7c] sm:$0xf] }
 0x1c7   : > { %3852 = vmatmul.bf16.gmra.mxu3 %v5599_v29  ;;  %v6917_v47 = vadd.f32 %v1515_v63, %v1135_v59  ;;  %v2713_v40 = vpack.c.b16 %v2688_v25, %v2687_v28  ;;  %v5439_v29 = vld [vmem:[%s5821_s29 + $0x6c] sm:$0xe]  ;;  %v1137_v59 = vadd.f32 %v1136_v45, %v6335_v58  ;;  %v3258_v36 = vor.u32 %v3257_v12, %v3253_v9 }
 0x1c8   : > { %v5455_v25 = vrot.slane %v5439_v29, 9  ;;  %v4010_v63 = vrot.slane %v5279_v22, 5  ;;  %v2598_v58 = vsel %vm6150_vm5, %v5167_v43, %v2597_v18  ;;  %v3263_v12 = vrot.slane %v3261_v2, 5 }
 0x1c9   : > { %v6923_v56 = vpop.f32.mrf.mxu0  ;;  %v3259_v52 = vrot.slane %v3258_v36, 4  ;;  %v3266_v36 = vshrl.u32 %v5240_v8, 16  ;;  %v3269_v2 = vshll.u32 %v5240_v8, 16 }
 0x1ca   : > { %v2250_v55 = vpop.f32.mrf.mxu3  ;;  %v4008_v45 = vsel %vm6150_vm5, %v5455_v25, %v4007_v57 }
 0x1cb   : > { %v6928_v35 = vadd.f32 %v6887_v44, %v2250_v55  ;;  %v1139_v20 = vpop.f32.mrf.mxu1  ;;  %v4009_v44 = vrot.slane %v4007_v57, 4  ;;  %v5718_v55 = vld [vmem:[%s5821_s29 + $0x68] sm:$0x1]  ;;  %v2689_v57 = vunpack.c.l.b16 %v2598_v58  ;;  %v4099_v43 = vunpack.c.l.b16 %v4008_v45 }
 0x1cc   : > { %4235 = vmatmul.bf16.gmra.mxu0 %v4123_v24  ;;  %v2600_v10 = vrot.slane %v5718_v55, 5  ;;  %v1140_v25 = vadd.f32 %v1139_v20, %v6354_v27  ;;  %v3279_v55 = vshrl.u32 %v5241_v11, 16  ;;  %v3268_v20 = vrot.slane %v3266_v36, 4 }
 0x1cd   : > { %v4011_v29 = vsel %vm6150_vm5, %v4009_v44, %v4010_v63  ;;  %v3264_v63 = vsel %vm5843_vm2, %v3259_v52, %v3263_v12  ;;  %v4014_v12 = vrot.slane %v5241_v11, 5 }
 0x1ce   : > { %v1517_v62 = vpop.f32.mrf.mxu2  ;;  %2825 = vmatmul.bf16.gmra.mxu1 %v2713_v40  ;;  %v2601_v18 = vsel %vm6150_vm5, %v2599_v60, %v2600_v10  ;;  %v3281_v52 = vrot.slane %v3279_v55, 4 }
 0x1cf   : > { %v6933_v28 = vadd.f32 %v1517_v62, %v1137_v59  ;;  %v3254_v59 = vsel %vm5843_vm2, %v3249_v26, %v3253_v9  ;;  %v4100_v62 = vunpack.c.l.b16 %v4011_v29  ;;  %v2690_v44 = vunpack.c.l.b16 %v2601_v18  ;;  %v5280_v29 = vld [vmem:[%s5821_s29 + $0x80] sm:$0x1] }
 0x1d0   : > { %v3488_v10 = vunpack.c.l.b16 %v3254_v59  ;;  %v3489_v9 = vunpack.c.l.b16 %v3264_v63  ;;  %v3271_v26 = vrot.slane %v3269_v2, 5  ;;  %v5152_v63 = vld [vmem:[%s5821_s29 + $0x6c] sm:$0xe]  ;;  %v3285_v2 = vshll.u32 %v5280_v29, 16 }
 0x1d1   : > { %7431 = vst [vmem:[#allocation31_spill] sm:$0xff] %v6933_v28  ;;  %v6940_v40 = vpop.f32.mrf.mxu0  ;;  %v4124_v27 = vpack.c.b16 %v4100_v62, %v4099_v43 }
 0x1d2   : > { %v2252_v24 = vpop.f32.mrf.mxu3  ;;  %v3513_v62 = vpack.c.b16 %v3489_v9, %v3488_v10  ;;  %v3272_v36 = vor.u32 %v3271_v26, %v3268_v20  ;;  %v3287_v9 = vrot.slane %v3285_v2, 5 }
 0x1d3   : > { %v6946_v46 = vadd.f32 %v6901_v37, %v2252_v24  ;;  %3624 = vmatmul.bf16.gmra.mxu2 %v3512_v49  ;;  %v1141_v22 = vpop.f32.mrf.mxu1  ;;  %v3275_v49 = vshll.u32 %v5241_v11, 16  ;;  %v2714_v24 = vpack.c.b16 %v2690_v44, %v2689_v57  ;;  %v4016_v11 = vrot.slane %v4014_v12, 4 }
 0x1d4   : > { %v1142_v43 = vadd.f32 %v1141_v22, %v6379_v6  ;;  %v3273_v28 = vrot.slane %v3272_v36, 4  ;;  %v5243_v36 = vld [vmem:[%s5821_s29 + $0x88] sm:$0xf] }
 0x1d5   : > { %v3277_v8 = vrot.slane %v3275_v49, 5 }
 0x1d6   : > { %v1520_v37 = vpop.f32.mrf.mxu2 }
 0x1d7   : > { %3857 = vmatmul.bf16.gmra.mxu3 %v5600_v33  ;;  %v6957_v60 = vadd.f32 %v1520_v37, %v1140_v25  ;;  %v5719_v25 = vld [vmem:[%s5821_s29 + $0x70] sm:$0xf]  ;;  %v5440_v37 = vld [vmem:[%s5821_s29 + $0x78] sm:$0xe]  ;;  %v3282_v44 = vor.u32 %v3281_v52, %v3277_v8 }
 0x1d8   : > { %v2604_v59 = vrot.slane %v5719_v25, 5  ;;  %v5456_v49 = vrot.slane %v5440_v37, 9  ;;  %v5242_v37 = vld [vmem:[%s5821_s29 + $0x84] sm:$0xf] }
 0x1d9   : > { %7432 = vst [vmem:[#allocation32_spill] sm:$0xff] %v6957_v60  ;;  %v6959_v45 = vpop.f32.mrf.mxu0  ;;  %v5720_v60 = vld [vmem:[%s5821_s29 + $0x74] sm:$0x1]  ;;  %v3283_v10 = vrot.slane %v3282_v44, 4 }
 0x1da   : > { %v2255_v58 = vpop.f32.mrf.mxu3  ;;  %v2606_v25 = vrot.slane %v2604_v59, 4 }
 0x1db   : > { %v6963_v33 = vadd.f32 %v6923_v56, %v2255_v58  ;;  %v1144_v18 = vpop.f32.mrf.mxu1  ;;  %v4017_v56 = vrot.slane %v5280_v29, 5  ;;  %v5168_v58 = vrot.slane %v5152_v63, 9  ;;  %v3288_v44 = vsel %vm5843_vm2, %v3283_v10, %v3287_v9 }
 0x1dc   : > { %4240 = vmatmul.bf16.gmra.mxu0 %v4124_v27  ;;  %v4015_v27 = vsel %vm6150_vm5, %v5456_v49, %v4014_v12  ;;  %v1145_v63 = vadd.f32 %v1144_v18, %v6398_v48  ;;  %v3293_v49 = vshll.u32 %v5242_v37, 16  ;;  %v3299_v48 = vshll.u32 %v5243_v36, 16 }
 0x1dd   : > { %7433 = vst [vmem:[#allocation33_spill] sm:$0xff] %v6963_v33  ;;  %v2607_v33 = vrot.slane %v5720_v60, 5  ;;  %v4018_v20 = vsel %vm6150_vm5, %v4016_v11, %v4017_v56  ;;  %v2605_v60 = vsel %vm6150_vm5, %v5168_v58, %v2604_v59  ;;  %v3303_v18 = vshrl.u32 %v5243_v36, 16 }
 0x1de   : > { %v1522_v57 = vpop.f32.mrf.mxu2  ;;  %2830 = vmatmul.bf16.gmra.mxu1 %v2714_v24  ;;  %v5601_v24 = vld [vmem:[%s5821_s29 + $0x6c] sm:$0xff]  ;;  %v4102_v12 = vunpack.c.l.b16 %v4018_v20  ;;  %v3491_v56 = vunpack.c.l.b16 %v3288_v44  ;;  %v5721_v20 = vld [vmem:[%s5821_s29 + $0x7c] sm:$0xf] }
 0x1df   : > { %v6969_v55 = vadd.f32 %v1522_v57, %v1142_v43  ;;  %v2608_v52 = vsel %vm6150_vm5, %v2606_v25, %v2607_v33  ;;  %v4101_v43 = vunpack.c.l.b16 %v4015_v27  ;;  %v2691_v57 = vunpack.c.l.b16 %v2605_v60 }
 0x1e0   : > { %v3290_v33 = vshrl.u32 %v5242_v37, 16  ;;  %v5441_v37 = vld [vmem:[%s5821_s29 + $0x84] sm:$0xe] }
 0x1e1   : > { %v6972_v22 = vpop.f32.mrf.mxu0  ;;  %v4125_v58 = vpack.c.b16 %v4102_v12, %v4101_v43  ;;  %v7004_v43 = vrot.slane %v3299_v48, 5  ;;  %v3305_v12 = vrot.slane %v3303_v18, 4  ;;  %v5457_v44 = vrot.slane %v5441_v37, 9 }
 0x1e2   : > { %v2257_v6 = vpop.f32.mrf.mxu3  ;;  %v3292_v60 = vrot.slane %v3290_v33, 4 }
 0x1e3   : > { %v6979_v26 = vadd.f32 %v6940_v40, %v2257_v6  ;;  %3629 = vmatmul.bf16.gmra.mxu2 %v3513_v62  ;;  %v1146_v29 = vpop.f32.mrf.mxu1  ;;  %v2692_v40 = vunpack.c.l.b16 %v2608_v52  ;;  %v3278_v62 = vsel %vm5843_vm2, %v3273_v28, %v3277_v8  ;;  %v5153_v28 = vld [vmem:[%s5821_s29 + $0x78] sm:$0xe]  ;;  %v4021_v8 = vrot.slane %v5243_v36, 5 }
 0x1e4   : > { %v3490_v11 = vunpack.c.l.b16 %v3278_v62  ;;  %v3295_v52 = vrot.slane %v3293_v49, 5  ;;  %v5169_v36 = vrot.slane %v5153_v28, 9 }
 0x1e5   : > { %v2715_v27 = vpack.c.b16 %v2692_v40, %v2691_v57  ;;  %v4023_v33 = vrot.slane %v4021_v8, 4 }
 0x1e6   : > { %v1525_v2 = vpop.f32.mrf.mxu2  ;;  %v3514_v57 = vpack.c.b16 %v3491_v56, %v3490_v11  ;;  %v3296_v18 = vor.u32 %v3295_v52, %v3292_v60  ;;  %v3306_v11 = vor.u32 %v3305_v12, %v7004_v43  ;;  %v5602_v60 = vld [vmem:[%s5821_s29 + $0x78] sm:$0xff] }
 0x1e7   : > { %3862 = vmatmul.bf16.gmra.mxu3 %v5601_v24  ;;  %v6993_v59 = vadd.f32 %v1525_v2, %v1145_v63  ;;  %v2611_v24 = vrot.slane %v5721_v20, 5  ;;  %v1147_v2 = vadd.f32 %v1146_v29, %v6411_v0  ;;  %v5722_v0 = vld [vmem:[%s5821_s29 + $0x80] sm:$0x1] }
 0x1e8   : > { %v2614_v29 = vrot.slane %v5722_v0, 5  ;;  %v3297_v37 = vrot.slane %v3296_v18, 4 }
 0x1e9   : > { %v6995_v6 = vpop.f32.mrf.mxu0  ;;  %v2613_v48 = vrot.slane %v2611_v24, 4 }
 0x1ea   : > { %v2260_v25 = vpop.f32.mrf.mxu3 }
 0x1eb   : > { %v6999_v10 = vadd.f32 %v6959_v45, %v2260_v25  ;;  %v2796_v9 = vpop.f32.mrf.mxu1  ;;  %v5281_v45 = vld [vmem:[%s5821_s29 + $0x8c] sm:$0x1]  ;;  %v2615_v52 = vsel %vm6150_vm5, %v2613_v48, %v2614_v29 }
 0x1ec   : > { %v2876_v63 = vadd.f32 %v2796_v9, %v6437_v41  ;;  %4245 = vmatmul.bf16.gmra.mxu0 %v4125_v58  ;;  %v4024_v41 = vrot.slane %v5281_v45, 5  ;;  %v3309_v56 = vshll.u32 %v5281_v45, 16  ;;  %v5244_v9 = vld [vmem:[%s5821_s29 + $0x90] sm:$0xf] }
 0x1ed   : > { %v3314_v45 = vshrl.u32 %v5244_v9, 16 }
 0x1ee   : > { %v1527_v40 = vpop.f32.mrf.mxu2  ;;  %v7009_v62 = vadd.f32 %v2876_v63, %v6418_v17  ;;  %2835 = vmatmul.bf16.gmra.mxu1 %v2715_v27  ;;  %v2612_v17 = vsel %vm6150_vm5, %v5169_v36, %v2611_v24  ;;  %v4022_v27 = vsel %vm6150_vm5, %v5457_v44, %v4021_v8  ;;  %v4025_v28 = vsel %vm6150_vm5, %v4023_v33, %v4024_v41  ;;  %v5245_v8 = vld [vmem:[%s5821_s29 + $0x94] sm:$0xf] }
 0x1ef   : > { %v7011_v49 = vadd.f32 %v1527_v40, %v1147_v2  ;;  %v2693_v12 = vunpack.c.l.b16 %v2612_v17  ;;  %v3311_v2 = vrot.slane %v3309_v56, 5  ;;  %v4104_v36 = vunpack.c.l.b16 %v4025_v28  ;;  %v5442_v17 = vld [vmem:[%s5821_s29 + $0x90] sm:$0xe] }
 0x1f0   : > { %v3317_v40 = vshll.u32 %v5244_v9, 16  ;;  %v2694_v41 = vunpack.c.l.b16 %v2615_v52  ;;  %v3323_v48 = vshll.u32 %v5245_v8, 16  ;;  %v3327_v0 = vshrl.u32 %v5245_v8, 16 }
 0x1f1   : > { %7434 = vst [vmem:[#allocation34_spill] sm:$0xff] %v7011_v49  ;;  %v7018_v25 = vpop.f32.mrf.mxu0  ;;  %v4028_v18 = vrot.slane %v5245_v8, 5  ;;  %v5723_v8 = vld [vmem:[%s5821_s29 + $0x88] sm:$0xf] }
 0x1f2   : > { %v2262_v58 = vpop.f32.mrf.mxu3  ;;  %v3319_v56 = vrot.slane %v3317_v40, 5  ;;  %v2716_v28 = vpack.c.b16 %v2694_v41, %v2693_v12  ;;  %v7056_v9 = vrot.slane %v3323_v48, 5  ;;  %v7437_v48 = vld [vmem:[#allocation3_spill] sm:$0xff] }
 0x1f3   : > { %v7026_v20 = vadd.f32 %v6972_v22, %v2262_v58  ;;  %3634 = vmatmul.bf16.gmra.mxu2 %v3514_v57  ;;  %v2798_v24 = vpop.f32.mrf.mxu1  ;;  %v3307_v22 = vrot.slane %v3306_v11, 4  ;;  %v4103_v57 = vunpack.c.l.b16 %v4022_v27  ;;  %v3316_v11 = vrot.slane %v3314_v45, 4 }
 0x1f4   : > { %v2877_v63 = vadd.f32 %v2798_v24, %v6454_v31  ;;  %v3302_v31 = vsel %vm5843_vm2, %v3297_v37, %v7004_v43  ;;  %v4030_v45 = vrot.slane %v4028_v18, 4 }
 0x1f5   : > { %7435 = vst [vmem:[#allocation35_spill] sm:$0xff] %v7026_v20  ;;  %v3312_v29 = vsel %vm5843_vm2, %v3307_v22, %v3311_v2  ;;  %v3492_v52 = vunpack.c.l.b16 %v3302_v31  ;;  %v2618_v22 = vrot.slane %v5723_v8, 5  ;;  %v5282_v2 = vld [vmem:[%s5821_s29 + $0x98] sm:$0x1]  ;;  %v3320_v41 = vor.u32 %v3319_v56, %v3316_v11  ;;  %v5724_v56 = vld [vmem:[%s5821_s29 + $0x8c] sm:$0x1] }
 0x1f6   : > { %v3595_v44 = vpop.f32.mrf.mxu2  ;;  %v7040_v33 = vadd.f32 %v2877_v63, %v6448_v7  ;;  %v4126_v7 = vpack.c.b16 %v4104_v36, %v4103_v57  ;;  %v3493_v37 = vunpack.c.l.b16 %v3312_v29  ;;  %v5154_v63 = vld [vmem:[%s5821_s29 + $0x84] sm:$0xe]  ;;  %v5458_v36 = vrot.slane %v5442_v17, 9 }
 0x1f7   : > { %3867 = vmatmul.bf16.gmra.mxu3 %v5602_v60  ;;  %v3329_v60 = vrot.slane %v3327_v0, 4  ;;  %v4031_v40 = vrot.slane %v5282_v2, 5  ;;  %v3333_v29 = vshll.u32 %v5282_v2, 16  ;;  %v2620_v11 = vrot.slane %v2618_v22, 4 }
 0x1f8   : > { %v2621_v17 = vrot.slane %v5724_v56, 5 }
 0x1f9   : > { %v7054_v27 = vpop.f32.mrf.mxu0  ;;  %v3330_v31 = vor.u32 %v3329_v60, %v7056_v9  ;;  %v3335_v8 = vrot.slane %v3333_v29, 5 }
 0x1fa   : > { %v3828_v58 = vpop.f32.mrf.mxu3 }
 0x1fb   : > { %v3829_v43 = vadd.f32 %v3828_v58, %v3595_v44  ;;  %v2801_v24 = vpop.f32.mrf.mxu1  ;;  %v4029_v58 = vsel %vm6150_vm5, %v5458_v36, %v4028_v18  ;;  %v2622_v36 = vsel %vm6150_vm5, %v2620_v11, %v2621_v17 }
 0x1fc   : > { %v2878_v57 = vadd.f32 %v2801_v24, %v6473_v4  ;;  %4250 = vmatmul.bf16.gmra.mxu0 %v4126_v7  ;;  %v5170_v4 = vrot.slane %v5154_v63, 9  ;;  %v3515_v7 = vpack.c.b16 %v3493_v37, %v3492_v52  ;;  %v5246_v24 = vld [vmem:[%s5821_s29 + $0x9c] sm:$0xf]  ;;  %v3321_v52 = vrot.slane %v3320_v41, 4 }
 0x1fd   : > { %v4286_v12 = vadd.f32 %v6995_v6, %v3829_v43  ;;  %v4032_v43 = vsel %vm6150_vm5, %v4030_v45, %v4031_v40  ;;  %v3331_v37 = vrot.slane %v3330_v31, 4  ;;  %v4105_v45 = vunpack.c.l.b16 %v4029_v58 }
 0x1fe   : > { %v3597_v44 = vpop.f32.mrf.mxu2  ;;  %v7070_v0 = vadd.f32 %v2878_v57, %v7437_v48  ;;  %2840 = vmatmul.bf16.gmra.mxu1 %v2716_v28  ;;  %v7082_v28 = vld [vmem:[%s5821_s29 + $0xa0] sm:$0xf]  ;;  %v5603_v57 = vld [vmem:[%s5821_s29 + $0x84] sm:$0xff]  ;;  %v4106_v40 = vunpack.c.l.b16 %v4032_v43  ;;  %v3338_v48 = vshrl.u32 %v5246_v24, 16  ;;  %v3341_v56 = vshll.u32 %v5246_v24, 16 }
 0x1ff   : > { %v4350_v6 = vadd.f32 %v4286_v12, %v7009_v62  ;;  %v2619_v62 = vsel %vm6150_vm5, %v5170_v4, %v2618_v22  ;;  %v3347_v49 = vshll.u32 %v7082_v28, 16  ;;  %v3351_v41 = vshrl.u32 %v7082_v28, 16  ;;  %v7438_v4 = vld [vmem:[#allocation4_spill] sm:$0xff] }
 0x200   : > { %v2695_v29 = vunpack.c.l.b16 %v2619_v62  ;;  %v4127_v17 = vpack.c.b16 %v4106_v40, %v4105_v45  ;;  %v3340_v58 = vrot.slane %v3338_v48, 4  ;;  %v3343_v43 = vrot.slane %v3341_v56, 5  ;;  %v5725_v48 = vld [vmem:[%s5821_s29 + $0x94] sm:$0xf] }
 0x201   : > { %4446 = vst [vmem:[%s7067_s6] sm:$0xff] %v4350_v6  ;;  %v7084_v60 = vpop.f32.mrf.mxu0  ;;  %v7104_v24 = vrot.slane %v3347_v49, 5  ;;  %v2625_v56 = vrot.slane %v5725_v48, 5 }
 0x202   : > { %v3830_v63 = vpop.f32.mrf.mxu3 }
 0x203   : > { %v3831_v2 = vadd.f32 %v3830_v63, %v3597_v44  ;;  %3639 = vmatmul.bf16.gmra.mxu2 %v3515_v7  ;;  %v2803_v18 = vpop.f32.mrf.mxu1  ;;  %v2696_v7 = vunpack.c.l.b16 %v2622_v36  ;;  %v4516_v63 = vmul.f32 %v4350_v6, %v4350_v6  ;;  %v5155_v36 = vld [vmem:[%s5821_s29 + $0x90] sm:$0xe] }
 0x204   : > { %v2879_v12 = vadd.f32 %v2803_v18, %v6485_v19  ;;  %v3326_v19 = vsel %vm5843_vm2, %v3321_v52, %v7056_v9 }
 0x205   : > { %v4287_v22 = vadd.f32 %v7018_v25, %v3831_v2  ;;  %v3336_v25 = vsel %vm5843_vm2, %v3331_v37, %v3335_v8  ;;  %v3353_v2 = vrot.slane %v3351_v41, 4  ;;  %v2717_v9 = vpack.c.b16 %v2696_v7, %v2695_v29 }
 0x206   : > { %v3600_v44 = vpop.f32.mrf.mxu2  ;;  %v7096_v31 = vadd.f32 %v2879_v12, %v7438_v4  ;;  %v3494_v52 = vunpack.c.l.b16 %v3326_v19  ;;  %v5283_v12 = vld [vmem:[%s5821_s29 + $0xa4] sm:$0x1]  ;;  %v4035_v37 = vrot.slane %v7082_v28, 5  ;;  %v3495_v40 = vunpack.c.l.b16 %v3336_v25 }
 0x207   : > { %v4351_v11 = vadd.f32 %v4287_v22, %v7040_v33  ;;  %3872 = vmatmul.bf16.gmra.mxu3 %v5603_v57  ;;  %v5443_v22 = vld [vmem:[%s5821_s29 + $0x9c] sm:$0xe]  ;;  %v3344_v41 = vor.u32 %v3343_v43, %v3340_v58  ;;  %v5171_v29 = vrot.slane %v5155_v36, 9  ;;  %v3354_v7 = vor.u32 %v3353_v2, %v7104_v24 }
 0x208   : > { %v3357_v28 = vshll.u32 %v5283_v12, 16  ;;  %v5459_v25 = vrot.slane %v5443_v22, 9  ;;  %v3516_v43 = vpack.c.b16 %v3495_v40, %v3494_v52 }
 0x209   : > { %4447 = vst [vmem:[%s7067_s6 + $0x8] sm:$0xff] %v4351_v11  ;;  %v4478_v62 = vadd.f32 %v4351_v11, %v4350_v6  ;;  %v4517_v33 = vmul.f32 %v4351_v11, %v4351_v11  ;;  %v7107_v18 = vpop.f32.mrf.mxu0  ;;  %v7439_v6 = vld [vmem:[#allocation6_spill] sm:$0xff]  ;;  %v3345_v48 = vrot.slane %v3344_v41, 4  ;;  %v5604_v41 = vld [vmem:[%s5821_s29 + $0x90] sm:$0xff] }
 0x20a   : > { %v3833_v57 = vpop.f32.mrf.mxu3  ;;  %v4036_v52 = vsel %vm6150_vm5, %v5459_v25, %v4035_v37 }
 0x20b   : > { %v4548_v8 = vadd.f32 %v4517_v33, %v4516_v63  ;;  %v3834_v45 = vadd.f32 %v3833_v57, %v3600_v44  ;;  %v2806_v49 = vpop.f32.mrf.mxu1  ;;  %v7440_v44 = vld [vmem:[#allocation5_spill] sm:$0xff]  ;;  %v4037_v33 = vrot.slane %v4035_v37, 4  ;;  %v4038_v57 = vrot.slane %v5283_v12, 5 }
 0x20c   : > { %v2880_v4 = vadd.f32 %v2806_v49, %v7439_v6  ;;  %4255 = vmatmul.bf16.gmra.mxu0 %v4127_v17  ;;  %v5248_v49 = vld [vmem:[%s5821_s29 + $0xa8] sm:$0xf]  ;;  %v3355_v6 = vrot.slane %v3354_v7, 4  ;;  %v2626_v12 = vsel %vm6150_vm5, %v5171_v29, %v2625_v56 }
 0x20d   : > { %v4288_v11 = vadd.f32 %v7054_v27, %v3834_v45  ;;  %v2627_v27 = vrot.slane %v2625_v56, 4  ;;  %v5726_v45 = vld [vmem:[%s5821_s29 + $0x98] sm:$0x1]  ;;  %v4039_v40 = vsel %vm6150_vm5, %v4037_v33, %v4038_v57  ;;  %v3365_v20 = vshll.u32 %v5248_v49, 16 }
 0x20e   : > { %v3602_v19 = vpop.f32.mrf.mxu2  ;;  %v7118_v63 = vadd.f32 %v2880_v4, %v7440_v44  ;;  %2845 = vmatmul.bf16.gmra.mxu1 %v2717_v9  ;;  %v2628_v17 = vrot.slane %v5726_v45, 5  ;;  %v7125_v4 = vld [vmem:[%s5821_s29 + $0xac] sm:$0xf]  ;;  %v2697_v33 = vunpack.c.l.b16 %v2626_v12 }
 0x20f   : > { %v4352_v58 = vadd.f32 %v4288_v11, %v7070_v0  ;;  %v3359_v0 = vrot.slane %v3357_v28, 5  ;;  %v3371_v56 = vshll.u32 %v7125_v4, 16  ;;  %v3375_v29 = vshrl.u32 %v7125_v4, 16 }
 0x210   : > { %v2629_v7 = vsel %vm6150_vm5, %v2627_v27, %v2628_v17  ;;  %v4107_v28 = vunpack.c.l.b16 %v4036_v52  ;;  %v3367_v17 = vrot.slane %v3365_v20, 5 }
 0x211   : > { %4448 = vst [vmem:[%s7067_s6 + $0x10] sm:$0xff] %v4352_v58  ;;  %v4479_v2 = vadd.f32 %v4478_v62, %v4352_v58  ;;  %v4518_v36 = vmul.f32 %v4352_v58, %v4352_v58  ;;  %v7127_v9 = vpop.f32.mrf.mxu0  ;;  %v3362_v58 = vshrl.u32 %v5248_v49, 16  ;;  %v2698_v57 = vunpack.c.l.b16 %v2629_v7 }
 0x212   : > { %v3835_v44 = vpop.f32.mrf.mxu3  ;;  %v7151_v49 = vrot.slane %v3371_v56, 5 }
 0x213   : > { %v4549_v22 = vadd.f32 %v4548_v8, %v4518_v36  ;;  %v3836_v62 = vadd.f32 %v3835_v44, %v3602_v19  ;;  %3644 = vmatmul.bf16.gmra.mxu2 %v3516_v43  ;;  %v2808_v11 = vpop.f32.mrf.mxu1  ;;  %v4108_v8 = vunpack.c.l.b16 %v4039_v40  ;;  %v3364_v27 = vrot.slane %v3362_v58, 4  ;;  %v5444_v58 = vld [vmem:[%s5821_s29 + $0xa8] sm:$0xe] }
 0x214   : > { %v2881_v45 = vadd.f32 %v2808_v11, %v6527_v14  ;;  %v3350_v14 = vsel %vm5843_vm2, %v3345_v48, %v7104_v24  ;;  %v3377_v36 = vrot.slane %v3375_v29, 4  ;;  %v5156_v24 = vld [vmem:[%s5821_s29 + $0x9c] sm:$0xe]  ;;  %v4042_v48 = vrot.slane %v7125_v4, 5  ;;  %v5728_v4 = vld [vmem:[%s5821_s29 + $0xa4] sm:$0x1] }
 0x215   : > { %v4289_v37 = vadd.f32 %v7084_v60, %v3836_v62  ;;  %v3360_v60 = vsel %vm5843_vm2, %v3355_v6, %v3359_v0  ;;  %v4128_v12 = vpack.c.b16 %v4108_v8, %v4107_v28  ;;  %v3496_v11 = vunpack.c.l.b16 %v3350_v14 }
 0x216   : > { %v3605_v19 = vpop.f32.mrf.mxu2  ;;  %v7143_v25 = vadd.f32 %v2881_v45, %v6521_v16  ;;  %v3497_v7 = vunpack.c.l.b16 %v3360_v60  ;;  %v3368_v45 = vor.u32 %v3367_v17, %v3364_v27  ;;  %v3378_v56 = vor.u32 %v3377_v36, %v7151_v49  ;;  %v5250_v27 = vld [vmem:[%s5821_s29 + $0xb4] sm:$0xf] }
 0x217   : > { %v4353_v43 = vadd.f32 %v4289_v37, %v7096_v31  ;;  %3877 = vmatmul.bf16.gmra.mxu3 %v5604_v41  ;;  %v5727_v31 = vld [vmem:[%s5821_s29 + $0xa0] sm:$0xf]  ;;  %v2718_v41 = vpack.c.b16 %v2698_v57, %v2697_v33  ;;  %v5172_v37 = vrot.slane %v5156_v24, 9  ;;  %v2635_v8 = vrot.slane %v5728_v4, 5 }
 0x218   : > { %v2632_v52 = vrot.slane %v5727_v31, 5  ;;  %v4044_v57 = vrot.slane %v4042_v48, 4  ;;  %v7172_v31 = vld [vmem:[%s5821_s29 + $0xb8] sm:$0xf] }
 0x219   : > { %4449 = vst [vmem:[%s7067_s6 + $0x18] sm:$0xff] %v4353_v43  ;;  %v4480_v16 = vadd.f32 %v4479_v2, %v4353_v43  ;;  %v4519_v44 = vmul.f32 %v4353_v43, %v4353_v43  ;;  %v7155_v62 = vpop.f32.mrf.mxu0 }
 0x21a   : > { %v3838_v40 = vpop.f32.mrf.mxu3  ;;  %v2634_v28 = vrot.slane %v2632_v52, 4 }
 0x21b   : > { %v4550_v20 = vadd.f32 %v4549_v22, %v4519_v44  ;;  %v3839_v6 = vadd.f32 %v3838_v40, %v3605_v19  ;;  %v2811_v0 = vpop.f32.mrf.mxu1  ;;  %v5284_v22 = vld [vmem:[%s5821_s29 + $0xb0] sm:$0x1]  ;;  %v3369_v44 = vrot.slane %v3368_v45, 4  ;;  %v7441_v45 = vld [vmem:[#allocation8_spill] sm:$0xff] }
 0x21c   : > { %v2882_v2 = vadd.f32 %v2811_v0, %v6546_v50  ;;  %4260 = vmatmul.bf16.gmra.mxu0 %v4128_v12  ;;  %v5460_v50 = vrot.slane %v5444_v58, 9  ;;  %v4045_v43 = vrot.slane %v5284_v22, 5  ;;  %v3381_v60 = vshll.u32 %v5284_v22, 16 }
 0x21d   : > { %v4290_v29 = vadd.f32 %v7107_v18, %v3839_v6  ;;  %v3517_v18 = vpack.c.b16 %v3497_v7, %v3496_v11  ;;  %v3379_v12 = vrot.slane %v3378_v56, 4  ;;  %v5605_v11 = vld [vmem:[%s5821_s29 + $0x9c] sm:$0xff]  ;;  %v3386_v58 = vshrl.u32 %v5250_v27, 16 }
 0x21e   : > { %v3607_v19 = vpop.f32.mrf.mxu2  ;;  %v7166_v33 = vadd.f32 %v2882_v2, %v6531_v42  ;;  %2850 = vmatmul.bf16.gmra.mxu1 %v2718_v41  ;;  %v2633_v41 = vsel %vm6150_vm5, %v5172_v37, %v2632_v52  ;;  %v4043_v24 = vsel %vm6150_vm5, %v5460_v50, %v4042_v48  ;;  %v3389_v2 = vshll.u32 %v5250_v27, 16 }
 0x21f   : > { %v4354_v14 = vadd.f32 %v4290_v29, %v7118_v63  ;;  %v2636_v63 = vsel %vm6150_vm5, %v2634_v28, %v2635_v8  ;;  %v3383_v29 = vrot.slane %v3381_v60, 5  ;;  %v3395_v52 = vshll.u32 %v7172_v31, 16 }
 0x220   : > { %v3399_v37 = vshrl.u32 %v7172_v31, 16  ;;  %v4109_v28 = vunpack.c.l.b16 %v4043_v24  ;;  %v2700_v50 = vunpack.c.l.b16 %v2636_v63  ;;  %v4049_v63 = vrot.slane %v7172_v31, 5 }
 0x221   : > { %4450 = vst [vmem:[%s7067_s6 + $0x20] sm:$0xff] %v4354_v14  ;;  %v4481_v17 = vadd.f32 %v4480_v16, %v4354_v14  ;;  %v4520_v36 = vmul.f32 %v4354_v14, %v4354_v14  ;;  %v7174_v42 = vpop.f32.mrf.mxu0  ;;  %v4046_v16 = vsel %vm6150_vm5, %v4044_v57, %v4045_v43  ;;  %v3374_v43 = vsel %vm5843_vm2, %v3369_v44, %v7151_v49 }
 0x222   : > { %v3840_v40 = vpop.f32.mrf.mxu3  ;;  %v4110_v4 = vunpack.c.l.b16 %v4046_v16  ;;  %v3388_v14 = vrot.slane %v3386_v58, 4  ;;  %v7198_v60 = vrot.slane %v3395_v52, 5  ;;  %v3401_v27 = vrot.slane %v3399_v37, 4 }
 0x223   : > { %v4551_v6 = vadd.f32 %v4550_v20, %v4520_v36  ;;  %v3841_v0 = vadd.f32 %v3840_v40, %v3607_v19  ;;  %3649 = vmatmul.bf16.gmra.mxu2 %v3517_v18  ;;  %v2813_v7 = vpop.f32.mrf.mxu1  ;;  %v7442_v20 = vld [vmem:[#allocation7_spill] sm:$0xff]  ;;  %v2699_v19 = vunpack.c.l.b16 %v2633_v41  ;;  %v3391_v18 = vrot.slane %v3389_v2, 5  ;;  %v5445_v41 = vld [vmem:[%s5821_s29 + $0xb4] sm:$0xe] }
 0x224   : > { %v2883_v56 = vadd.f32 %v2813_v7, %v7441_v45  ;;  %v3498_v16 = vunpack.c.l.b16 %v3374_v43  ;;  %v5285_v7 = vld [vmem:[%s5821_s29 + $0xbc] sm:$0x1]  ;;  %v3402_v37 = vor.u32 %v3401_v27, %v7198_v60  ;;  %v5461_v31 = vrot.slane %v5445_v41, 9  ;;  %v5730_v43 = vld [vmem:[%s5821_s29 + $0xb0] sm:$0x1] }
 0x225   : > { %v4291_v48 = vadd.f32 %v7127_v9, %v3841_v0  ;;  %v3384_v9 = vsel %vm5843_vm2, %v3379_v12, %v3383_v29  ;;  %v2719_v44 = vpack.c.b16 %v2700_v50, %v2699_v19  ;;  %v5729_v0 = vld [vmem:[%s5821_s29 + $0xac] sm:$0xf]  ;;  %v7443_v29 = vld [vmem:[#allocation10_spill] sm:$0xff] }
 0x226   : > { %v3610_v8 = vpop.f32.mrf.mxu2  ;;  %v7190_v22 = vadd.f32 %v2883_v56, %v7442_v20  ;;  %v3499_v45 = vunpack.c.l.b16 %v3384_v9  ;;  %v3392_v56 = vor.u32 %v3391_v18, %v3388_v14  ;;  %v4052_v20 = vrot.slane %v5285_v7, 5 }
 0x227   : > { %v4355_v57 = vadd.f32 %v4291_v48, %v7143_v25  ;;  %3882 = vmatmul.bf16.gmra.mxu3 %v5605_v11  ;;  %v4129_v25 = vpack.c.b16 %v4110_v4, %v4109_v28  ;;  %v2639_v11 = vrot.slane %v5729_v0, 5  ;;  %v3405_v28 = vshll.u32 %v5285_v7, 16  ;;  %v5252_v0 = vld [vmem:[%s5821_s29 + $0xc0] sm:$0xf] }
 0x228   : > { %v4051_v4 = vrot.slane %v4049_v63, 4  ;;  %v2642_v14 = vrot.slane %v5730_v43, 5  ;;  %v3518_v9 = vpack.c.b16 %v3499_v45, %v3498_v16  ;;  %v3403_v27 = vrot.slane %v3402_v37, 4 }
 0x229   : > { %4451 = vst [vmem:[%s7067_s6 + $0x28] sm:$0xff] %v4355_v57  ;;  %v4482_v36 = vadd.f32 %v4481_v17, %v4355_v57  ;;  %v4521_v40 = vmul.f32 %v4355_v57, %v4355_v57  ;;  %v7203_v49 = vpop.f32.mrf.mxu0  ;;  %v5157_v17 = vld [vmem:[%s5821_s29 + $0xa8] sm:$0xe]  ;;  %v2641_v57 = vrot.slane %v2639_v11, 4 }
 0x22a   : > { %v3843_v24 = vpop.f32.mrf.mxu3  ;;  %v5173_v50 = vrot.slane %v5157_v17, 9 }
 0x22b   : > { %v4552_v12 = vadd.f32 %v4551_v6, %v4521_v40  ;;  %v3844_v58 = vadd.f32 %v3843_v24, %v3610_v8  ;;  %v2816_v2 = vpop.f32.mrf.mxu1  ;;  %v7444_v6 = vld [vmem:[#allocation9_spill] sm:$0xff]  ;;  %v4050_v40 = vsel %vm6150_vm5, %v5461_v31, %v4049_v63  ;;  %v3407_v24 = vrot.slane %v3405_v28, 5 }
 0x22c   : > { %v2884_v52 = vadd.f32 %v2816_v2, %v7443_v29  ;;  %4265 = vmatmul.bf16.gmra.mxu0 %v4129_v25  ;;  %v2643_v16 = vsel %vm6150_vm5, %v2641_v57, %v2642_v14  ;;  %v7229_v2 = vld [vmem:[%s5821_s29 + $0xc4] sm:$0xf]  ;;  %v4111_v29 = vunpack.c.l.b16 %v4050_v40  ;;  %v3410_v31 = vshrl.u32 %v5252_v0, 16 }
 0x22d   : > { %v4292_v48 = vadd.f32 %v7155_v62, %v3844_v58  ;;  %v3393_v62 = vrot.slane %v3392_v56, 4  ;;  %v3419_v28 = vshll.u32 %v7229_v2, 16 }
 0x22e   : > { %v3612_v19 = vpop.f32.mrf.mxu2  ;;  %v7212_v8 = vadd.f32 %v2884_v52, %v7444_v6  ;;  %2855 = vmatmul.bf16.gmra.mxu1 %v2719_v44  ;;  %v4053_v44 = vsel %vm6150_vm5, %v4051_v4, %v4052_v20  ;;  %v3423_v4 = vshrl.u32 %v7229_v2, 16  ;;  %v3412_v14 = vrot.slane %v3410_v31, 4 }
 0x22f   : > { %v4356_v18 = vadd.f32 %v4292_v48, %v7166_v33  ;;  %v2640_v33 = vsel %vm6150_vm5, %v5173_v50, %v2639_v11  ;;  %v3398_v56 = vsel %vm5843_vm2, %v3393_v62, %v7198_v60  ;;  %v4112_v37 = vunpack.c.l.b16 %v4053_v44 }
 0x230   : > { %v3413_v11 = vshll.u32 %v5252_v0, 16  ;;  %v2701_v60 = vunpack.c.l.b16 %v2640_v33  ;;  %v2702_v50 = vunpack.c.l.b16 %v2643_v16  ;;  %v3500_v57 = vunpack.c.l.b16 %v3398_v56  ;;  %v7446_v56 = vld [vmem:[#allocation13_spill] sm:$0xff] }
 0x231   : > { %4452 = vst [vmem:[%s7067_s6 + $0x30] sm:$0xff] %v4356_v18  ;;  %v4483_v25 = vadd.f32 %v4482_v36, %v4356_v18  ;;  %v4522_v41 = vmul.f32 %v4356_v18, %v4356_v18  ;;  %v7222_v58 = vpop.f32.mrf.mxu0  ;;  %v5606_v36 = vld [vmem:[%s5821_s29 + $0xa8] sm:$0xff]  ;;  %v3425_v40 = vrot.slane %v3423_v4, 4  ;;  %v4056_v0 = vrot.slane %v7229_v2, 5 }
 0x232   : > { %v3845_v7 = vpop.f32.mrf.mxu3  ;;  %v3415_v18 = vrot.slane %v3413_v11, 5  ;;  %v2720_v44 = vpack.c.b16 %v2702_v50, %v2701_v60 }
 0x233   : > { %v4553_v63 = vadd.f32 %v4552_v12, %v4522_v41  ;;  %v3846_v45 = vadd.f32 %v3845_v7, %v3612_v19  ;;  %3654 = vmatmul.bf16.gmra.mxu2 %v3518_v9  ;;  %v2818_v17 = vpop.f32.mrf.mxu1  ;;  %v3408_v12 = vsel %vm5843_vm2, %v3403_v27, %v3407_v24  ;;  %v7445_v19 = vld [vmem:[#allocation11_spill] sm:$0xff]  ;;  %v7246_v27 = vrot.slane %v3419_v28, 5 }
 0x234   : > { %v2885_v52 = vadd.f32 %v2818_v17, %v6602_v34  ;;  %v3501_v43 = vunpack.c.l.b16 %v3408_v12  ;;  %v5446_v17 = vld [vmem:[%s5821_s29 + $0xc0] sm:$0xe]  ;;  %v3416_v31 = vor.u32 %v3415_v18, %v3412_v14  ;;  %v4058_v4 = vrot.slane %v4056_v0, 4 }
 0x235   : > { %v4293_v48 = vadd.f32 %v7174_v42, %v3846_v45  ;;  %v4130_v42 = vpack.c.b16 %v4112_v37, %v4111_v29  ;;  %v5731_v45 = vld [vmem:[%s5821_s29 + $0xb8] sm:$0xf]  ;;  %v3426_v11 = vor.u32 %v3425_v40, %v7246_v27  ;;  %v5462_v28 = vrot.slane %v5446_v17, 9  ;;  %v7448_v17 = vld [vmem:[#allocation15_spill] sm:$0xff] }
 0x236   : > { %v3615_v20 = vpop.f32.mrf.mxu2  ;;  %v7242_v6 = vadd.f32 %v2885_v52, %v7445_v19  ;;  %v3519_v29 = vpack.c.b16 %v3501_v43, %v3500_v57  ;;  %v5158_v52 = vld [vmem:[%s5821_s29 + $0xb4] sm:$0xe] }
 0x237   : > { %v4357_v34 = vadd.f32 %v4293_v48, %v7190_v22  ;;  %3887 = vmatmul.bf16.gmra.mxu3 %v5606_v36  ;;  %v5286_v22 = vld [vmem:[%s5821_s29 + $0xc8] sm:$0x1]  ;;  %v2646_v36 = vrot.slane %v5731_v45, 5  ;;  %v5174_v60 = vrot.slane %v5158_v52, 9 }
 0x238   : > { %v3429_v48 = vshll.u32 %v5286_v22, 16 }
 0x239   : > { %4453 = vst [vmem:[%s7067_s6 + $0x38] sm:$0xff] %v4357_v34  ;;  %v4484_v9 = vadd.f32 %v4483_v25, %v4357_v34  ;;  %v4523_v62 = vmul.f32 %v4357_v34, %v4357_v34  ;;  %v7248_v24 = vpop.f32.mrf.mxu0  ;;  %v2648_v50 = vrot.slane %v2646_v36, 4 }
 0x23a   : > { %v3848_v41 = vpop.f32.mrf.mxu3  ;;  %v3431_v40 = vrot.slane %v3429_v48, 5 }
 0x23b   : > { %v4554_v7 = vadd.f32 %v4553_v63, %v4523_v62  ;;  %v3849_v33 = vadd.f32 %v3848_v41, %v3615_v20  ;;  %v2821_v16 = vpop.f32.mrf.mxu1  ;;  %v7447_v63 = vld [vmem:[#allocation12_spill] sm:$0xff]  ;;  %v4059_v20 = vrot.slane %v5286_v22, 5  ;;  %v3427_v62 = vrot.slane %v3426_v11, 4  ;;  %v7449_v11 = vld [vmem:[#allocation14_spill] sm:$0xff] }
 0x23c   : > { %v2886_v25 = vadd.f32 %v2821_v16, %v7446_v56  ;;  %4270 = vmatmul.bf16.gmra.mxu0 %v4130_v42  ;;  %v3417_v42 = vrot.slane %v3416_v31, 4  ;;  %v4057_v41 = vsel %vm6150_vm5, %v5462_v28, %v4056_v0  ;;  %v2647_v16 = vsel %vm6150_vm5, %v5174_v60, %v2646_v36 }
 0x23d   : > { %v4294_v37 = vadd.f32 %v7203_v49, %v3849_v33  ;;  %v5732_v49 = vld [vmem:[%s5821_s29 + $0xbc] sm:$0x1]  ;;  %v5607_v33 = vld [vmem:[%s5821_s29 + $0xb4] sm:$0xff]  ;;  %v2703_v36 = vunpack.c.l.b16 %v2647_v16 }
 0x23e   : > { %v3617_v2 = vpop.f32.mrf.mxu2  ;;  %v7259_v12 = vadd.f32 %v2886_v25, %v7447_v63  ;;  %2860 = vmatmul.bf16.gmra.mxu1 %v2720_v44  ;;  %v2649_v34 = vrot.slane %v5732_v49, 5  ;;  %v5254_v25 = vld [vmem:[%s5821_s29 + $0xcc] sm:$0xf]  ;;  %v3422_v0 = vsel %vm5843_vm2, %v3417_v42, %v7246_v27  ;;  %v3432_v63 = vsel %vm5843_vm2, %v3427_v62, %v3431_v40  ;;  %v7450_v16 = vld [vmem:[#allocation17_spill] sm:$0xff] }
 0x23f   : > { %v4358_v19 = vadd.f32 %v4294_v37, %v7212_v8  ;;  %v4060_v8 = vsel %vm6150_vm5, %v4058_v4, %v4059_v20  ;;  %v5255_v37 = vld [vmem:[%s5821_s29 + $0xd0] sm:$0xf]  ;;  %v3502_v4 = vunpack.c.l.b16 %v3422_v0  ;;  %v3437_v27 = vshll.u32 %v5254_v25, 16 }
 0x240   : > { %v2650_v45 = vsel %vm6150_vm5, %v2648_v50, %v2649_v34  ;;  %v3443_v20 = vshll.u32 %v5255_v37, 16  ;;  %v3503_v49 = vunpack.c.l.b16 %v3432_v63  ;;  %v4063_v62 = vrot.slane %v5255_v37, 5 }
 0x241   : > { %4454 = vst [vmem:[%s7067_s6 + $0x40] sm:$0xff] %v4358_v19  ;;  %v4485_v57 = vadd.f32 %v4484_v9, %v4358_v19  ;;  %v4524_v43 = vmul.f32 %v4358_v19, %v4358_v19  ;;  %v7264_v18 = vpop.f32.mrf.mxu0  ;;  %v3447_v19 = vshrl.u32 %v5255_v37, 16 }
 0x242   : > { %v3850_v14 = vpop.f32.mrf.mxu3  ;;  %v3520_v0 = vpack.c.b16 %v3503_v49, %v3502_v4 }
 0x243   : > { %v4555_v44 = vadd.f32 %v4554_v7, %v4524_v43  ;;  %v3851_v22 = vadd.f32 %v3850_v14, %v3617_v2  ;;  %3659 = vmatmul.bf16.gmra.mxu2 %v3519_v29  ;;  %v2823_v9 = vpop.f32.mrf.mxu1  ;;  %v4113_v7 = vunpack.c.l.b16 %v4057_v41  ;;  %v4114_v29 = vunpack.c.l.b16 %v4060_v8  ;;  %v5733_v8 = vld [vmem:[%s5821_s29 + $0xc4] sm:$0xf] }
 0x244   : > { %v2887_v56 = vadd.f32 %v2823_v9, %v7448_v17  ;;  %v2704_v2 = vunpack.c.l.b16 %v2650_v45  ;;  %v5447_v9 = vld [vmem:[%s5821_s29 + $0xcc] sm:$0xe]  ;;  %v3439_v17 = vrot.slane %v3437_v27, 5 }
 0x245   : > { %v4295_v52 = vadd.f32 %v7222_v58, %v3851_v22  ;;  %v3434_v58 = vshrl.u32 %v5254_v25, 16  ;;  %v4131_v34 = vpack.c.b16 %v4114_v29, %v4113_v7  ;;  %v2653_v22 = vrot.slane %v5733_v8, 5  ;;  %v5287_v7 = vld [vmem:[%s5821_s29 + $0xd4] sm:$0x1]  ;;  %v7451_v29 = vld [vmem:[#allocation16_spill] sm:$0xff] }
 0x246   : > { %v3620_v31 = vpop.f32.mrf.mxu2  ;;  %v7283_v48 = vadd.f32 %v2887_v56, %v7449_v11  ;;  %v2721_v14 = vpack.c.b16 %v2704_v2, %v2703_v36  ;;  %v3445_v56 = vrot.slane %v3443_v20, 5  ;;  %v3449_v25 = vrot.slane %v3447_v19, 4 }
 0x247   : > { %v4359_v28 = vadd.f32 %v4295_v52, %v7242_v6  ;;  %3892 = vmatmul.bf16.gmra.mxu3 %v5607_v33  ;;  %v3436_v33 = vrot.slane %v3434_v58, 4  ;;  %v4065_v11 = vrot.slane %v4063_v62, 4  ;;  %v4066_v36 = vrot.slane %v5287_v7, 5  ;;  %v5734_v58 = vld [vmem:[%s5821_s29 + $0xc8] sm:$0x1] }
 0x248   : > { %v2656_v27 = vrot.slane %v5734_v58, 5  ;;  %v3453_v4 = vshll.u32 %v5287_v7, 16 }
 0x249   : > { %4455 = vst [vmem:[%s7067_s6 + $0x48] sm:$0xff] %v4359_v28  ;;  %v4486_v60 = vadd.f32 %v4485_v57, %v4359_v28  ;;  %v4525_v50 = vmul.f32 %v4359_v28, %v4359_v28  ;;  %v7289_v42 = vpop.f32.mrf.mxu0  ;;  %v5159_v57 = vld [vmem:[%s5821_s29 + $0xc0] sm:$0xe]  ;;  %v2655_v28 = vrot.slane %v2653_v22, 4  ;;  %v3440_v20 = vor.u32 %v3439_v17, %v3436_v33 }
 0x24a   : > { %v3853_v43 = vpop.f32.mrf.mxu3  ;;  %v5175_v63 = vrot.slane %v5159_v57, 9 }
 0x24b   : > { %v4556_v6 = vadd.f32 %v4555_v44, %v4525_v50  ;;  %v3854_v40 = vadd.f32 %v3853_v43, %v3620_v31  ;;  %v2826_v41 = vpop.f32.mrf.mxu1  ;;  %v5463_v31 = vrot.slane %v5447_v9, 9 }
 0x24c   : > { %v2888_v45 = vadd.f32 %v2826_v41, %v7450_v16  ;;  %4275 = vmatmul.bf16.gmra.mxu0 %v4131_v34  ;;  %v5608_v41 = vld [vmem:[%s5821_s29 + $0xc0] sm:$0xff]  ;;  %v2654_v33 = vsel %vm6150_vm5, %v5175_v63, %v2653_v22  ;;  %v3441_v16 = vrot.slane %v3440_v20, 4 }
 0x24d   : > { %v4296_v52 = vadd.f32 %v7248_v24, %v3854_v40  ;;  %v3450_v24 = vor.u32 %v3449_v25, %v3445_v56  ;;  %v4064_v43 = vsel %vm6150_vm5, %v5463_v31, %v4063_v62  ;;  %v3455_v62 = vrot.slane %v3453_v4, 5 }
 0x24e   : > { %v3622_v44 = vpop.f32.mrf.mxu2  ;;  %v2952_v37 = vadd.f32 %v2888_v45, %v7451_v29  ;;  %2865 = vmatmul.bf16.gmra.mxu1 %v2721_v14  ;;  %v4067_v14 = vsel %vm6150_vm5, %v4065_v11, %v4066_v36  ;;  %v4115_v17 = vunpack.c.l.b16 %v4064_v43  ;;  %v3446_v13 = vsel %vm5843_vm2, %v3441_v16, %v3445_v56 }
 0x24f   : > { %v4360_v2 = vadd.f32 %v4296_v52, %v7259_v12  ;;  %v3451_v45 = vrot.slane %v3450_v24, 4 }
 0x251   : > { %4456 = vst [vmem:[%s7067_s6 + $0x50] sm:$0xff] %v4360_v2  ;;  %v4487_v19 = vadd.f32 %v4486_v60, %v4360_v2  ;;  %v4526_v50 = vmul.f32 %v4360_v2, %v4360_v2  ;;  %v4238_v34 = vpop.f32.mrf.mxu0  ;;  %v2657_v60 = vsel %vm6150_vm5, %v2655_v28, %v2656_v27  ;;  %v3504_v28 = vunpack.c.l.b16 %v3446_v13 }
 0x252   : > { %v3855_v49 = vpop.f32.mrf.mxu3  ;;  %v2706_v7 = vunpack.c.l.b16 %v2657_v60 }
 0x253   : > { %v4557_v12 = vadd.f32 %v4556_v6, %v4526_v50  ;;  %v3856_v40 = vadd.f32 %v3855_v49, %v3622_v44  ;;  %3664 = vmatmul.bf16.gmra.mxu2 %v3520_v0  ;;  %v2828_v8 = vpop.f32.mrf.mxu1  ;;  %v4116_v6 = vunpack.c.l.b16 %v4067_v14  ;;  %v2705_v0 = vunpack.c.l.b16 %v2654_v33 }
 0x254   : > { %v2889_v9 = vadd.f32 %v2828_v8, %v6684_v1  ;;  %v3456_v1 = vsel %vm5843_vm2, %v3451_v45, %v3455_v62  ;;  %v7452_v8 = vld [vmem:[#allocation18_spill] sm:$0xff] }
 0x255   : > { %v4297_v57 = vadd.f32 %v7264_v18, %v3856_v40  ;;  %v4132_v18 = vpack.c.b16 %v4116_v6, %v4115_v17  ;;  %v2722_v36 = vpack.c.b16 %v2706_v7, %v2705_v0  ;;  %v7453_v17 = vld [vmem:[#allocation20_spill] sm:$0xff] }
 0x256   : > { %v3625_v25 = vpop.f32.mrf.mxu2  ;;  %v2953_v52 = vadd.f32 %v2889_v9, %v6673_v21 }
 0x257   : > { %v4361_v22 = vadd.f32 %v4297_v57, %v7283_v48  ;;  %3897 = vmatmul.bf16.gmra.mxu3 %v5608_v41  ;;  %v3505_v48 = vunpack.c.l.b16 %v3456_v1 }
 0x259   : > { %4457 = vst [vmem:[%s7067_s6 + $0x58] sm:$0xff] %v4361_v22  ;;  %v4488_v44 = vadd.f32 %v4487_v19, %v4361_v22  ;;  %v4527_v29 = vmul.f32 %v4361_v22, %v4361_v22  ;;  %v4241_v11 = vpop.f32.mrf.mxu0  ;;  %v3521_v24 = vpack.c.b16 %v3505_v48, %v3504_v28 }
 0x25a   : > { %v3858_v31 = vpop.f32.mrf.mxu3 }
 0x25b   : > { %v4558_v21 = vadd.f32 %v4557_v12, %v4527_v29  ;;  %v3859_v2 = vadd.f32 %v3858_v31, %v3625_v25  ;;  %v2831_v63 = vpop.f32.mrf.mxu1  ;;  %v7455_v31 = vld [vmem:[#allocation22_spill] sm:$0xff] }
 0x25c   : > { %v2890_v58 = vadd.f32 %v2831_v63, %v6697_v15  ;;  %4280 = vmatmul.bf16.gmra.mxu0 %v4132_v18  ;;  %v5609_v15 = vld [vmem:[%s5821_s29 + $0xcc] sm:$0xff] }
 0x25d   : > { %v4298_v56 = vadd.f32 %v7289_v42, %v3859_v2  ;;  %v7456_v63 = vld [vmem:[#allocation21_spill] sm:$0xff] }
 0x25e   : > { %v3627_v30 = vpop.f32.mrf.mxu2  ;;  %v2954_v27 = vadd.f32 %v2890_v58, %v6687_v53  ;;  %2870 = vmatmul.bf16.gmra.mxu1 %v2722_v36 }
 0x25f   : > { %v4362_v20 = vadd.f32 %v4298_v56, %v2952_v37 }
 0x261   : > { %4458 = vst [vmem:[%s7067_s6 + $0x60] sm:$0xff] %v4362_v20  ;;  %v4489_v4 = vadd.f32 %v4488_v44, %v4362_v20  ;;  %v4528_v19 = vmul.f32 %v4362_v20, %v4362_v20  ;;  %v4243_v49 = vpop.f32.mrf.mxu0 }
 0x262   : > { %v3860_v50 = vpop.f32.mrf.mxu3 }
 0x263   : > { %v4559_v43 = vadd.f32 %v4558_v21, %v4528_v19  ;;  %v3861_v14 = vadd.f32 %v3860_v50, %v3627_v30  ;;  %3669 = vmatmul.bf16.gmra.mxu2 %v3521_v24  ;;  %v2833_v12 = vpop.f32.mrf.mxu1 }
 0x264   : > { %v2891_v42 = vadd.f32 %v2833_v12, %v6716_v32  ;;  %v7454_v32 = vld [vmem:[#allocation19_spill] sm:$0xff] }
 0x265   : > { %v4299_v40 = vadd.f32 %v4238_v34, %v3861_v14 }
 0x266   : > { %v3630_v41 = vpop.f32.mrf.mxu2  ;;  %v2955_v53 = vadd.f32 %v2891_v42, %v7452_v8 }
 0x267   : > { %v4363_v37 = vadd.f32 %v4299_v40, %v2953_v52  ;;  %3902 = vmatmul.bf16.gmra.mxu3 %v5609_v15 }
 0x269   : > { %4459 = vst [vmem:[%s7067_s6 + $0x68] sm:$0xff] %v4363_v37  ;;  %v4490_v33 = vadd.f32 %v4489_v4, %v4363_v37  ;;  %v4529_v60 = vmul.f32 %v4363_v37, %v4363_v37  ;;  %v4246_v16 = vpop.f32.mrf.mxu0 }
 0x26a   : > { %v3863_v9 = vpop.f32.mrf.mxu3 }
 0x26b   : > { %v4560_v45 = vadd.f32 %v4559_v43, %v4529_v60  ;;  %v3864_v62 = vadd.f32 %v3863_v9, %v3630_v41  ;;  %v2836_v57 = vpop.f32.mrf.mxu1  ;;  %v7457_v43 = vld [vmem:[#allocation23_spill] sm:$0xff] }
 0x26c   : > { %v2892_v6 = vadd.f32 %v2836_v57, %v7453_v17 }
 0x26d   : > { %v4300_v25 = vadd.f32 %v4241_v11, %v3864_v62 }
 0x26e   : > { %v3632_v0 = vpop.f32.mrf.mxu2  ;;  %v2956_v34 = vadd.f32 %v2892_v6, %v7454_v32 }
 0x26f   : > { %v4364_v7 = vadd.f32 %v4300_v25, %v2954_v27 }
 0x271   : > { %4460 = vst [vmem:[%s7067_s6 + $0x70] sm:$0xff] %v4364_v7  ;;  %v4491_v22 = vadd.f32 %v4490_v33, %v4364_v7  ;;  %v4530_v52 = vmul.f32 %v4364_v7, %v4364_v7  ;;  %v4248_v1 = vpop.f32.mrf.mxu0 }
 0x272   : > { %v3865_v13 = vpop.f32.mrf.mxu3 }
 0x273   : > { %v4561_v44 = vadd.f32 %v4560_v45, %v4530_v52  ;;  %v3866_v29 = vadd.f32 %v3865_v13, %v3632_v0  ;;  %v2838_v18 = vpop.f32.mrf.mxu1 }
 0x274   : > { %v2893_v36 = vadd.f32 %v2838_v18, %v7455_v31  ;;  %v7458_v18 = vld [vmem:[#allocation25_spill] sm:$0xff] }
 0x275   : > { %v4301_v21 = vadd.f32 %v4243_v49, %v3866_v29 }
 0x276   : > { %v3635_v2 = vpop.f32.mrf.mxu2  ;;  %v2957_v11 = vadd.f32 %v2893_v36, %v7456_v63 }
 0x277   : > { %v4365_v28 = vadd.f32 %v4301_v21, %v2955_v53 }
 0x279   : > { %4461 = vst [vmem:[%s7067_s6 + $0x78] sm:$0xff] %v4365_v28  ;;  %v4492_v48 = vadd.f32 %v4491_v22, %v4365_v28  ;;  %v4531_v58 = vmul.f32 %v4365_v28, %v4365_v28  ;;  %v4251_v30 = vpop.f32.mrf.mxu0 }
 0x27a   : > { %v3868_v56 = vpop.f32.mrf.mxu3 }
 0x27b   : > { %v4562_v27 = vadd.f32 %v4561_v44, %v4531_v58  ;;  %v3869_v20 = vadd.f32 %v3868_v56, %v3635_v2  ;;  %v2841_v24 = vpop.f32.mrf.mxu1  ;;  %v7459_v2 = vld [vmem:[#allocation24_spill] sm:$0xff] }
 0x27c   : > { %v2894_v4 = vadd.f32 %v2841_v24, %v6776_v61 }
 0x27d   : > { %v4302_v19 = vadd.f32 %v4246_v16, %v3869_v20 }
 0x27e   : > { %v3637_v50 = vpop.f32.mrf.mxu2  ;;  %v2958_v49 = vadd.f32 %v2894_v4, %v7457_v43  ;;  %v7460_v4 = vld [vmem:[#allocation26_spill] sm:$0xff] }
 0x27f   : > { %v4366_v14 = vadd.f32 %v4302_v19, %v2956_v34 }
 0x281   : > { %4462 = vst [vmem:[%s7067_s6 + $0x80] sm:$0xff] %v4366_v14  ;;  %v4493_v15 = vadd.f32 %v4492_v48, %v4366_v14  ;;  %v4532_v12 = vmul.f32 %v4366_v14, %v4366_v14  ;;  %v4253_v40 = vpop.f32.mrf.mxu0 }
 0x282   : > { %v3870_v42 = vpop.f32.mrf.mxu3 }
 0x283   : > { %v4563_v41 = vadd.f32 %v4562_v27, %v4532_v12  ;;  %v3871_v8 = vadd.f32 %v3870_v42, %v3637_v50  ;;  %v2843_v53 = vpop.f32.mrf.mxu1 }
 0x284   : > { %v2895_v37 = vadd.f32 %v2843_v53, %v6795_v51 }
 0x285   : > { %v4303_v33 = vadd.f32 %v4248_v1, %v3871_v8 }
 0x286   : > { %v3640_v60 = vpop.f32.mrf.mxu2  ;;  %v2959_v61 = vadd.f32 %v2895_v37, %v6781_v23 }
 0x287   : > { %v4367_v9 = vadd.f32 %v4303_v33, %v2957_v11 }
 0x289   : > { %4463 = vst [vmem:[%s7067_s6 + $0x88] sm:$0xff] %v4367_v9  ;;  %v4494_v16 = vadd.f32 %v4493_v15, %v4367_v9  ;;  %v4533_v45 = vmul.f32 %v4367_v9, %v4367_v9  ;;  %v4256_v57 = vpop.f32.mrf.mxu0 }
 0x28a   : > { %v3873_v62 = vpop.f32.mrf.mxu3 }
 0x28b   : > { %v4564_v17 = vadd.f32 %v4563_v41, %v4533_v45  ;;  %v3874_v6 = vadd.f32 %v3873_v62, %v3640_v60  ;;  %v2846_v25 = vpop.f32.mrf.mxu1  ;;  %v7461_v62 = vld [vmem:[#allocation28_spill] sm:$0xff] }
 0x28c   : > { %v2896_v0 = vadd.f32 %v2846_v25, %v6812_v38  ;;  %v7462_v25 = vld [vmem:[#allocation27_spill] sm:$0xff] }
 0x28d   : > { %v4304_v32 = vadd.f32 %v4251_v30, %v3874_v6 }
 0x28e   : > { %v3642_v34 = vpop.f32.mrf.mxu2  ;;  %v2960_v51 = vadd.f32 %v2896_v0, %v6804_v39 }
 0x28f   : > { %v4368_v7 = vadd.f32 %v4304_v32, %v2958_v49 }
 0x291   : > { %4464 = vst [vmem:[%s7067_s6 + $0x90] sm:$0xff] %v4368_v7  ;;  %v4495_v22 = vadd.f32 %v4494_v16, %v4368_v7  ;;  %v4534_v23 = vmul.f32 %v4368_v7, %v4368_v7  ;;  %v4258_v13 = vpop.f32.mrf.mxu0 }
 0x292   : > { %v3875_v52 = vpop.f32.mrf.mxu3 }
 0x293   : > { %v4565_v1 = vadd.f32 %v4564_v17, %v4534_v23  ;;  %v3876_v44 = vadd.f32 %v3875_v52, %v3642_v34  ;;  %v2848_v29 = vpop.f32.mrf.mxu1  ;;  %v7463_v52 = vld [vmem:[#allocation30_spill] sm:$0xff] }
 0x294   : > { %v2897_v31 = vadd.f32 %v2848_v29, %v7458_v18  ;;  %v7464_v29 = vld [vmem:[#allocation29_spill] sm:$0xff] }
 0x295   : > { %v4305_v36 = vadd.f32 %v4253_v40, %v3876_v44 }
 0x296   : > { %v3645_v21 = vpop.f32.mrf.mxu2  ;;  %v2961_v38 = vadd.f32 %v2897_v31, %v7459_v2 }
 0x297   : > { %v4369_v63 = vadd.f32 %v4305_v36, %v2959_v61 }
 0x299   : > { %4465 = vst [vmem:[%s7067_s6 + $0x98] sm:$0xff] %v4369_v63  ;;  %v4496_v11 = vadd.f32 %v4495_v22, %v4369_v63  ;;  %v4535_v39 = vmul.f32 %v4369_v63, %v4369_v63  ;;  %v4261_v48 = vpop.f32.mrf.mxu0 }
 0x29a   : > { %v3878_v28 = vpop.f32.mrf.mxu3 }
 0x29b   : > { %v4566_v58 = vadd.f32 %v4565_v1, %v4535_v39  ;;  %v3879_v56 = vadd.f32 %v3878_v28, %v3645_v21  ;;  %v2851_v30 = vpop.f32.mrf.mxu1 }
 0x29c   : > { %v2898_v27 = vadd.f32 %v2851_v30, %v6855_v54 }
 0x29d   : > { %v4306_v20 = vadd.f32 %v4256_v57, %v3879_v56 }
 0x29e   : > { %v3647_v24 = vpop.f32.mrf.mxu2  ;;  %v2962_v19 = vadd.f32 %v2898_v27, %v7460_v4 }
 0x29f   : > { %v4370_v50 = vadd.f32 %v4306_v20, %v2960_v51 }
 0x2a1   : > { %4466 = vst [vmem:[%s7067_s6 + $0xa0] sm:$0xff] %v4370_v50  ;;  %v4497_v43 = vadd.f32 %v4496_v11, %v4370_v50  ;;  %v4536_v49 = vmul.f32 %v4370_v50, %v4370_v50  ;;  %v4263_v41 = vpop.f32.mrf.mxu0 }
 0x2a2   : > { %v3880_v14 = vpop.f32.mrf.mxu3 }
 0x2a3   : > { %v4567_v15 = vadd.f32 %v4566_v58, %v4536_v49  ;;  %v3881_v12 = vadd.f32 %v3880_v14, %v3647_v24  ;;  %v2853_v42 = vpop.f32.mrf.mxu1 }
 0x2a4   : > { %v2899_v40 = vadd.f32 %v2853_v42, %v6873_v3 }
 0x2a5   : > { %v4307_v8 = vadd.f32 %v4258_v13, %v3881_v12  ;;  %v7465_v12 = vld [vmem:[#allocation31_spill] sm:$0xff] }
 0x2a6   : > { %v3650_v53 = vpop.f32.mrf.mxu2  ;;  %v2963_v54 = vadd.f32 %v2899_v40, %v6861_v5 }
 0x2a7   : > { %v4371_v37 = vadd.f32 %v4307_v8, %v2961_v38 }
 0x2a9   : > { %4467 = vst [vmem:[%s7067_s6 + $0xa8] sm:$0xff] %v4371_v37  ;;  %v4498_v33 = vadd.f32 %v4497_v43, %v4371_v37  ;;  %v4537_v60 = vmul.f32 %v4371_v37, %v4371_v37  ;;  %v4266_v0 = vpop.f32.mrf.mxu0 }
 0x2aa   : > { %v3883_v61 = vpop.f32.mrf.mxu3 }
 0x2ab   : > { %v4568_v9 = vadd.f32 %v4567_v15, %v4537_v60  ;;  %v3884_v16 = vadd.f32 %v3883_v61, %v3650_v53  ;;  %v2856_v45 = vpop.f32.mrf.mxu1 }
 0x2ac   : > { %v2900_v57 = vadd.f32 %v2856_v45, %v7461_v62 }
 0x2ad   : > { %v4308_v17 = vadd.f32 %v4261_v48, %v3884_v16  ;;  %v7467_v16 = vld [vmem:[#allocation32_spill] sm:$0xff] }
 0x2ae   : > { %v3652_v6 = vpop.f32.mrf.mxu2  ;;  %v2964_v3 = vadd.f32 %v2900_v57, %v7462_v25 }
 0x2af   : > { %v4372_v32 = vadd.f32 %v4308_v17, %v2962_v19 }
 0x2b1   : > { %4468 = vst [vmem:[%s7067_s6 + $0xb0] sm:$0xff] %v4372_v32  ;;  %v4499_v34 = vadd.f32 %v4498_v33, %v4372_v32  ;;  %v4538_v5 = vmul.f32 %v4372_v32, %v4372_v32  ;;  %v4268_v36 = vpop.f32.mrf.mxu0  ;;  %v7466_v33 = vld [vmem:[#allocation33_spill] sm:$0xff] }
 0x2b2   : > { %v3885_v51 = vpop.f32.mrf.mxu3 }
 0x2b3   : > { %v4569_v7 = vadd.f32 %v4568_v9, %v4538_v5  ;;  %v3886_v22 = vadd.f32 %v3885_v51, %v3652_v6  ;;  %v2858_v23 = vpop.f32.mrf.mxu1 }
 0x2b4   : > { %v2901_v13 = vadd.f32 %v2858_v23, %v7463_v52 }
 0x2b5   : > { %v4309_v1 = vadd.f32 %v4263_v41, %v3886_v22 }
 0x2b6   : > { %v3655_v44 = vpop.f32.mrf.mxu2  ;;  %v2965_v18 = vadd.f32 %v2901_v13, %v7464_v29 }
 0x2b7   : > { %v4373_v31 = vadd.f32 %v4309_v1, %v2963_v54 }
 0x2b9   : > { %4469 = vst [vmem:[%s7067_s6 + $0xb8] sm:$0xff] %v4373_v31  ;;  %v4500_v21 = vadd.f32 %v4499_v34, %v4373_v31  ;;  %v4539_v2 = vmul.f32 %v4373_v31, %v4373_v31  ;;  %v4271_v4 = vpop.f32.mrf.mxu0 }
 0x2ba   : > { %v3888_v38 = vpop.f32.mrf.mxu3 }
 0x2bb   : > { %v4570_v63 = vadd.f32 %v4569_v7, %v4539_v2  ;;  %v3889_v11 = vadd.f32 %v3888_v38, %v3655_v44  ;;  %v2861_v39 = vpop.f32.mrf.mxu1 }
 0x2bc   : > { %v2902_v28 = vadd.f32 %v2861_v39, %v6928_v35 }
 0x2bd   : > { %v4310_v48 = vadd.f32 %v4266_v0, %v3889_v11 }
 0x2be   : > { %v3657_v58 = vpop.f32.mrf.mxu2  ;;  %v2966_v56 = vadd.f32 %v2902_v28, %v6917_v47  ;;  %v7468_v28 = vld [vmem:[#allocation35_spill] sm:$0xff] }
 0x2bf   : > { %v4374_v30 = vadd.f32 %v4310_v48, %v2964_v3 }
 0x2c1   : > { %4470 = vst [vmem:[%s7067_s6 + $0xc0] sm:$0xff] %v4374_v30  ;;  %v4501_v27 = vadd.f32 %v4500_v21, %v4374_v30  ;;  %v4540_v20 = vmul.f32 %v4374_v30, %v4374_v30  ;;  %v4273_v37 = vpop.f32.mrf.mxu0 }
 0x2c2   : > { %v3890_v24 = vpop.f32.mrf.mxu3 }
 0x2c3   : > { %v4571_v19 = vadd.f32 %v4570_v63, %v4540_v20  ;;  %v3891_v50 = vadd.f32 %v3890_v24, %v3657_v58  ;;  %v2863_v43 = vpop.f32.mrf.mxu1 }
 0x2c4   : > { %v2903_v49 = vadd.f32 %v2863_v43, %v6946_v46 }
 0x2c5   : > { %v4311_v14 = vadd.f32 %v4268_v36, %v3891_v50 }
 0x2c6   : > { %v3660_v15 = vpop.f32.mrf.mxu2  ;;  %v2967_v35 = vadd.f32 %v2903_v49, %v7465_v12 }
 0x2c7   : > { %v4375_v42 = vadd.f32 %v4311_v14, %v2965_v18 }
 0x2c9   : > { %4471 = vst [vmem:[%s7067_s6 + $0xc8] sm:$0xff] %v4375_v42  ;;  %v4502_v40 = vadd.f32 %v4501_v27, %v4375_v42  ;;  %v4541_v47 = vmul.f32 %v4375_v42, %v4375_v42  ;;  %v4276_v34 = vpop.f32.mrf.mxu0 }
 0x2ca   : > { %v3893_v41 = vpop.f32.mrf.mxu3 }
 0x2cb   : > { %v4572_v8 = vadd.f32 %v4571_v19, %v4541_v47  ;;  %v3894_v53 = vadd.f32 %v3893_v41, %v3660_v15  ;;  %v2866_v54 = vpop.f32.mrf.mxu1 }
 0x2cc   : > { %v2904_v60 = vadd.f32 %v2866_v54, %v7466_v33 }
 0x2cd   : > { %v4312_v61 = vadd.f32 %v4271_v4, %v3894_v53 }
 0x2ce   : > { %v3662_v9 = vpop.f32.mrf.mxu2  ;;  %v2968_v46 = vadd.f32 %v2904_v60, %v7467_v16 }
 0x2cf   : > { %v4376_v45 = vadd.f32 %v4312_v61, %v2966_v56 }
 0x2d1   : > { %4472 = vst [vmem:[%s7067_s6 + $0xd0] sm:$0xff] %v4376_v45  ;;  %v4503_v62 = vadd.f32 %v4502_v40, %v4376_v45  ;;  %v4542_v57 = vmul.f32 %v4376_v45, %v4376_v45  ;;  %v4278_v21 = vpop.f32.mrf.mxu0 }
 0x2d2   : > { %v3895_v17 = vpop.f32.mrf.mxu3 }
 0x2d3   : > { %v4573_v6 = vadd.f32 %v4572_v8, %v4542_v57  ;;  %v3896_v25 = vadd.f32 %v3895_v17, %v3662_v9  ;;  %v2868_v3 = vpop.f32.mrf.mxu1 }
 0x2d4   : > { %v2905_v0 = vadd.f32 %v2868_v3, %v6979_v26 }
 0x2d5   : > { %v4313_v32 = vadd.f32 %v4273_v37, %v3896_v25 }
 0x2d6   : > { %v3665_v5 = vpop.f32.mrf.mxu2  ;;  %v2969_v51 = vadd.f32 %v2905_v0, %v6969_v55 }
 0x2d7   : > { %v4377_v7 = vadd.f32 %v4313_v32, %v2967_v35 }
 0x2d9   : > { %4473 = vst [vmem:[%s7067_s6 + $0xd8] sm:$0xff] %v4377_v7  ;;  %v4504_v22 = vadd.f32 %v4503_v62, %v4377_v7  ;;  %v4543_v23 = vmul.f32 %v4377_v7, %v4377_v7  ;;  %v4281_v24 = vpop.f32.mrf.mxu0 }
 0x2da   : > { %v3898_v52 = vpop.f32.mrf.mxu3 }
 0x2db   : > { %v4574_v13 = vadd.f32 %v4573_v6, %v4543_v23  ;;  %v3899_v1 = vadd.f32 %v3898_v52, %v3665_v5  ;;  %v2871_v44 = vpop.f32.mrf.mxu1 }
 0x2dc   : > { %v2906_v29 = vadd.f32 %v2871_v44, %v6999_v10  ;;  %v7469_v10 = vld [vmem:[#allocation34_spill] sm:$0xff] }
 0x2dd   : > { %v4314_v18 = vadd.f32 %v4276_v34, %v3899_v1 }
 0x2de   : > { %v3667_v31 = vpop.f32.mrf.mxu2  ;;  %v2970_v26 = vadd.f32 %v2906_v29, %v6993_v59 }
 0x2df   : > { %v4378_v36 = vadd.f32 %v4314_v18, %v2968_v46 }
 0x2e1   : > { %4474 = vst [vmem:[%s7067_s6 + $0xe0] sm:$0xff] %v4378_v36  ;;  %v4505_v2 = vadd.f32 %v4504_v22, %v4378_v36  ;;  %v4544_v55 = vmul.f32 %v4378_v36, %v4378_v36  ;;  %v4283_v47 = vpop.f32.mrf.mxu0 }
 0x2e2   : > { %v3900_v38 = vpop.f32.mrf.mxu3 }
 0x2e3   : > { %v4575_v63 = vadd.f32 %v4574_v13, %v4544_v55  ;;  %v3901_v11 = vadd.f32 %v3900_v38, %v3667_v31  ;;  %v2873_v39 = vpop.f32.mrf.mxu1 }
 0x2e4   : > { %v2907_v48 = vadd.f32 %v2873_v39, %v7468_v28 }
 0x2e5   : > { %v4315_v58 = vadd.f32 %v4278_v21, %v3901_v11 }
 0x2e6   : > { %v3670_v56 = vpop.f32.mrf.mxu2  ;;  %v2971_v30 = vadd.f32 %v2907_v48, %v7469_v10 }
 0x2e7   : > { %v4379_v27 = vadd.f32 %v4315_v58, %v2969_v51 }
 0x2e9   : > { %4475 = vst [vmem:[%s7067_s6 + $0xe8] sm:$0xff] %v4379_v27  ;;  %v4506_v20 = vadd.f32 %v4505_v2, %v4379_v27  ;;  %v4545_v59 = vmul.f32 %v4379_v27, %v4379_v27 }
 0x2ea   : > { %v3903_v4 = vpop.f32.mrf.mxu3 }
 0x2eb   : > { %v4576_v19 = vadd.f32 %v4575_v63, %v4545_v59  ;;  %v3904_v50 = vadd.f32 %v3903_v4, %v3670_v56 }
 0x2ed   : > { %v4316_v43 = vadd.f32 %v4281_v24, %v3904_v50 }
 0x2ee   : > { %v3672_v14 = vpop.f32.mrf.mxu2 }
 0x2ef   : > { %v4380_v49 = vadd.f32 %v4316_v43, %v2970_v26 }
 0x2f1   : > { %4476 = vst [vmem:[%s7067_s6 + $0xf0] sm:$0xff] %v4380_v49  ;;  %v4507_v15 = vadd.f32 %v4506_v20, %v4380_v49  ;;  %v4546_v12 = vmul.f32 %v4380_v49, %v4380_v49 }
 0x2f2   : > { %v3905_v35 = vpop.f32.mrf.mxu3 }
 0x2f3   : > { %v4577_v42 = vadd.f32 %v4576_v19, %v4546_v12  ;;  %v3906_v40 = vadd.f32 %v3905_v35, %v3672_v14 }
 0x2f5   : > { %v4317_v41 = vadd.f32 %v4283_v47, %v3906_v40 }
 0x2f7   : > { %v4381_v8 = vadd.f32 %v4317_v41, %v2971_v30 }
 0x2f9   : > { %4477 = vst [vmem:[%s7067_s6 + $0xf8] sm:$0xff] %v4381_v8  ;;  %v4508_v53 = vadd.f32 %v4507_v15, %v4381_v8  ;;  %v4547_v54 = vmul.f32 %v4381_v8, %v4381_v8 }
 0x2fb   : > { %v4509_v37 = vrot.slane %v4508_v53, 4  ;;  %v4578_v33 = vadd.f32 %v4577_v42, %v4547_v54 }
 0x2fd   : > { %v4510_v60 = vadd.f32 %v4509_v37, %v4508_v53  ;;  %v4579_v61 = vrot.slane %v4578_v33, 4 }
 0x2ff   : > { %v4511_v9 = vrot.slane %v4510_v60, 2  ;;  %v4580_v16 = vadd.f32 %v4579_v61, %v4578_v33 }
 0x301   : > { %v4512_v46 = vadd.f32 %v4511_v9, %v4510_v60  ;;  %v4581_v45 = vrot.slane %v4580_v16, 2 }
 0x303   : > { %v4513_v62 = vrot.slane %v4512_v46, 1  ;;  %v4582_v57 = vadd.f32 %v4581_v45, %v4580_v16 }
 0x305   : > { %v4514_v17 = vadd.f32 %v4513_v62, %v4512_v46  ;;  %v4583_v6 = vrot.slane %v4582_v57, 1 }
 0x307   : > { %4515 = vst [vmem:[%s236_s8] sm:$0x1] %v4514_v17  ;;  %v4584_v25 = vadd.f32 %v4583_v6, %v4582_v57 }
 0x309   : > { %4585 = vst [vmem:[%s241_s11] sm:$0x1] %v4584_v25 }
 0x30a PF: > { %s15_s17 = sadd.s32 1, %s5757_s17   ;;  %s7470_s15 = smov %s5753_s16 }
 0x30b   : > { %p12_p6 = scmp.ge.s32.totalorder %s15_s17, 4   ;;  %s7471_s16 = smov %s7473_s18 }
 0x30d   :  { %14 = sbr.rel (!%p12_p6) target bundleno = 2 (0x2), region = 93 }

</bundles_post_ra>
